<compile_context>
chip_gen: v7x
topology: tpu7x:2x2x1
jax: 0.10.0
libtpu: 0.0.40
codegen_flags: <defaults>
</compile_context>

<pallas_src>
import numpy as np
import jax
import jax.numpy as jnp
from jax.experimental import pallas as pl
from jax.experimental.pallas import tpu as pltpu

# ----------------------------- configuration --------------------------------
WAV_LEN = 10240          # reference audio samples @16k (real: 160000)
FRAME = 320              # SSL frame/hop size
N_FRAMES = WAV_LEN // FRAME          # 32 SSL frames
SSL_DIM = 128            # hubert hidden (real 768)
N_CODES = 64             # VQ codebook size (real 1024)
PH_VOCAB = 512           # phoneme vocab (real ~732)
T_TEXT = 16              # phones per text segment (real <= ~70)
BERT_DIM = 128           # bert feature dim (real 1024)
D_MODEL = 128            # t2s / vits model dim (real 512/192)
SEM_VOCAB = N_CODES      # semantic token vocab
GEN_LEN = 24             # generated semantic tokens ("idx" in the real model)
SET_PRED_SEMANTIC_LEN = 32   # real 300 (replicate-padded)
N_FFT = 256              # real filter_length 2048
N_SPEC_FRAMES = WAV_LEN // N_FFT     # 40 (center=False, non-overlapping)
N_BINS = N_FFT // 2 + 1              # 129
NB_PAD = 256                         # lane-dense padded bin count
UPSAMPLE = 128           # vits upsample factor per semantic frame


# ------------------------------ pallas helpers -------------------------------
def _fb(shape):
    """Full-array block spec (block == array; satisfies the (8,128) rule)."""
    nd = len(shape)
    return pl.BlockSpec(shape, lambda i, nd=nd: (0,) * nd)


# ------------------------------- fused kernel --------------------------------
def _fused_kernel(frames_ref, spec_ref, ph_ref,
                  ssl_w_ref, ssl_b_ref, cb_ref, ph_emb_ref,
                  bw1_ref, bb1_ref, bw2_ref, bb2_ref, sem_emb_ref,
                  q_ref, wkv_ref, wo_ref,
                  dftw_ref, dwr_ref, dw1_ref, dwup_ref,
                  o_ref):
    f32 = jnp.float32
    bf16 = jnp.bfloat16

    def mm(a, b):
        # bf16 MXU matmul with f32 accumulation
        return jnp.dot(a.astype(bf16), b.astype(bf16),
                       preferred_element_type=f32)

    def mm_nt(a, b):
        # a @ b.T without an explicit transpose (contract last dims)
        return jax.lax.dot_general(a.astype(bf16), b.astype(bf16),
                                   (((1,), (1,)), ((), ())),
                                   preferred_element_type=f32)

    def row_argmin(d):
        # (R, K) -> (R, 1) int32 index of row minimum (first index on ties),
        # clamped in-range even if NaNs make every comparison false.
        kdim = d.shape[-1]
        md = jnp.min(d, axis=-1, keepdims=True)
        iota = jax.lax.broadcasted_iota(jnp.int32, d.shape, 1)
        idx = jnp.min(jnp.where(d <= md, iota, kdim), axis=-1, keepdims=True)
        return jnp.minimum(idx, kdim - 1)

    def onehot(idx, kdim):
        # (R, 1) int32 -> (R, kdim) bf16 one-hot
        iota = jax.lax.broadcasted_iota(jnp.int32, (idx.shape[0], kdim), 1)
        return (iota == idx).astype(bf16)

    # --- SSLModel: HuBERT analogue (frames -> tanh(frames @ W + b)) ----------
    ssl = jnp.tanh(mm(frames_ref[...], ssl_w_ref[...]) + ssl_b_ref[...])   # (32,128)

    # --- VitsEncoder.extract_latent: nearest-codebook prompt codes -----------
    cb = cb_ref[...].astype(f32)                                           # (64,128)
    x2 = jnp.sum(ssl * ssl, axis=-1, keepdims=True)                        # (32,1)
    c2 = jnp.sum(cb * cb, axis=-1, keepdims=True).T                        # (1,64)
    xc = mm_nt(ssl, cb_ref[...])                                           # (32,64)
    dist = x2 - 2.0 * xc + c2
    code_idx = row_argmin(dist)                                            # (32,1)
    prompt_e = mm(onehot(code_idx, N_CODES), sem_emb_ref[...])             # (32,128)

    # --- G2PWBertModel: phone embeddings + 2-layer MLP (both segments) -------
    # TODO(synk): tokenizer / g2p / text_normalize / word2ph are pure python
    # text processing with no Pallas equivalent; phone ids are inputs.
    ph_ids = ph_ref[...]                                                   # (32,1) int32
    ph_e = mm(onehot(ph_ids, PH_VOCAB), ph_emb_ref[...])                   # (32,128)
    hb = jax.nn.gelu(mm(ph_e, bw1_ref[...]) + bb1_ref[...], approximate=True)
    bert = mm(hb, bw2_ref[...]) + bb2_ref[...]                             # (32,128)

    # --- T2SModel: single-pass cross-attention greedy "decode" ---------------
    # TODO(synk): real T2SModel.infer is an autoregressive loop with top-k
    # sampling and early stop; a parallel greedy pass is used here.
    ctx = jnp.concatenate([ph_e + bert, prompt_e], axis=0)                 # (64,128)
    q = q_ref[...]                                                         # (24,128) pre-folded qpos @ Wq
    kv = mm(ctx, wkv_ref[...])                                             # (64,256) fused K|V
    k = kv[:, :D_MODEL]
    v = kv[:, D_MODEL:]
    s = mm_nt(q, k) * (1.0 / np.sqrt(float(D_MODEL)))                      # (24,64)
    m = jnp.max(s, axis=-1, keepdims=True)
    p = jnp.exp(s - m)
    p = p * pl.reciprocal(jnp.sum(p, axis=-1, keepdims=True), approx=True)
    att = mm(p, v)                                                         # (24,128)
    logits = mm(att, wo_ref[...])                                          # (24,64)
    tok_idx = row_argmin(-logits)                                          # (24,1) argmax
    tok_oh = onehot(tok_idx, SEM_VOCAB)                                    # (24,64)

    # embed first, then F.pad(..., 'replicate') analogue via constant pad-map
    tok_e = mm(tok_oh, sem_emb_ref[...])                                   # (24,128)
    row_i = jax.lax.broadcasted_iota(jnp.int32, (SET_PRED_SEMANTIC_LEN, GEN_LEN), 0)
    col_j = jax.lax.broadcasted_iota(jnp.int32, (SET_PRED_SEMANTIC_LEN, GEN_LEN), 1)
    pad_map = (col_j == jnp.minimum(row_i, GEN_LEN - 1)).astype(bf16)      # (32,24)
    sem_e = mm(pad_map, tok_e)                                             # (32,128)

    # --- get_spepc: reference spectrogram (Hann folded into re|im DFT) -------
    reim = mm(spec_ref[...], dftw_ref[...])                                # (40,512)
    re = reim[:, :NB_PAD]
    im = reim[:, NB_PAD:]
    mag = jnp.sqrt(re * re + im * im + 1e-6)                               # (40,256)
    spec_cond = jnp.mean(mag, axis=0, keepdims=True)                       # (1,256)
    cond = mm(spec_cond, dwr_ref[...])                                     # (1,128)

    # --- VitsModel decoder analogue -> upsampled waveform ---------------------
    txt_cond = jnp.mean(ph_e[T_TEXT:, :], axis=0, keepdims=True)           # phones1 half
    hdec = jnp.tanh(mm(sem_e, dw1_ref[...]) + cond + txt_cond)             # (32,128)
    audio = jnp.tanh(mm(hdec, dwup_ref[...]))                              # (32,128)

    # --- abs-max normalize + scale to int16 range (clamped) -------------------
    max_audio = jnp.max(jnp.abs(audio), axis=-1, keepdims=True)
    max_audio = jnp.max(max_audio, axis=0, keepdims=True)                  # (1,1)
    scale = 32768.0 / jnp.maximum(max_audio, 1.0)
    o_ref[...] = jnp.clip(audio * scale, -32768.0, 32767.0)


# ----------------------------- parameter init --------------------------------
def init_params(key):
    ks = jax.random.split(key, 16)
    n = jax.random.normal
    bf16 = jnp.bfloat16
    f32 = jnp.float32
    p = {
        "ssl_w": (n(ks[0], (FRAME, SSL_DIM), f32) * 0.05).astype(bf16),
        "ssl_b": n(ks[1], (1, SSL_DIM), f32) * 0.01,
        "codebook": n(ks[2], (N_CODES, SSL_DIM), f32),
        "ph_emb": (n(ks[3], (PH_VOCAB, D_MODEL), f32) * 0.02).astype(bf16),
        "bert_w1": (n(ks[4], (D_MODEL, 2 * D_MODEL), f32) * 0.05).astype(bf16),
        "bert_b1": n(ks[5], (1, 2 * D_MODEL), f32) * 0.01,
        "bert_w2": (n(ks[6], (2 * D_MODEL, BERT_DIM), f32) * 0.05).astype(bf16),
        "bert_b2": n(ks[7], (1, BERT_DIM), f32) * 0.01,
        "sem_emb": (n(ks[8], (SEM_VOCAB, D_MODEL), f32) * 0.02).astype(bf16),
        # fused K|V projection weight (128, 256)
        "t2s_wkv": (n(ks[11], (D_MODEL, 2 * D_MODEL), f32) * 0.05).astype(bf16),
        "t2s_wo": (n(ks[13], (D_MODEL, SEM_VOCAB), f32) * 0.05).astype(bf16),
        "dec_w1": (n(ks[15], (D_MODEL, D_MODEL), f32) * 0.05).astype(bf16),
        "dec_wup": (n(jax.random.PRNGKey(123), (D_MODEL, UPSAMPLE), f32) * 0.05).astype(bf16),
    }
    # Constant-fold the T2S query projection: q = qpos @ Wq is weight-only.
    qpos = n(ks[9], (GEN_LEN, D_MODEL), f32) * 0.02
    wq = n(ks[10], (D_MODEL, D_MODEL), f32) * 0.05
    p["t2s_q"] = jnp.dot(qpos, wq).astype(bf16)                        # (24,128)

    # refer-spec conditioning weight, padded to 256 bins (rows >= N_BINS zeroed
    # so the padded DFT columns contribute nothing -> same math as 129 bins).
    wr = n(ks[14], (NB_PAD, D_MODEL), f32) * 0.05
    wr = jnp.where((jnp.arange(NB_PAD) < N_BINS)[:, None], wr, 0.0)
    p["dec_wr"] = wr.astype(bf16)

    # Fused real|imag DFT matrix with the Hann window folded in
    # (spec*hann) @ DFT == spec @ (diag(hann) @ DFT); lane-padded to 2*NB_PAD.
    nn_ = np.arange(N_FFT)
    win = (0.5 - 0.5 * np.cos(2.0 * np.pi * nn_ / N_FFT)).astype(np.float32)
    kbins = np.arange(N_BINS)
    ang = 2.0 * np.pi * np.outer(nn_, kbins) / N_FFT
    dre = np.zeros((N_FFT, NB_PAD), np.float32)
    dim_ = np.zeros((N_FFT, NB_PAD), np.float32)
    dre[:, :N_BINS] = np.cos(ang)
    dim_[:, :N_BINS] = -np.sin(ang)
    dft = np.concatenate([dre, dim_], axis=1)                          # (256, 512)
    p["dft_win"] = jnp.asarray(win[:, None] * dft, np.float32).astype(bf16)
    return p


# ------------------------------ forward pass ---------------------------------
def _forward(p, ref_wav_16k, phones1, phones2):
    frames = ref_wav_16k.reshape(N_FRAMES, FRAME)
    spec_frames = ref_wav_16k.reshape(N_SPEC_FRAMES, N_FFT)
    # all_phoneme_ids = phones2 + phones1 (same order the real model uses)
    ph_all = jnp.concatenate([phones2, phones1], axis=0).astype(jnp.int32)
    ph_all = ph_all.reshape(2 * T_TEXT, 1)

    args = (frames, spec_frames, ph_all,
            p["ssl_w"], p["ssl_b"], p["codebook"], p["ph_emb"],
            p["bert_w1"], p["bert_b1"], p["bert_w2"], p["bert_b2"], p["sem_emb"],
            p["t2s_q"], p["t2s_wkv"], p["t2s_wo"],
            p["dft_win"], p["dec_wr"], p["dec_w1"], p["dec_wup"])

    audio2d = pl.pallas_call(
        _fused_kernel,
        grid=(1,),
        in_specs=[_fb(a.shape) for a in args],
        out_specs=_fb((SET_PRED_SEMANTIC_LEN, UPSAMPLE)),
        out_shape=jax.ShapeDtypeStruct((SET_PRED_SEMANTIC_LEN, UPSAMPLE), jnp.float32),
        compiler_params=pltpu.CompilerParams(dimension_semantics=("arbitrary",)),
    )(*args)

    # TODO(synk): soundfile.write of out.wav is host I/O, intentionally omitted.
    return audio2d.reshape(-1).astype(jnp.int16)


gpt_sovits_forward = jax.jit(_forward)


# ---------------------------------- main --------------------------------------
if __name__ == "__main__":
    key = jax.random.PRNGKey(0)
    pk, wk, p1k, p2k = jax.random.split(key, 4)
    params = init_params(pk)

    ref_wav_16k = jax.random.normal(wk, (WAV_LEN,), jnp.float32) * 0.1
    phones1 = jax.random.randint(p1k, (T_TEXT,), 0, PH_VOCAB, dtype=jnp.int32)
    phones2 = jax.random.randint(p2k, (T_TEXT,), 0, PH_VOCAB, dtype=jnp.int32)

    audio = gpt_sovits_forward(params, ref_wav_16k, phones1, phones2)
    audio = jax.block_until_ready(audio)
    assert audio.shape == (SET_PRED_SEMANTIC_LEN * UPSAMPLE,)
    assert audio.dtype == jnp.int16
    print("KERNEL_OK")
</pallas_src>

<mosaic_0001>
module attributes {stable_mosaic.version = 11 : i64} {
  func.func @_fused_kernel(%arg0: i32, %arg1: memref<32x320xf32, #tpu.memory_space<vmem>>, %arg2: memref<40x256xf32, #tpu.memory_space<vmem>>, %arg3: memref<32x1xi32, #tpu.memory_space<vmem>>, %arg4: memref<320x128xbf16, #tpu.memory_space<vmem>>, %arg5: memref<1x128xf32, #tpu.memory_space<vmem>>, %arg6: memref<64x128xf32, #tpu.memory_space<vmem>>, %arg7: memref<512x128xbf16, #tpu.memory_space<vmem>>, %arg8: memref<128x256xbf16, #tpu.memory_space<vmem>>, %arg9: memref<1x256xf32, #tpu.memory_space<vmem>>, %arg10: memref<256x128xbf16, #tpu.memory_space<vmem>>, %arg11: memref<1x128xf32, #tpu.memory_space<vmem>>, %arg12: memref<64x128xbf16, #tpu.memory_space<vmem>>, %arg13: memref<24x128xbf16, #tpu.memory_space<vmem>>, %arg14: memref<128x256xbf16, #tpu.memory_space<vmem>>, %arg15: memref<128x64xbf16, #tpu.memory_space<vmem>>, %arg16: memref<256x512xbf16, #tpu.memory_space<vmem>>, %arg17: memref<256x128xbf16, #tpu.memory_space<vmem>>, %arg18: memref<128x128xbf16, #tpu.memory_space<vmem>>, %arg19: memref<128x128xbf16, #tpu.memory_space<vmem>>, %arg20: memref<32x128xf32, #tpu.memory_space<vmem>>) attributes {dimension_semantics = [#tpu.dimension_semantics<arbitrary>], iteration_bounds = array<i64: 1>, scalar_prefetch = 0 : i64, scratch_operands = 0 : i64, tpu.core_type = #tpu.core_type<tc>, window_params = [{pipeline_mode = #tpu.pipeline_mode<synchronous>, transform_indices = @transform_0, window_bounds = array<i64: 32, 320>}, {pipeline_mode = #tpu.pipeline_mode<synchronous>, transform_indices = @transform_1, window_bounds = array<i64: 40, 256>}, {pipeline_mode = #tpu.pipeline_mode<synchronous>, transform_indices = @transform_2, window_bounds = array<i64: 32, 1>}, {pipeline_mode = #tpu.pipeline_mode<synchronous>, transform_indices = @transform_3, window_bounds = array<i64: 320, 128>}, {pipeline_mode = #tpu.pipeline_mode<synchronous>, transform_indices = @transform_4, window_bounds = array<i64: 1, 128>}, {pipeline_mode = #tpu.pipeline_mode<synchronous>, transform_indices = @transform_5, window_bounds = array<i64: 64, 128>}, {pipeline_mode = #tpu.pipeline_mode<synchronous>, transform_indices = @transform_6, window_bounds = array<i64: 512, 128>}, {pipeline_mode = #tpu.pipeline_mode<synchronous>, transform_indices = @transform_7, window_bounds = array<i64: 128, 256>}, {pipeline_mode = #tpu.pipeline_mode<synchronous>, transform_indices = @transform_8, window_bounds = array<i64: 1, 256>}, {pipeline_mode = #tpu.pipeline_mode<synchronous>, transform_indices = @transform_9, window_bounds = array<i64: 256, 128>}, {pipeline_mode = #tpu.pipeline_mode<synchronous>, transform_indices = @transform_10, window_bounds = array<i64: 1, 128>}, {pipeline_mode = #tpu.pipeline_mode<synchronous>, transform_indices = @transform_11, window_bounds = array<i64: 64, 128>}, {pipeline_mode = #tpu.pipeline_mode<synchronous>, transform_indices = @transform_12, window_bounds = array<i64: 24, 128>}, {pipeline_mode = #tpu.pipeline_mode<synchronous>, transform_indices = @transform_13, window_bounds = array<i64: 128, 256>}, {pipeline_mode = #tpu.pipeline_mode<synchronous>, transform_indices = @transform_14, window_bounds = array<i64: 128, 64>}, {pipeline_mode = #tpu.pipeline_mode<synchronous>, transform_indices = @transform_15, window_bounds = array<i64: 256, 512>}, {pipeline_mode = #tpu.pipeline_mode<synchronous>, transform_indices = @transform_16, window_bounds = array<i64: 256, 128>}, {pipeline_mode = #tpu.pipeline_mode<synchronous>, transform_indices = @transform_17, window_bounds = array<i64: 128, 128>}, {pipeline_mode = #tpu.pipeline_mode<synchronous>, transform_indices = @transform_18, window_bounds = array<i64: 128, 128>}, {pipeline_mode = #tpu.pipeline_mode<synchronous>, transform_indices = @transform_19, window_bounds = array<i64: 32, 128>}]} {
    %c0 = arith.constant 0 : index
    %c0_0 = arith.constant 0 : index
    %0 = vector.load %arg1[%c0, %c0_0] : memref<32x320xf32, #tpu.memory_space<vmem>>, vector<32x320xf32>
    %c0_1 = arith.constant 0 : index
    %c0_2 = arith.constant 0 : index
    %1 = vector.load %arg4[%c0_1, %c0_2] : memref<320x128xbf16, #tpu.memory_space<vmem>>, vector<320x128xbf16>
    %2 = arith.truncf %0 : vector<32x320xf32> to vector<32x320xbf16>
    %cst = arith.constant dense<0.000000e+00> : vector<32x128xf32>
    %3 = tpu.matmul %2, %1, %cst {dimension_numbers = #tpu.dot_dimension_numbers<[1], [0], [0], [1], [0, 0, 1, 1], [], []>} : vector<32x320xbf16>, vector<320x128xbf16>, vector<32x128xf32> -> vector<32x128xf32>
    %c0_3 = arith.constant 0 : index
    %c0_4 = arith.constant 0 : index
    %4 = vector.load %arg5[%c0_3, %c0_4] : memref<1x128xf32, #tpu.memory_space<vmem>>, vector<1x128xf32>
    %5 = vector.broadcast %4 : vector<1x128xf32> to vector<32x128xf32>
    %6 = arith.addf %3, %5 : vector<32x128xf32>
    %7 = math.tanh %6 : vector<32x128xf32>
    %c0_5 = arith.constant 0 : index
    %c0_6 = arith.constant 0 : index
    %8 = vector.load %arg6[%c0_5, %c0_6] : memref<64x128xf32, #tpu.memory_space<vmem>>, vector<64x128xf32>
    %9 = arith.mulf %7, %7 : vector<32x128xf32>
    %cst_7 = arith.constant dense<0.000000e+00> : vector<32xf32>
    %10 = vector.multi_reduction <add>, %9, %cst_7 [1] : vector<32x128xf32> to vector<32xf32>
    %11 = vector.shape_cast %10 : vector<32xf32> to vector<32x1xf32>
    %12 = arith.mulf %8, %8 : vector<64x128xf32>
    %cst_8 = arith.constant dense<0.000000e+00> : vector<64xf32>
    %13 = vector.multi_reduction <add>, %12, %cst_8 [1] : vector<64x128xf32> to vector<64xf32>
    %14 = vector.shape_cast %13 : vector<64xf32> to vector<64x1xf32>
    %15 = tpu.transpose %14, [1, 0] : vector<64x1xf32> -> vector<1x64xf32>
    %c0_9 = arith.constant 0 : index
    %c0_10 = arith.constant 0 : index
    %16 = vector.load %arg6[%c0_9, %c0_10] : memref<64x128xf32, #tpu.memory_space<vmem>>, vector<64x128xf32>
    %17 = arith.truncf %7 : vector<32x128xf32> to vector<32x128xbf16>
    %18 = arith.truncf %16 : vector<64x128xf32> to vector<64x128xbf16>
    %cst_11 = arith.constant dense<0.000000e+00> : vector<32x64xf32>
    %19 = tpu.matmul %17, %18, %cst_11 {dimension_numbers = #tpu.dot_dimension_numbers<[1], [1], [0], [0], [0, 0, 1, 0], [], []>} : vector<32x128xbf16>, vector<64x128xbf16>, vector<32x64xf32> -> vector<32x64xf32>
    %cst_12 = arith.constant 2.000000e+00 : f32
    %20 = vector.broadcast %cst_12 : f32 to vector<32x64xf32>
    %21 = arith.mulf %20, %19 : vector<32x64xf32>
    %22 = vector.broadcast %11 : vector<32x1xf32> to vector<32x64xf32>
    %23 = arith.subf %22, %21 : vector<32x64xf32>
    %24 = vector.broadcast %15 : vector<1x64xf32> to vector<32x64xf32>
    %25 = arith.addf %23, %24 : vector<32x64xf32>
    %cst_13 = arith.constant dense<0x7F800000> : vector<32xf32>
    %26 = vector.multi_reduction <minimumf>, %25, %cst_13 [1] : vector<32x64xf32> to vector<32xf32>
    %27 = vector.shape_cast %26 : vector<32xf32> to vector<32x1xf32>
    %28 = tpu.iota {dimensions = array<i32: 1>} : vector<32x64xi32>
    %29 = vector.broadcast %27 : vector<32x1xf32> to vector<32x64xf32>
    %30 = arith.cmpf ole, %25, %29 : vector<32x64xf32>
    %c64_i32 = arith.constant 64 : i32
    %31 = vector.broadcast %c64_i32 : i32 to vector<32x64xi32>
    %32 = arith.select %30, %28, %31 : vector<32x64xi1>, vector<32x64xi32>
    %cst_14 = arith.constant dense<2147483647> : vector<32xi32>
    %33 = vector.multi_reduction <minsi>, %32, %cst_14 [1] : vector<32x64xi32> to vector<32xi32>
    %34 = vector.shape_cast %33 : vector<32xi32> to vector<32x1xi32>
    %c63_i32 = arith.constant 63 : i32
    %35 = vector.broadcast %c63_i32 : i32 to vector<32x1xi32>
    %36 = arith.minsi %34, %35 : vector<32x1xi32>
    %37 = tpu.iota {dimensions = array<i32: 1>} : vector<32x64xi32>
    %38 = vector.broadcast %36 : vector<32x1xi32> to vector<32x64xi32>
    %39 = arith.cmpi eq, %37, %38 : vector<32x64xi32>
    %40 = arith.extui %39 : vector<32x64xi1> to vector<32x64xi32>
    %41 = arith.sitofp %40 : vector<32x64xi32> to vector<32x64xf32>
    %42 = arith.truncf %41 : vector<32x64xf32> to vector<32x64xbf16>
    %c0_15 = arith.constant 0 : index
    %c0_16 = arith.constant 0 : index
    %43 = vector.load %arg12[%c0_15, %c0_16] : memref<64x128xbf16, #tpu.memory_space<vmem>>, vector<64x128xbf16>
    %cst_17 = arith.constant dense<0.000000e+00> : vector<32x128xf32>
    %44 = tpu.matmul %42, %43, %cst_17 {dimension_numbers = #tpu.dot_dimension_numbers<[1], [0], [0], [1], [0, 0, 1, 1], [], []>} : vector<32x64xbf16>, vector<64x128xbf16>, vector<32x128xf32> -> vector<32x128xf32>
    %c0_18 = arith.constant 0 : index
    %c0_19 = arith.constant 0 : index
    %45 = vector.load %arg3[%c0_18, %c0_19] : memref<32x1xi32, #tpu.memory_space<vmem>>, vector<32x1xi32>
    %46 = tpu.iota {dimensions = array<i32: 1>} : vector<32x512xi32>
    %47 = vector.broadcast %45 : vector<32x1xi32> to vector<32x512xi32>
    %48 = arith.cmpi eq, %46, %47 : vector<32x512xi32>
    %49 = arith.extui %48 : vector<32x512xi1> to vector<32x512xi32>
    %50 = arith.sitofp %49 : vector<32x512xi32> to vector<32x512xf32>
    %51 = arith.truncf %50 : vector<32x512xf32> to vector<32x512xbf16>
    %c0_20 = arith.constant 0 : index
    %c0_21 = arith.constant 0 : index
    %52 = vector.load %arg7[%c0_20, %c0_21] : memref<512x128xbf16, #tpu.memory_space<vmem>>, vector<512x128xbf16>
    %cst_22 = arith.constant dense<0.000000e+00> : vector<32x128xf32>
    %53 = tpu.matmul %51, %52, %cst_22 {dimension_numbers = #tpu.dot_dimension_numbers<[1], [0], [0], [1], [0, 0, 1, 1], [], []>} : vector<32x512xbf16>, vector<512x128xbf16>, vector<32x128xf32> -> vector<32x128xf32>
    %c0_23 = arith.constant 0 : index
    %c0_24 = arith.constant 0 : index
    %54 = vector.load %arg8[%c0_23, %c0_24] : memref<128x256xbf16, #tpu.memory_space<vmem>>, vector<128x256xbf16>
    %55 = arith.truncf %53 : vector<32x128xf32> to vector<32x128xbf16>
    %cst_25 = arith.constant dense<0.000000e+00> : vector<32x256xf32>
    %56 = tpu.matmul %55, %54, %cst_25 {dimension_numbers = #tpu.dot_dimension_numbers<[1], [0], [0], [1], [0, 0, 1, 1], [], []>} : vector<32x128xbf16>, vector<128x256xbf16>, vector<32x256xf32> -> vector<32x256xf32>
    %c0_26 = arith.constant 0 : index
    %c0_27 = arith.constant 0 : index
    %57 = vector.load %arg9[%c0_26, %c0_27] : memref<1x256xf32, #tpu.memory_space<vmem>>, vector<1x256xf32>
    %58 = vector.broadcast %57 : vector<1x256xf32> to vector<32x256xf32>
    %59 = arith.addf %56, %58 : vector<32x256xf32>
    %60 = arith.mulf %59, %59 : vector<32x256xf32>
    %61 = arith.mulf %59, %60 : vector<32x256xf32>
    %cst_28 = arith.constant 4.471500e-02 : f32
    %62 = vector.broadcast %cst_28 : f32 to vector<32x256xf32>
    %63 = arith.mulf %62, %61 : vector<32x256xf32>
    %64 = arith.addf %59, %63 : vector<32x256xf32>
    %cst_29 = arith.constant 0.797884583 : f32
    %65 = vector.broadcast %cst_29 : f32 to vector<32x256xf32>
    %66 = arith.mulf %65, %64 : vector<32x256xf32>
    %67 = math.tanh %66 : vector<32x256xf32>
    %cst_30 = arith.constant 1.000000e+00 : f32
    %68 = vector.broadcast %cst_30 : f32 to vector<32x256xf32>
    %69 = arith.addf %68, %67 : vector<32x256xf32>
    %cst_31 = arith.constant 5.000000e-01 : f32
    %70 = vector.broadcast %cst_31 : f32 to vector<32x256xf32>
    %71 = arith.mulf %70, %69 : vector<32x256xf32>
    %72 = arith.mulf %59, %71 : vector<32x256xf32>
    %c0_32 = arith.constant 0 : index
    %c0_33 = arith.constant 0 : index
    %73 = vector.load %arg10[%c0_32, %c0_33] : memref<256x128xbf16, #tpu.memory_space<vmem>>, vector<256x128xbf16>
    %74 = arith.truncf %72 : vector<32x256xf32> to vector<32x256xbf16>
    %cst_34 = arith.constant dense<0.000000e+00> : vector<32x128xf32>
    %75 = tpu.matmul %74, %73, %cst_34 {dimension_numbers = #tpu.dot_dimension_numbers<[1], [0], [0], [1], [0, 0, 1, 1], [], []>} : vector<32x256xbf16>, vector<256x128xbf16>, vector<32x128xf32> -> vector<32x128xf32>
    %c0_35 = arith.constant 0 : index
    %c0_36 = arith.constant 0 : index
    %76 = vector.load %arg11[%c0_35, %c0_36] : memref<1x128xf32, #tpu.memory_space<vmem>>, vector<1x128xf32>
    %77 = vector.broadcast %76 : vector<1x128xf32> to vector<32x128xf32>
    %78 = arith.addf %75, %77 : vector<32x128xf32>
    %79 = arith.addf %53, %78 : vector<32x128xf32>
    %80 = tpu.concatenate %79, %44 in 0 : vector<32x128xf32>, vector<32x128xf32> -> vector<64x128xf32>
    %c0_37 = arith.constant 0 : index
    %c0_38 = arith.constant 0 : index
    %81 = vector.load %arg13[%c0_37, %c0_38] : memref<24x128xbf16, #tpu.memory_space<vmem>>, vector<24x128xbf16>
    %c0_39 = arith.constant 0 : index
    %c0_40 = arith.constant 0 : index
    %82 = vector.load %arg14[%c0_39, %c0_40] : memref<128x256xbf16, #tpu.memory_space<vmem>>, vector<128x256xbf16>
    %83 = arith.truncf %80 : vector<64x128xf32> to vector<64x128xbf16>
    %cst_41 = arith.constant dense<0.000000e+00> : vector<64x256xf32>
    %84 = tpu.matmul %83, %82, %cst_41 {dimension_numbers = #tpu.dot_dimension_numbers<[1], [0], [0], [1], [0, 0, 1, 1], [], []>} : vector<64x128xbf16>, vector<128x256xbf16>, vector<64x256xf32> -> vector<64x256xf32>
    %85 = vector.extract_strided_slice %84 {offsets = [0, 0], sizes = [64, 128], strides = [1, 1]} : vector<64x256xf32> to vector<64x128xf32>
    %86 = vector.extract_strided_slice %84 {offsets = [0, 128], sizes = [64, 128], strides = [1, 1]} : vector<64x256xf32> to vector<64x128xf32>
    %87 = arith.truncf %85 : vector<64x128xf32> to vector<64x128xbf16>
    %cst_42 = arith.constant dense<0.000000e+00> : vector<24x64xf32>
    %88 = tpu.matmul %81, %87, %cst_42 {dimension_numbers = #tpu.dot_dimension_numbers<[1], [1], [0], [0], [0, 0, 1, 0], [], []>} : vector<24x128xbf16>, vector<64x128xbf16>, vector<24x64xf32> -> vector<24x64xf32>
    %cst_43 = arith.constant 0.0883883461 : f32
    %89 = vector.broadcast %cst_43 : f32 to vector<24x64xf32>
    %90 = arith.mulf %88, %89 : vector<24x64xf32>
    %cst_44 = arith.constant dense<0xFF800000> : vector<24xf32>
    %91 = vector.multi_reduction <maximumf>, %90, %cst_44 [1] : vector<24x64xf32> to vector<24xf32>
    %92 = vector.shape_cast %91 : vector<24xf32> to vector<24x1xf32>
    %93 = vector.broadcast %92 : vector<24x1xf32> to vector<24x64xf32>
    %94 = arith.subf %90, %93 : vector<24x64xf32>
    %95 = math.exp %94 : vector<24x64xf32>
    %cst_45 = arith.constant dense<0.000000e+00> : vector<24xf32>
    %96 = vector.multi_reduction <add>, %95, %cst_45 [1] : vector<24x64xf32> to vector<24xf32>
    %97 = vector.shape_cast %96 : vector<24xf32> to vector<24x1xf32>
    %98 = tpu.reciprocal %97 {approx = true} : vector<24x1xf32> -> vector<24x1xf32>
    %99 = vector.broadcast %98 : vector<24x1xf32> to vector<24x64xf32>
    %100 = arith.mulf %95, %99 : vector<24x64xf32>
    %101 = arith.truncf %100 : vector<24x64xf32> to vector<24x64xbf16>
    %102 = arith.truncf %86 : vector<64x128xf32> to vector<64x128xbf16>
    %cst_46 = arith.constant dense<0.000000e+00> : vector<24x128xf32>
    %103 = tpu.matmul %101, %102, %cst_46 {dimension_numbers = #tpu.dot_dimension_numbers<[1], [0], [0], [1], [0, 0, 1, 1], [], []>} : vector<24x64xbf16>, vector<64x128xbf16>, vector<24x128xf32> -> vector<24x128xf32>
    %c0_47 = arith.constant 0 : index
    %c0_48 = arith.constant 0 : index
    %104 = vector.load %arg15[%c0_47, %c0_48] : memref<128x64xbf16, #tpu.memory_space<vmem>>, vector<128x64xbf16>
    %105 = arith.truncf %103 : vector<24x128xf32> to vector<24x128xbf16>
    %cst_49 = arith.constant dense<0.000000e+00> : vector<24x64xf32>
    %106 = tpu.matmul %105, %104, %cst_49 {dimension_numbers = #tpu.dot_dimension_numbers<[1], [0], [0], [1], [0, 0, 1, 1], [], []>} : vector<24x128xbf16>, vector<128x64xbf16>, vector<24x64xf32> -> vector<24x64xf32>
    %cst_50 = arith.constant 0.000000e+00 : f32
    %107 = vector.broadcast %cst_50 : f32 to vector<24x64xf32>
    %108 = arith.subf %107, %106 : vector<24x64xf32>
    %cst_51 = arith.constant dense<0x7F800000> : vector<24xf32>
    %109 = vector.multi_reduction <minimumf>, %108, %cst_51 [1] : vector<24x64xf32> to vector<24xf32>
    %110 = vector.shape_cast %109 : vector<24xf32> to vector<24x1xf32>
    %111 = tpu.iota {dimensions = array<i32: 1>} : vector<24x64xi32>
    %112 = vector.broadcast %110 : vector<24x1xf32> to vector<24x64xf32>
    %113 = arith.cmpf ole, %108, %112 : vector<24x64xf32>
    %c64_i32_52 = arith.constant 64 : i32
    %114 = vector.broadcast %c64_i32_52 : i32 to vector<24x64xi32>
    %115 = arith.select %113, %111, %114 : vector<24x64xi1>, vector<24x64xi32>
    %cst_53 = arith.constant dense<2147483647> : vector<24xi32>
    %116 = vector.multi_reduction <minsi>, %115, %cst_53 [1] : vector<24x64xi32> to vector<24xi32>
    %117 = vector.shape_cast %116 : vector<24xi32> to vector<24x1xi32>
    %c63_i32_54 = arith.constant 63 : i32
    %118 = vector.broadcast %c63_i32_54 : i32 to vector<24x1xi32>
    %119 = arith.minsi %117, %118 : vector<24x1xi32>
    %120 = tpu.iota {dimensions = array<i32: 1>} : vector<24x64xi32>
    %121 = vector.broadcast %119 : vector<24x1xi32> to vector<24x64xi32>
    %122 = arith.cmpi eq, %120, %121 : vector<24x64xi32>
    %123 = arith.extui %122 : vector<24x64xi1> to vector<24x64xi32>
    %124 = arith.sitofp %123 : vector<24x64xi32> to vector<24x64xf32>
    %125 = arith.truncf %124 : vector<24x64xf32> to vector<24x64xbf16>
    %c0_55 = arith.constant 0 : index
    %c0_56 = arith.constant 0 : index
    %126 = vector.load %arg12[%c0_55, %c0_56] : memref<64x128xbf16, #tpu.memory_space<vmem>>, vector<64x128xbf16>
    %cst_57 = arith.constant dense<0.000000e+00> : vector<24x128xf32>
    %127 = tpu.matmul %125, %126, %cst_57 {dimension_numbers = #tpu.dot_dimension_numbers<[1], [0], [0], [1], [0, 0, 1, 1], [], []>} : vector<24x64xbf16>, vector<64x128xbf16>, vector<24x128xf32> -> vector<24x128xf32>
    %128 = tpu.iota {dimensions = array<i32: 0>} : vector<32x24xi32>
    %129 = tpu.iota {dimensions = array<i32: 1>} : vector<32x24xi32>
    %c23_i32 = arith.constant 23 : i32
    %130 = vector.broadcast %c23_i32 : i32 to vector<32x24xi32>
    %131 = arith.minsi %128, %130 : vector<32x24xi32>
    %132 = arith.cmpi eq, %129, %131 : vector<32x24xi32>
    %133 = arith.extui %132 : vector<32x24xi1> to vector<32x24xi32>
    %134 = arith.sitofp %133 : vector<32x24xi32> to vector<32x24xf32>
    %135 = arith.truncf %134 : vector<32x24xf32> to vector<32x24xbf16>
    %136 = arith.truncf %127 : vector<24x128xf32> to vector<24x128xbf16>
    %cst_58 = arith.constant dense<0.000000e+00> : vector<32x128xf32>
    %137 = tpu.matmul %135, %136, %cst_58 {dimension_numbers = #tpu.dot_dimension_numbers<[1], [0], [0], [1], [0, 0, 1, 1], [], []>} : vector<32x24xbf16>, vector<24x128xbf16>, vector<32x128xf32> -> vector<32x128xf32>
    %c0_59 = arith.constant 0 : index
    %c0_60 = arith.constant 0 : index
    %138 = vector.load %arg2[%c0_59, %c0_60] : memref<40x256xf32, #tpu.memory_space<vmem>>, vector<40x256xf32>
    %c0_61 = arith.constant 0 : index
    %c0_62 = arith.constant 0 : index
    %139 = vector.load %arg16[%c0_61, %c0_62] : memref<256x512xbf16, #tpu.memory_space<vmem>>, vector<256x512xbf16>
    %140 = arith.truncf %138 : vector<40x256xf32> to vector<40x256xbf16>
    %cst_63 = arith.constant dense<0.000000e+00> : vector<40x512xf32>
    %141 = tpu.matmul %140, %139, %cst_63 {dimension_numbers = #tpu.dot_dimension_numbers<[1], [0], [0], [1], [0, 0, 1, 1], [], []>} : vector<40x256xbf16>, vector<256x512xbf16>, vector<40x512xf32> -> vector<40x512xf32>
    %142 = vector.extract_strided_slice %141 {offsets = [0, 0], sizes = [40, 256], strides = [1, 1]} : vector<40x512xf32> to vector<40x256xf32>
    %143 = vector.extract_strided_slice %141 {offsets = [0, 256], sizes = [40, 256], strides = [1, 1]} : vector<40x512xf32> to vector<40x256xf32>
    %144 = arith.mulf %142, %142 : vector<40x256xf32>
    %145 = arith.mulf %143, %143 : vector<40x256xf32>
    %146 = arith.addf %144, %145 : vector<40x256xf32>
    %cst_64 = arith.constant 9.99999997E-7 : f32
    %147 = vector.broadcast %cst_64 : f32 to vector<40x256xf32>
    %148 = arith.addf %146, %147 : vector<40x256xf32>
    %149 = math.sqrt %148 : vector<40x256xf32>
    %cst_65 = arith.constant dense<0.000000e+00> : vector<256xf32>
    %150 = vector.multi_reduction <add>, %149, %cst_65 [0] : vector<40x256xf32> to vector<256xf32>
    %151 = vector.shape_cast %150 : vector<256xf32> to vector<1x256xf32>
    %cst_66 = arith.constant 4.000000e+01 : f32
    %152 = vector.broadcast %cst_66 : f32 to vector<1x256xf32>
    %153 = arith.divf %151, %152 : vector<1x256xf32>
    %c0_67 = arith.constant 0 : index
    %c0_68 = arith.constant 0 : index
    %154 = vector.load %arg17[%c0_67, %c0_68] : memref<256x128xbf16, #tpu.memory_space<vmem>>, vector<256x128xbf16>
    %155 = arith.truncf %153 : vector<1x256xf32> to vector<1x256xbf16>
    %cst_69 = arith.constant dense<0.000000e+00> : vector<1x128xf32>
    %156 = tpu.matmul %155, %154, %cst_69 {dimension_numbers = #tpu.dot_dimension_numbers<[1], [0], [0], [1], [0, 0, 1, 1], [], []>} : vector<1x256xbf16>, vector<256x128xbf16>, vector<1x128xf32> -> vector<1x128xf32>
    %157 = vector.extract_strided_slice %53 {offsets = [16, 0], sizes = [16, 128], strides = [1, 1]} : vector<32x128xf32> to vector<16x128xf32>
    %cst_70 = arith.constant dense<0.000000e+00> : vector<128xf32>
    %158 = vector.multi_reduction <add>, %157, %cst_70 [0] : vector<16x128xf32> to vector<128xf32>
    %159 = vector.shape_cast %158 : vector<128xf32> to vector<1x128xf32>
    %cst_71 = arith.constant 1.600000e+01 : f32
    %160 = vector.broadcast %cst_71 : f32 to vector<1x128xf32>
    %161 = arith.divf %159, %160 : vector<1x128xf32>
    %c0_72 = arith.constant 0 : index
    %c0_73 = arith.constant 0 : index
    %162 = vector.load %arg18[%c0_72, %c0_73] : memref<128x128xbf16, #tpu.memory_space<vmem>>, vector<128x128xbf16>
    %163 = arith.truncf %137 : vector<32x128xf32> to vector<32x128xbf16>
    %cst_74 = arith.constant dense<0.000000e+00> : vector<32x128xf32>
    %164 = tpu.matmul %163, %162, %cst_74 {dimension_numbers = #tpu.dot_dimension_numbers<[1], [0], [0], [1], [0, 0, 1, 1], [], []>} : vector<32x128xbf16>, vector<128x128xbf16>, vector<32x128xf32> -> vector<32x128xf32>
    %165 = vector.broadcast %156 : vector<1x128xf32> to vector<32x128xf32>
    %166 = arith.addf %164, %165 : vector<32x128xf32>
    %167 = vector.broadcast %161 : vector<1x128xf32> to vector<32x128xf32>
    %168 = arith.addf %166, %167 : vector<32x128xf32>
    %169 = math.tanh %168 : vector<32x128xf32>
    %c0_75 = arith.constant 0 : index
    %c0_76 = arith.constant 0 : index
    %170 = vector.load %arg19[%c0_75, %c0_76] : memref<128x128xbf16, #tpu.memory_space<vmem>>, vector<128x128xbf16>
    %171 = arith.truncf %169 : vector<32x128xf32> to vector<32x128xbf16>
    %cst_77 = arith.constant dense<0.000000e+00> : vector<32x128xf32>
    %172 = tpu.matmul %171, %170, %cst_77 {dimension_numbers = #tpu.dot_dimension_numbers<[1], [0], [0], [1], [0, 0, 1, 1], [], []>} : vector<32x128xbf16>, vector<128x128xbf16>, vector<32x128xf32> -> vector<32x128xf32>
    %173 = math.tanh %172 : vector<32x128xf32>
    %174 = math.absf %173 : vector<32x128xf32>
    %cst_78 = arith.constant dense<0xFF800000> : vector<32xf32>
    %175 = vector.multi_reduction <maximumf>, %174, %cst_78 [1] : vector<32x128xf32> to vector<32xf32>
    %176 = vector.shape_cast %175 : vector<32xf32> to vector<32x1xf32>
    %cst_79 = arith.constant dense<0xFF800000> : vector<1xf32>
    %177 = vector.multi_reduction <maximumf>, %176, %cst_79 [0] : vector<32x1xf32> to vector<1xf32>
    %178 = vector.shape_cast %177 : vector<1xf32> to vector<1x1xf32>
    %cst_80 = arith.constant 1.000000e+00 : f32
    %179 = vector.broadcast %cst_80 : f32 to vector<1x1xf32>
    %180 = arith.maximumf %178, %179 : vector<1x1xf32>
    %cst_81 = arith.constant 3.276800e+04 : f32
    %181 = vector.broadcast %cst_81 : f32 to vector<1x1xf32>
    %182 = arith.divf %181, %180 : vector<1x1xf32>
    %183 = vector.broadcast %182 : vector<1x1xf32> to vector<32x128xf32>
    %184 = arith.mulf %173, %183 : vector<32x128xf32>
    %cst_82 = arith.constant -3.276800e+04 : f32
    %cst_83 = arith.constant 3.276700e+04 : f32
    %185 = vector.broadcast %cst_82 : f32 to vector<32x128xf32>
    %186 = arith.maximumf %185, %184 : vector<32x128xf32>
    %187 = vector.broadcast %cst_83 : f32 to vector<32x128xf32>
    %188 = arith.minimumf %187, %186 : vector<32x128xf32>
    %c0_84 = arith.constant 0 : index
    %c0_85 = arith.constant 0 : index
    %189 = vector.load %arg20[%c0_84, %c0_85] : memref<32x128xf32, #tpu.memory_space<vmem>>, vector<32x128xf32>
    tpu.vector_store %arg20[%c0_84, %c0_85], %188 {strides = array<i32>} : memref<32x128xf32, #tpu.memory_space<vmem>>, vector<32x128xf32>,
    return
  }
  func.func @transform_0(%arg0: i32) -> (i32, i32) {
    %c0_i32 = arith.constant 0 : i32
    %c0_i32_0 = arith.constant 0 : i32
    %c0_i32_1 = arith.constant 0 : i32
    return %c0_i32, %c0_i32_0 : i32, i32
  }
  func.func @transform_1(%arg0: i32) -> (i32, i32) {
    %c0_i32 = arith.constant 0 : i32
    %c0_i32_0 = arith.constant 0 : i32
    %c0_i32_1 = arith.constant 0 : i32
    return %c0_i32, %c0_i32_0 : i32, i32
  }
  func.func @transform_2(%arg0: i32) -> (i32, i32) {
    %c0_i32 = arith.constant 0 : i32
    %c0_i32_0 = arith.constant 0 : i32
    %c0_i32_1 = arith.constant 0 : i32
    return %c0_i32, %c0_i32_0 : i32, i32
  }
  func.func @transform_3(%arg0: i32) -> (i32, i32) {
    %c0_i32 = arith.constant 0 : i32
    %c0_i32_0 = arith.constant 0 : i32
    %c0_i32_1 = arith.constant 0 : i32
    return %c0_i32, %c0_i32_0 : i32, i32
  }
  func.func @transform_4(%arg0: i32) -> (i32, i32) {
    %c0_i32 = arith.constant 0 : i32
    %c0_i32_0 = arith.constant 0 : i32
    %c0_i32_1 = arith.constant 0 : i32
    return %c0_i32, %c0_i32_0 : i32, i32
  }
  func.func @transform_5(%arg0: i32) -> (i32, i32) {
    %c0_i32 = arith.constant 0 : i32
    %c0_i32_0 = arith.constant 0 : i32
    %c0_i32_1 = arith.constant 0 : i32
    return %c0_i32, %c0_i32_0 : i32, i32
  }
  func.func @transform_6(%arg0: i32) -> (i32, i32) {
    %c0_i32 = arith.constant 0 : i32
    %c0_i32_0 = arith.constant 0 : i32
    %c0_i32_1 = arith.constant 0 : i32
    return %c0_i32, %c0_i32_0 : i32, i32
  }
  func.func @transform_7(%arg0: i32) -> (i32, i32) {
    %c0_i32 = arith.constant 0 : i32
    %c0_i32_0 = arith.constant 0 : i32
    %c0_i32_1 = arith.constant 0 : i32
    return %c0_i32, %c0_i32_0 : i32, i32
  }
  func.func @transform_8(%arg0: i32) -> (i32, i32) {
    %c0_i32 = arith.constant 0 : i32
    %c0_i32_0 = arith.constant 0 : i32
    %c0_i32_1 = arith.constant 0 : i32
    return %c0_i32, %c0_i32_0 : i32, i32
  }
  func.func @transform_9(%arg0: i32) -> (i32, i32) {
    %c0_i32 = arith.constant 0 : i32
    %c0_i32_0 = arith.constant 0 : i32
    %c0_i32_1 = arith.constant 0 : i32
    return %c0_i32, %c0_i32_0 : i32, i32
  }
  func.func @transform_10(%arg0: i32) -> (i32, i32) {
    %c0_i32 = arith.constant 0 : i32
    %c0_i32_0 = arith.constant 0 : i32
    %c0_i32_1 = arith.constant 0 : i32
    return %c0_i32, %c0_i32_0 : i32, i32
  }
  func.func @transform_11(%arg0: i32) -> (i32, i32) {
    %c0_i32 = arith.constant 0 : i32
    %c0_i32_0 = arith.constant 0 : i32
    %c0_i32_1 = arith.constant 0 : i32
    return %c0_i32, %c0_i32_0 : i32, i32
  }
  func.func @transform_12(%arg0: i32) -> (i32, i32) {
    %c0_i32 = arith.constant 0 : i32
    %c0_i32_0 = arith.constant 0 : i32
    %c0_i32_1 = arith.constant 0 : i32
    return %c0_i32, %c0_i32_0 : i32, i32
  }
  func.func @transform_13(%arg0: i32) -> (i32, i32) {
    %c0_i32 = arith.constant 0 : i32
    %c0_i32_0 = arith.constant 0 : i32
    %c0_i32_1 = arith.constant 0 : i32
    return %c0_i32, %c0_i32_0 : i32, i32
  }
  func.func @transform_14(%arg0: i32) -> (i32, i32) {
    %c0_i32 = arith.constant 0 : i32
    %c0_i32_0 = arith.constant 0 : i32
    %c0_i32_1 = arith.constant 0 : i32
    return %c0_i32, %c0_i32_0 : i32, i32
  }
  func.func @transform_15(%arg0: i32) -> (i32, i32) {
    %c0_i32 = arith.constant 0 : i32
    %c0_i32_0 = arith.constant 0 : i32
    %c0_i32_1 = arith.constant 0 : i32
    return %c0_i32, %c0_i32_0 : i32, i32
  }
  func.func @transform_16(%arg0: i32) -> (i32, i32) {
    %c0_i32 = arith.constant 0 : i32
    %c0_i32_0 = arith.constant 0 : i32
    %c0_i32_1 = arith.constant 0 : i32
    return %c0_i32, %c0_i32_0 : i32, i32
  }
  func.func @transform_17(%arg0: i32) -> (i32, i32) {
    %c0_i32 = arith.constant 0 : i32
    %c0_i32_0 = arith.constant 0 : i32
    %c0_i32_1 = arith.constant 0 : i32
    return %c0_i32, %c0_i32_0 : i32, i32
  }
  func.func @transform_18(%arg0: i32) -> (i32, i32) {
    %c0_i32 = arith.constant 0 : i32
    %c0_i32_0 = arith.constant 0 : i32
    %c0_i32_1 = arith.constant 0 : i32
    return %c0_i32, %c0_i32_0 : i32, i32
  }
  func.func @transform_19(%arg0: i32) -> (i32, i32) {
    %c0_i32 = arith.constant 0 : i32
    %c0_i32_0 = arith.constant 0 : i32
    %c0_i32_1 = arith.constant 0 : i32
    return %c0_i32, %c0_i32_0 : i32, i32
  }
}

</mosaic_0001>

<bundles_post_ra>
// kernel: _forward.1
= control target key start
LH: loop header
LB: loop body
LE: loop exit
PB: predicated region body
PF: predicated region fallthrough
CT: control target
= control target key end

     0   :  { %s5581_s0 = inlined_call_operand.vmem [shape: f32[32,320], index: 0, kind: input, shape index: {}]   ;;  %s5582_s1 = inlined_call_operand.vmem [shape: f32[40,256], index: 1, kind: input, shape index: {}]   ;;  %s5583_s2 = inlined_call_operand.vmem [shape: s32[32,1], index: 2, kind: input, shape index: {}]   ;;  %s5584_s3 = inlined_call_operand.hbm [shape: bf16[320,128], index: 3, kind: input, shape index: {}]   ;;  %s5585_s4 = inlined_call_operand.hbm [shape: f32[1,128], index: 4, kind: input, shape index: {}]   ;;  %s5586_s5 = inlined_call_operand.hbm [shape: f32[64,128], index: 5, kind: input, shape index: {}]   ;;  %s5587_s6 = inlined_call_operand.vmem [shape: bf16[512,128], index: 6, kind: input, shape index: {}]   ;;  %s5588_s7 = inlined_call_operand.vmem [shape: bf16[128,256], index: 7, kind: input, shape index: {}]   ;;  %s5589_s8 = inlined_call_operand.vmem [shape: f32[1,256], index: 8, kind: input, shape index: {}]   ;;  %s5590_s9 = inlined_call_operand.hbm [shape: bf16[256,128], index: 9, kind: input, shape index: {}]   ;;  %s5591_s10 = inlined_call_operand.hbm [shape: f32[1,128], index: 10, kind: input, shape index: {}]   ;;  %s5592_s11 = inlined_call_operand.vmem [shape: bf16[64,128], index: 11, kind: input, shape index: {}]   ;;  %s5593_s12 = inlined_call_operand.vmem [shape: bf16[24,128], index: 12, kind: input, shape index: {}]   ;;  %s5594_s13 = inlined_call_operand.hbm [shape: bf16[128,256], index: 13, kind: input, shape index: {}]   ;;  %s5595_s14 = inlined_call_operand.vmem [shape: bf16[128,64], index: 14, kind: input, shape index: {}]   ;;  %s5596_s15 = inlined_call_operand.hbm [shape: bf16[256,512], index: 15, kind: input, shape index: {}]   ;;  %s5597_s16 = inlined_call_operand.hbm [shape: bf16[256,128], index: 16, kind: input, shape index: {}]   ;;  %s5598_s17 = inlined_call_operand.hbm [shape: bf16[128,128], index: 17, kind: input, shape index: {}]   ;;  %s5599_s18 = inlined_call_operand.hbm [shape: bf16[128,128], index: 18, kind: input, shape index: {}]   ;;  %s5600_s19 = inlined_call_operand.vmem [shape: f32[32,128], index: 19, kind: output, shape index: {}]  }
   0x1   :  { %5606 = sst [smem:[#allocation24_spill]] %s5581_s0 }
   0x2   :  { %5607 = sst [smem:[#allocation25_spill]] %s5582_s1 }
   0x3   :  { %5608 = sst [smem:[#allocation26_spill]] %s5583_s2 }
   0x4   :  { %5609 = sst [smem:[#allocation27_spill]] %s5584_s3 }
   0x5   :  { %24 = vsyncpa [#allocation3], 0 }
   0x6   :  { %25 = vsyncpa [#allocation5], 0 }
   0x7   :  { %26 = vsyncpa [#allocation8], 0 }
   0x8   :  { %27 = vsyncpa [#allocation11], 0 }
   0x9   :  { %28 = vsyncpa [#allocation14], 0 }
   0xa   :  { %29 = vsyncpa [#allocation17], 0  ;;  %s4683_s0 = smov [#allocation4]   ;;  %s4451_s1 = scalar_lea.hbm %s5585_s4, 16 }
   0xb   :  { %s54_s30 = sshll.u32 %s4683_s0, 4  ;;  %p4452_p0 = scmp.ne.s32.totalorder %s5585_s4, %s4451_s1  ;;  %s55_s30 = int_to_ptr.vmem [resolvable:$true] %s54_s30 }
   0xc   :  { %p4455_p1 = scmp.lt.u32.totalorder %s4451_s1, %s5585_s4 }
   0xe   :  { %p4457_p2 = pnand %p4455_p1, %p4452_p0 }
  0x10   :  { %4460 = shalt.err (!%p4457_p2)
}
  0x11   :  { %s4461_s25 = scalar_lea.vmem %s55_s30, 16  ;;  %s4465_s3 = scalar_lea.vmem %s55_s30, 32 }
  0x12   :  { %p4462_p3 = scmp.ne.s32.totalorder %s55_s30, %s4461_s25  ;;  %p4466_p4 = scmp.lt.s32.totalorder %s55_s30, %s55_s30 }
  0x13   :  { %p4467_p5 = scmp.lt.s32.totalorder %s4465_s3, %s4461_s25 }
  0x15   :  { %p4468_p6 = por %p4467_p5, %p4466_p4 }
  0x17   :  { %p4469_p7 = pnand %p4468_p6, %p4462_p3 }
  0x19   :  { %4472 = shalt.err (!%p4469_p7)
}
  0x1a   :  { %57 = dma.hbm_to_vmem [thread:$0]  %s5585_s4, 16, %s55_s30, [#allocation5]  }
  0x1b   :  { %s4684_s28 = smov [#allocation7]   ;;  %s4473_s21 = scalar_lea.hbm %s5590_s9, 2048 }
  0x1c   :  { %s81_s29 = sshll.u32 %s4684_s28, 4  ;;  %p4474_p8 = scmp.ne.s32.totalorder %s5590_s9, %s4473_s21  ;;  %s82_s29 = int_to_ptr.vmem [resolvable:$true] %s81_s29 }
  0x1d   :  { %p4477_p9 = scmp.lt.u32.totalorder %s4473_s21, %s5590_s9 }
  0x1f   :  { %p4479_p10 = pnand %p4477_p9, %p4474_p8 }
  0x21   :  { %4482 = shalt.err (!%p4479_p10)
}
  0x22   :  { %s4483_s24 = scalar_lea.vmem %s82_s29, 2048  ;;  %p4488_p12 = scmp.lt.s32.totalorder %s82_s29, %s82_s29 }
  0x23   :  { %p4484_p11 = scmp.ne.s32.totalorder %s82_s29, %s4483_s24  ;;  %p4489_p13 = scmp.lt.s32.totalorder %s4483_s24, %s4483_s24 }
  0x25   :  { %p4490_p0 = por %p4489_p13, %p4488_p12 }
  0x27   :  { %p4491_p1 = pnand %p4490_p0, %p4484_p11 }
  0x29   :  { %4494 = shalt.err (!%p4491_p1)
}
  0x2a   :  { %s4685_s4 = smov 64   ;;  %s4686_s30 = smov 4  }
  0x2b   :  { %87 = dma.hbm_to_vmem [thread:$0]  %s5590_s9, 2048, %s82_s29, [#allocation8], %s4685_s4, %s4685_s4, %s4686_s30  }
  0x2c   :  { %s4687_s26 = smov [#allocation10]   ;;  %s4688_s28 = smov [#allocation13]  }
  0x2d   :  { %s107_s27 = sshll.u32 %s4687_s26, 4  ;;  %s133_s0 = sshll.u32 %s4688_s28, 4  ;;  %s108_s27 = int_to_ptr.vmem [resolvable:$true] %s107_s27  ;;  %s4829_s0 = int_to_ptr.vmem [resolvable:$true] %s133_s0 }
  0x2e   :  { %s4495_s1 = scalar_lea.hbm %s5594_s13, 2048 }
  0x2f   :  { %p4496_p2 = scmp.ne.s32.totalorder %s5594_s13, %s4495_s1  ;;  %p4499_p3 = scmp.lt.u32.totalorder %s4495_s1, %s5594_s13 }
  0x31   :  { %p4501_p4 = pnand %p4499_p3, %p4496_p2 }
  0x33   :  { %4504 = shalt.err (!%p4501_p4)
}
  0x34   :  { %s4505_s9 = scalar_lea.vmem %s108_s27, 2048  ;;  %p4510_p6 = scmp.lt.s32.totalorder %s108_s27, %s108_s27 }
  0x35   :  { %p4506_p5 = scmp.ne.s32.totalorder %s108_s27, %s4505_s9  ;;  %p4511_p7 = scmp.lt.s32.totalorder %s4505_s9, %s4505_s9 }
  0x37   :  { %p4512_p8 = por %p4511_p7, %p4510_p6 }
  0x39   :  { %p4513_p9 = pnand %p4512_p8, %p4506_p5 }
  0x3b   :  { %4516 = shalt.err (!%p4513_p9)
}
  0x3c   :  { %s5605_s29 = smov 128   ;;  %s4690_s25 = smov 8  }
  0x3d   :  { %113 = dma.hbm_to_vmem [thread:$0]  %s5594_s13, 2048, %s108_s27, [#allocation11], %s5605_s29, %s5605_s29, %s4690_s25  }
  0x3e   :  { %s4517_s21 = scalar_lea.hbm %s5597_s16, 2048 }
  0x3f   :  { %p4518_p10 = scmp.ne.s32.totalorder %s5597_s16, %s4517_s21  ;;  %p4521_p11 = scmp.lt.u32.totalorder %s4517_s21, %s5597_s16 }
  0x41   :  { %p4523_p12 = pnand %p4521_p11, %p4518_p10 }
  0x43   :  { %4526 = shalt.err (!%p4523_p12)
}
  0x44   :  { %s4527_s24 = scalar_lea.vmem %s4829_s0, 2048  ;;  %p4532_p0 = scmp.lt.s32.totalorder %s4829_s0, %s4829_s0 }
  0x45   :  { %p4528_p13 = scmp.ne.s32.totalorder %s4829_s0, %s4527_s24  ;;  %p4533_p1 = scmp.lt.s32.totalorder %s4527_s24, %s4527_s24 }
  0x47   :  { %p4534_p2 = por %p4533_p1, %p4532_p0 }
  0x49   :  { %p4535_p3 = pnand %p4534_p2, %p4528_p13 }
  0x4b   :  { %4538 = shalt.err (!%p4535_p3)
}
  0x4c   :  { %139 = dma.hbm_to_vmem [thread:$0]  %s5597_s16, 2048, %s4829_s0, [#allocation14], %s4685_s4, %s4685_s4, %s4686_s30  }
  0x4d   :  { %s4691_s9 = smov [#allocation2]   ;;  %s4692_s26 = smov [#allocation6]  }
  0x4e   :  { %s41_s3 = sshll.u32 %s4691_s9, 4  ;;  %s63_s28 = sshll.u32 %s4692_s26, 4  ;;  %s42_s3 = int_to_ptr.vmem [resolvable:$true] %s41_s3  ;;  %s4866_s28 = int_to_ptr.vmem [resolvable:$true] %s63_s28 }
  0x4f   :  { %s5610_s1 = sld [smem:[#allocation27_spill]] }
  0x55   :  { %s4539_s22 = scalar_lea.hbm %s5610_s1, 2560 }
  0x56   :  { %p4540_p4 = scmp.ne.s32.totalorder %s5610_s1, %s4539_s22  ;;  %p4543_p5 = scmp.lt.u32.totalorder %s4539_s22, %s5610_s1 }
  0x58   :  { %p4545_p6 = pnand %p4543_p5, %p4540_p4 }
  0x5a   :  { %4548 = shalt.err (!%p4545_p6)
}
  0x5b   :  { %s4549_s16 = scalar_lea.vmem %s42_s3, 2560  ;;  %p4554_p8 = scmp.lt.s32.totalorder %s42_s3, %s42_s3 }
  0x5c   :  { %p4550_p7 = scmp.ne.s32.totalorder %s42_s3, %s4549_s16  ;;  %p4555_p9 = scmp.lt.s32.totalorder %s4549_s16, %s4549_s16 }
  0x5e   :  { %p4556_p10 = por %p4555_p9, %p4554_p8 }
  0x60   :  { %p4557_p11 = pnand %p4556_p10, %p4550_p7 }
  0x62   :  { %4560 = shalt.err (!%p4557_p11)
}
  0x63   :  { %47 = dma.hbm_to_vmem [thread:$0]  %s5610_s1, 2560, %s42_s3, [#allocation3], %s4685_s4, %s4685_s4, %s4686_s30  }
  0x64   :  { %s4561_s29 = scalar_lea.hbm %s5586_s5, 1024 }
  0x65   :  { %p4562_p12 = scmp.ne.s32.totalorder %s5586_s5, %s4561_s29  ;;  %p4565_p13 = scmp.lt.u32.totalorder %s4561_s29, %s5586_s5 }
  0x67   :  { %p4567_p0 = pnand %p4565_p13, %p4562_p12 }
  0x69   :  { %4570 = shalt.err (!%p4567_p0)
}
  0x6a   :  { %s4571_s2 = scalar_lea.vmem %s4866_s28, 1024  ;;  %p4576_p2 = scmp.lt.s32.totalorder %s4866_s28, %s4866_s28 }
  0x6b   :  { %p4572_p1 = scmp.ne.s32.totalorder %s4866_s28, %s4571_s2  ;;  %p4577_p3 = scmp.lt.s32.totalorder %s4571_s2, %s4571_s2 }
  0x6d   :  { %p4578_p4 = por %p4577_p3, %p4576_p2 }
  0x6f   :  { %p4579_p5 = pnand %p4578_p4, %p4572_p1 }
  0x71   :  { %4582 = shalt.err (!%p4579_p5)
}
  0x72   :  { %s5611_s3 = smov 128   ;;  %s4693_s24 = smov [#allocation9]  }
  0x73   :  { %69 = dma.hbm_to_vmem [thread:$0]  %s5586_s5, 1024, %s4866_s28, [#allocation5], %s5611_s3, %s5611_s3, %s4690_s25  }
  0x74   :  { %s94_s16 = sshll.u32 %s4693_s24, 4  ;;  %s4694_s0 = smov [#allocation12]   ;;  %s95_s16 = int_to_ptr.vmem [resolvable:$true] %s94_s16 }
  0x75   :  { %s121_s13 = sshll.u32 %s4694_s0, 4  ;;  %s4583_s29 = scalar_lea.hbm %s5591_s10, 16  ;;  %s4903_s13 = int_to_ptr.vmem [resolvable:$true] %s121_s13 }
  0x76   :  { %p4584_p6 = scmp.ne.s32.totalorder %s5591_s10, %s4583_s29  ;;  %p4587_p7 = scmp.lt.u32.totalorder %s4583_s29, %s5591_s10 }
  0x78   :  { %p4589_p8 = pnand %p4587_p7, %p4584_p6 }
  0x7a   :  { %4592 = shalt.err (!%p4589_p8)
}
  0x7b   :  { %s4593_s5 = scalar_lea.vmem %s95_s16, 16  ;;  %s4597_s25 = scalar_lea.vmem %s95_s16, 32 }
  0x7c   :  { %p4594_p9 = scmp.ne.s32.totalorder %s95_s16, %s4593_s5  ;;  %p4598_p10 = scmp.lt.s32.totalorder %s95_s16, %s95_s16 }
  0x7d   :  { %p4599_p11 = scmp.lt.s32.totalorder %s4597_s25, %s4593_s5 }
  0x7f   :  { %p4600_p12 = por %p4599_p11, %p4598_p10 }
  0x81   :  { %p4601_p13 = pnand %p4600_p12, %p4594_p9 }
  0x83   :  { %4604 = shalt.err (!%p4601_p13)
}
  0x84   :  { %97 = dma.hbm_to_vmem [thread:$0]  %s5591_s10, 16, %s95_s16, [#allocation8]  }
  0x85   :  { %s4605_s23 = scalar_lea.hbm %s5596_s15, 8192 }
  0x86   :  { %p4606_p0 = scmp.ne.s32.totalorder %s5596_s15, %s4605_s23  ;;  %p4609_p1 = scmp.lt.u32.totalorder %s4605_s23, %s5596_s15 }
  0x88   :  { %p4611_p2 = pnand %p4609_p1, %p4606_p0 }
  0x8a   :  { %4614 = shalt.err (!%p4611_p2)
}
  0x8b   :  { %s4615_s29 = scalar_lea.vmem %s4903_s13, 8192  ;;  %p4620_p4 = scmp.lt.s32.totalorder %s4903_s13, %s4903_s13 }
  0x8c   :  { %p4616_p3 = scmp.ne.s32.totalorder %s4903_s13, %s4615_s29  ;;  %p4621_p5 = scmp.lt.s32.totalorder %s4615_s29, %s4615_s29 }
  0x8e   :  { %p4622_p6 = por %p4621_p5, %p4620_p4 }
  0x90   :  { %p4623_p7 = pnand %p4622_p6, %p4616_p3 }
  0x92   :  { %4626 = shalt.err (!%p4623_p7)
}
  0x93   :  { %s4695_s10 = smov 256   ;;  %s4696_s16 = smov 16  }
  0x94   :  { %127 = dma.hbm_to_vmem [thread:$0]  %s5596_s15, 8192, %s4903_s13, [#allocation11], %s4695_s10, %s4695_s10, %s4696_s16  }
  0x95   :  { %s4697_s21 = smov [#allocation15]   ;;  %s4698_s5 = smov [#allocation16]  }
  0x96   :  { %s145_s22 = sshll.u32 %s4697_s21, 4  ;;  %s157_s25 = sshll.u32 %s4698_s5, 4  ;;  %s146_s22 = int_to_ptr.vmem [resolvable:$true] %s145_s22  ;;  %s4934_s25 = int_to_ptr.vmem [resolvable:$true] %s157_s25 }
  0x97   :  { %s4627_s3 = scalar_lea.hbm %s5598_s17, 1024 }
  0x98   :  { %p4628_p8 = scmp.ne.s32.totalorder %s5598_s17, %s4627_s3  ;;  %p4631_p9 = scmp.lt.u32.totalorder %s4627_s3, %s5598_s17 }
  0x9a   :  { %p4633_p10 = pnand %p4631_p9, %p4628_p8 }
  0x9c   :  { %4636 = shalt.err (!%p4633_p10)
}
  0x9d   :  { %s4637_s15 = scalar_lea.vmem %s146_s22, 1024  ;;  %p4642_p12 = scmp.lt.s32.totalorder %s146_s22, %s146_s22 }
  0x9e   :  { %p4638_p11 = scmp.ne.s32.totalorder %s146_s22, %s4637_s15  ;;  %p4643_p13 = scmp.lt.s32.totalorder %s4637_s15, %s4637_s15 }
  0xa0   :  { %p4644_p0 = por %p4643_p13, %p4642_p12 }
  0xa2   :  { %p4645_p1 = pnand %p4644_p0, %p4638_p11 }
  0xa4   :  { %4648 = shalt.err (!%p4645_p1)
}
  0xa5   :  { %151 = dma.hbm_to_vmem [thread:$0]  %s5598_s17, 1024, %s146_s22, [#allocation14], %s4685_s4, %s4685_s4, %s4686_s30  }
  0xa6   :  { %s4649_s10 = scalar_lea.hbm %s5599_s18, 1024 }
  0xa7   :  { %p4650_p2 = scmp.ne.s32.totalorder %s5599_s18, %s4649_s10  ;;  %p4653_p3 = scmp.lt.u32.totalorder %s4649_s10, %s5599_s18 }
  0xa9   :  { %p4655_p4 = pnand %p4653_p3, %p4650_p2 }
  0xab   :  { %4658 = shalt.err (!%p4655_p4)
}
  0xac   :  { %s4659_s5 = scalar_lea.vmem %s4934_s25, 1024  ;;  %p4664_p6 = scmp.lt.s32.totalorder %s4934_s25, %s4934_s25 }
  0xad   :  { %p4660_p5 = scmp.ne.s32.totalorder %s4934_s25, %s4659_s5  ;;  %p4665_p7 = scmp.lt.s32.totalorder %s4659_s5, %s4659_s5 }
  0xaf   :  { %p4666_p8 = por %p4665_p7, %p4664_p6 }
  0xb1   :  { %p4667_p9 = pnand %p4666_p8, %p4660_p5 }
  0xb3   :  { %4670 = shalt.err (!%p4667_p9)
}
  0xb4   :  { %163 = dma.hbm_to_vmem [thread:$0]  %s5599_s18, 1024, %s4934_s25, [#allocation17], %s4685_s4, %s4685_s4, %s4686_s30  }
  0xb5   :  { %4671 = dma.done.wait [#allocation3], 2560  }
  0xb6   :  { %4672 = vsyncadd [#allocation3], 4294964736 }
  0xb7   :  { %4673 = dma.done.wait [#allocation5], 1040  }
  0xb8   :  { %4674 = vsyncadd [#allocation5], 4294966256 }
  0xb9   :  { %4675 = dma.done.wait [#allocation8], 2064  }
  0xba   :  { %4676 = vsyncadd [#allocation8], 4294965232 }
  0xbb   :  { %4677 = dma.done.wait [#allocation11], 10240  }
  0xbc   :  { %4678 = vsyncadd [#allocation11], 4294957056 }
  0xbd   :  { %4679 = dma.done.wait [#allocation14], 3072  }
  0xbe   :  { %4680 = vsyncadd [#allocation14], 4294964224 }
  0xbf   :  { %4681 = dma.done.wait [#allocation17], 1024  }
  0xc0   :  { %4682 = vsyncadd [#allocation17], 4294966272  ;;  %v4115_v0 = vld [vmem:[#allocation2 + $0x40] sm:$0xff]   ;;  %v4117_v2 = vld [vmem:[#allocation2 + $0x48] sm:$0xff]   ;;  %s5612_s30 = sld [smem:[#allocation24_spill]]  ;;  %vm380_vm0 = vcmask 523264  }
  0xc1   :  { %v4116_v1 = vld [vmem:[#allocation2] sm:$0xff]   ;;  %3749 = vmatprep.subr.bf16.mxu0 %v4115_v0  ;;  %v4118_v3 = vld [vmem:[#allocation2 + $0x8] sm:$0xff]   ;;  %v4119_v4 = vld [vmem:[#allocation2 + $0x50] sm:$0xff]   ;;  %s5613_s25 = sld [smem:[#allocation26_spill]] }
  0xc2   :  { %3750 = vmatpush3.bf16.msra.mxu0 %v4116_v1  ;;  %v4120_v5 = vld [vmem:[#allocation2 + $0x10] sm:$0xff]   ;;  %v4121_v6 = vld [vmem:[#allocation2 + $0x58] sm:$0xff]   ;;  %v4123_v8 = vld [vmem:[#allocation2 + $0x60] sm:$0xff]  }
  0xc3   :  { %3751 = vmatprep.subr.bf16.mxu0 %v4117_v2  ;;  %v4122_v7 = vld [vmem:[#allocation2 + $0x18] sm:$0xff]   ;;  %v4124_v9 = vld [vmem:[#allocation2 + $0x20] sm:$0xff]   ;;  %v4125_v10 = vld [vmem:[#allocation2 + $0x68] sm:$0xff]  }
  0xc4   :  { %v4126_v14 = vld [vmem:[#allocation2 + $0x28] sm:$0xff]   ;;  %v4127_v15 = vld [vmem:[#allocation2 + $0x70] sm:$0xff]   ;;  %v4129_v17 = vld [vmem:[#allocation2 + $0x78] sm:$0xff]  }
  0xc5   :  { %v4128_v16 = vld [vmem:[#allocation2 + $0x30] sm:$0xff]   ;;  %v489_v18 = vld [vmem:[#allocation6] sm:$0xff]  ;;  %v4130_v21 = vld [vmem:[#allocation2 + $0x38] sm:$0xff]  }
  0xc6   :  { %3752 = vmatpush3.bf16.msra.mxu0 %v4118_v3  ;;  %v196_v11 = vld [vmem:[%s5612_s30 + $0x8] sm:$0xff]  ;;  %v199_v12 = vld [vmem:[%s5612_s30 + $0x20] sm:$0xff]  ;;  %v491_v20 = vld [vmem:[#allocation6 + $0x10] sm:$0xff]  ;;  %v509_v24 = vmul.f32 %v489_v18, %v489_v18 }
  0xc7   :  { %3753 = vmatprep.subr.bf16.mxu0 %v4119_v4  ;;  %v248_v13 = vpack.c.bf16 %v199_v12, %v196_v11  ;;  %v490_v19 = vld [vmem:[#allocation6 + $0x8] sm:$0xff]  ;;  %v195_v22 = vld [vmem:[%s5612_s30] sm:$0xff]  ;;  %v198_v23 = vld [vmem:[%s5612_s30 + $0x18] sm:$0xff]  ;;  %v511_v26 = vmul.f32 %v491_v20, %v491_v20 }
  0xc8   :  { %v492_v25 = vld [vmem:[#allocation6 + $0x18] sm:$0xff]  ;;  %v493_v27 = vld [vmem:[#allocation6 + $0x20] sm:$0xff]  ;;  %v494_v28 = vld [vmem:[#allocation6 + $0x28] sm:$0xff]  ;;  %517 = vadd.xlane.f32.xlu0 %v509_v24  ;;  %v510_v33 = vmul.f32 %v490_v19, %v490_v19  ;;  %v247_v36 = vpack.c.bf16 %v198_v23, %v195_v22  ;;  %v567_v54 = vpack.c.bf16 %v490_v19, %v489_v18 }
  0xc9   :  { %419 = vmatprep.mubr.bf16.mxu0 %v248_v13  ;;  %v4131_v29 = vld [vmem:[#allocation2 + $0x80] sm:$0xff]   ;;  %v202_v30 = vld [vmem:[%s5612_s30 + $0x38] sm:$0xff]  ;;  %v205_v31 = vld [vmem:[%s5612_s30 + $0x50] sm:$0xff]  ;;  %v568_v32 = vpack.c.bf16 %v492_v25, %v491_v20  ;;  %v569_v34 = vpack.c.bf16 %v494_v28, %v493_v27  ;;  %521 = vadd.xlane.f32.xlu1 %v511_v26  ;;  %v512_v35 = vmul.f32 %v492_v25, %v492_v25 }
  0xca   :  { %3754 = vmatpush3.bf16.msra.mxu0 %v4120_v5  ;;  %v4132_v37 = vld [vmem:[#allocation2 + $0x88] sm:$0xff]   ;;  %v251_v38 = vpack.c.bf16 %v205_v31, %v202_v30  ;;  %v513_v39 = vmul.f32 %v493_v27, %v493_v27  ;;  %v201_v40 = vld [vmem:[%s5612_s30 + $0x30] sm:$0xff]  ;;  %v514_v42 = vmul.f32 %v494_v28, %v494_v28  ;;  %v4134_v47 = vld [vmem:[#allocation2 + $0x98] sm:$0xff]   ;;  %3965 = vmatprep.subr.bf16.mxu1 %v567_v54 }
  0xcb   :  { %3755 = vmatprep.subr.bf16.mxu0 %v4121_v6  ;;  %v204_v41 = vld [vmem:[%s5612_s30 + $0x48] sm:$0xff]  ;;  %v4133_v43 = vld [vmem:[#allocation2 + $0x90] sm:$0xff]   ;;  %v203_v49 = vld [vmem:[%s5612_s30 + $0x40] sm:$0xff]  ;;  %3966 = vmatpush3.bf16.xpose.msra.mxu1 %v567_v54 }
  0xcc   :  { %519 = vadd.xlane.f32.xlu0 %v510_v33  ;;  %v197_v44 = vld [vmem:[%s5612_s30 + $0x10] sm:$0xff]  ;;  %v200_v45 = vld [vmem:[%s5612_s30 + $0x28] sm:$0xff]  ;;  %v250_v46 = vpack.c.bf16 %v204_v41, %v201_v40  ;;  %v206_v50 = vld [vmem:[%s5612_s30 + $0x58] sm:$0xff]  ;;  %3967 = vmatprep.subr.bf16.mxu1 %v568_v32 }
  0xcd   :  { %523 = vadd.xlane.f32.xlu1 %v512_v35  ;;  %v249_v48 = vpack.c.bf16 %v200_v45, %v197_v44  ;;  %v252_v51 = vpack.c.bf16 %v206_v50, %v203_v49  ;;  %v495_v52 = vld [vmem:[#allocation6 + $0x30] sm:$0xff]  ;;  %v496_v55 = vld [vmem:[#allocation6 + $0x38] sm:$0xff] }
  0xce   :  { %3756 = vmatpush3.bf16.msra.mxu0 %v4122_v7  ;;  %v515_v53 = vmul.f32 %v495_v52, %v495_v52  ;;  %v516_v56 = vmul.f32 %v496_v55, %v496_v55  ;;  %v570_v57 = vpack.c.bf16 %v496_v55, %v495_v52  ;;  %v3484_v6 = vld [vmem:[#allocation4] ss:$0 sm:$0xff] }
  0xcf   :  { %3757 = vmatprep.subr.bf16.mxu0 %v4123_v8 }
  0xd0   :  { %525 = vadd.xlane.f32.xlu0 %v513_v39 }
  0xd1   :  { %527 = vadd.xlane.f32.xlu1 %v514_v42 }
  0xd2   :  { %3758 = vmatpush3.bf16.msra.mxu0 %v4124_v9 }
  0xd3   :  { %3759 = vmatprep.subr.bf16.mxu0 %v4125_v10  ;;  %3968 = vmatpush3.bf16.xpose.msra.mxu1 %v568_v32 }
  0xd4   :  { %529 = vadd.xlane.f32.xlu0 %v515_v53  ;;  %3969 = vmatprep.subr.bf16.mxu1 %v569_v34 }
  0xd5   :  { %531 = vadd.xlane.f32.xlu1 %v516_v56 }
  0xd6   :  { %3760 = vmatpush3.bf16.msra.mxu0 %v4126_v14 }
  0xd7   :  { %3761 = vmatprep.subr.bf16.mxu0 %v4127_v15 }
  0xda   :  { %3762 = vmatpush3.bf16.msra.mxu0 %v4128_v16 }
  0xdb   :  { %3763 = vmatprep.subr.bf16.mxu0 %v4129_v17  ;;  %3970 = vmatpush3.bf16.xpose.msra.mxu1 %v569_v34 }
  0xdc   :  { %3971 = vmatprep.subr.bf16.mxu1 %v570_v57 }
  0xde   :  { %3764 = vmatpush3.bf16.msra.mxu0 %v4130_v21 }
  0xdf   :  { %3953 = vmatprep.subr.bf16.mxu0 %v4131_v29 }
  0xe1   :  { %420 = vmatmul.mubr.bf16.vlgmr.msra.gmra.mrb[0].mxu0 %v247_v36 }
  0xe2   :  { %3954 = vmatpush3.bf16.msra.mxu0 %v4131_v29  ;;  %427 = vmatprep.mubr.bf16.mxu0 %v251_v38  ;;  %v628_v38 = vlaneseq }
  0xe3   :  { %3955 = vmatprep.subr.bf16.mxu0 %v4132_v37  ;;  %3972 = vmatpush3.bf16.xpose.msra.mxu1 %v570_v57 }
  0xe4   :  { %v5009_v39 = vshrl.u32 %v628_v38, 7 }
  0xe6   :  { %3956 = vmatpush3.bf16.msra.mxu0 %v4132_v37  ;;  %v5012_v41 = vsub.s32 0, %v5009_v39 }
  0xe7   :  { %3957 = vmatprep.subr.bf16.mxu0 %v4133_v43 }
  0xe9   :  { %428 = vmatmul.mubr.bf16.gmra.mrb[4].mxu0 %v250_v46 }
  0xea   :  { %3958 = vmatpush3.bf16.msra.mxu0 %v4133_v43  ;;  %3961 = vmatprep.mubr.msk.bf16.mxu0 %vm380_vm0, %v249_v48 }
  0xeb   :  { %3959 = vmatprep.subr.bf16.mxu0 %v4134_v47 }
  0xee   :  { %3960 = vmatpush3.bf16.msra.mxu0 %v4134_v47 }
  0xf1   :  { %3962 = vmatmul.mubr.msk.bf16.vlgmr.msra.gmra.mrb[8].mxu0 %vm380_vm0, %v252_v51 }
 0x155   :  { %v518_v29 = vpop.xlane.xlu0 %517 }
 0x156   :  { %v522_v31 = vpop.xlane.xlu1 %521 }
 0x159   :  { %v520_v30 = vpop.xlane.xlu0 %519 }
 0x15a   :  { %v524_v32 = vpop.xlane.xlu1 %523 }
 0x15d   :  { %v526_v33 = vpop.xlane.xlu0 %525 }
 0x15e   :  { %v528_v34 = vpop.xlane.xlu1 %527 }
 0x161   :  { %v530_v35 = vpop.xlane.xlu0 %529 }
 0x162   :  { %v532_v36 = vpop.xlane.xlu1 %531 }
 0x1b4   :  { %v3765_v58 = vpop.f32.mrb[0].mxu0 }
 0x1b5   :  { %v3766_v59 = vpop.f32.mrb[1].mxu0 }
 0x1b6   :  { %v3767_v60 = vadd.f32 %v3766_v59, %v3765_v58  ;;  %v3768_v61 = vpop.f32.mrb[2].mxu0 }
 0x1b7   :  { %v3769_v62 = vpop.f32.mrb[3].mxu0 }
 0x1b8   :  { %v3770_v63 = vadd.f32 %v3769_v62, %v3768_v61  ;;  %v422_v9 = vadd.f32 %v3767_v60, %v3484_v6 }
 0x1ba   :  { %v425_v15 = vadd.f32 %v3770_v63, %v3484_v6 }
 0x1bc   :  { %v3771_v0 = vpop.f32.mrb[4].mxu0 }
 0x1bd   :  { %v3772_v1 = vpop.f32.mrb[5].mxu0 }
 0x1be   :  { %v3773_v2 = vadd.f32 %v3772_v1, %v3771_v0  ;;  %v3774_v3 = vpop.f32.mrb[6].mxu0 }
 0x1bf   :  { %v3775_v4 = vpop.f32.mrb[7].mxu0 }
 0x1c0   :  { %v3776_v5 = vadd.f32 %v3775_v4, %v3774_v3  ;;  %v430_v7 = vadd.f32 %v3773_v2, %v3484_v6  ;;  %v5019_v2 = vand.u32 127, %v628_v38 }
 0x1c2   :  { %v433_v12 = vadd.f32 %v3776_v5, %v3484_v6 }
 0x1c4   :  { %v3963_v8 = vpop.f32.mrb[8].mxu0 }
 0x1c5   :  { %v479_v10 = vadd.f32 %v3963_v8, %v430_v7  ;;  %v470_v11 = vpop.f32.mrb[9].mxu0 }
 0x1c6   :  { %v471_v13 = vadd.f32 %v470_v11, %v422_v9  ;;  %v3964_v14 = vpop.f32.mrb[10].mxu0 }
 0x1c7   :  { %4373 = vtanh.f32 %v479_v10  ;;  %v482_v16 = vadd.f32 %v3964_v14, %v433_v12  ;;  %v473_v17 = vpop.f32.mrb[11].mxu0 }
 0x1c8   :  { %4375 = vtanh.f32 %v471_v13  ;;  %v474_v18 = vadd.f32 %v473_v17, %v425_v15 }
 0x1c9   :  { %4377 = vtanh.f32 %v482_v16 }
 0x1ca   :  { %4379 = vtanh.f32 %v474_v18 }
 0x1d1   :  { %v4374_v19 = vpop.eup %4373 }
 0x1d2   :  { %v4376_v20 = vpop.eup %4375  ;;  %v499_v21 = vmul.f32 %v4374_v19, %v4374_v19 }
 0x1d3   :  { %v4378_v22 = vpop.eup %4377  ;;  %v497_v27 = vmul.f32 %v4376_v20, %v4376_v20 }
 0x1d4   :  { %v4380_v23 = vpop.eup %4379  ;;  %505 = vadd.xlane.f32.xlu0 %v499_v21  ;;  %v566_v24 = vpack.c.bf16 %v4378_v22, %v4374_v19  ;;  %v500_v28 = vmul.f32 %v4378_v22, %v4378_v22 }
 0x1d5   :  { %v498_v25 = vmul.f32 %v4380_v23, %v4380_v23  ;;  %v565_v26 = vpack.c.bf16 %v4380_v23, %v4376_v20  ;;  %v4699_v23 = vmov 0  }
 0x1d6   :  { %4113 = vset.pattern.permute.xlu1 %v4699_v23 }
 0x1d7   :  { %503 = vadd.xlane.f32.xlu1 %v498_v25  ;;  %3973 = vmatprep.mubr.bf16.mxu1 %v565_v26 }
 0x1d8   :  { %3974 = vmatmul.mubr.bf16.vlgmr.msra.gmra.mrb[0].mxu1 %v566_v24  ;;  %501 = vadd.xlane.f32.xlu0 %v497_v27  ;;  %v830_v24 = vld [vmem:[%s5613_s25 + $0x18] sm:$0xff] }
 0x1db   :  { %507 = vadd.xlane.f32.xlu1 %v500_v28 }
 0x205   :  { %533 = vxpose.xlu0.b32.start [1/8] (short) (narrow) %v518_v29, 8 }
 0x209   :  { %534 = vxpose.xlu0.b32.cont [2/8] (short) (narrow) %v520_v30, 8 }
 0x20d   :  { %535 = vxpose.xlu0.b32.cont [3/8] (short) (narrow) %v522_v31, 8 }
 0x211   :  { %536 = vxpose.xlu0.b32.cont [4/8] (short) (narrow) %v524_v32, 8 }
 0x215   :  { %537 = vxpose.xlu0.b32.cont [5/8] (short) (narrow) %v526_v33, 8 }
 0x219   :  { %538 = vxpose.xlu0.b32.cont [6/8] (short) (narrow) %v528_v34, 8 }
 0x21d   :  { %539 = vxpose.xlu0.b32.cont [7/8] (short) (narrow) %v530_v35, 8 }
 0x221   :  { %540 = vxpose.xlu0.b32.end [8/8] (short) (narrow) %v532_v36, 8 }
 0x24a   :  { %4114 = vset.pattern.permute.xlu0 %v4699_v23 }
 0x24b   :  { %844 = vperm.xlu0 %4114, %v830_v24  }
 0x261   :  { %v506_v37 = vpop.xlane.xlu0 %505 }
 0x264   :  { %v504_v51 = vpop.xlane.xlu1 %503 }
 0x265   :  { %v502_v40 = vpop.xlane.xlu0 %501 }
 0x268   :  { %v508_v59 = vpop.xlane.xlu1 %507 }
 0x285   :  { %v549_v42 = vpop.trf.xlu0 }
 0x286   :  { %v631_v46 = vrot.slane %v549_v42, %v5012_v41 }
 0x2ab   :  { %v3975_v43 = vpop.f32.mrb[0].mxu1 }
 0x2ac   :  { %v622_v44 = vmul.f32 2.0, %v3975_v43  ;;  %v605_v45 = vpop.f32.mrb[1].mxu1  ;;  %v5049_v43 = vld [vmem:[%s5592_s11] sm:$0xff]  }
 0x2ad   :  { %v620_v47 = vmul.f32 2.0, %v605_v45  ;;  %v3976_v48 = vpop.f32.mrb[2].mxu1  ;;  %v4137_v45 = vld [vmem:[%s5587_s6 + $0x80] sm:$0xff]   ;;  %3977 = vmatprep.subr.bf16.mxu0 %v5049_v43 }
 0x2ae   :  { %v626_v49 = vsub.f32 %v506_v37, %v622_v44  ;;  %v608_v50 = vpop.f32.mrb[3].mxu1  ;;  %v623_v55 = vmul.f32 2.0, %v3976_v48  ;;  %v4136_v44 = vld [vmem:[%s5587_s6 + $0xc0] sm:$0xff]   ;;  %3978 = vmatpush3.bf16.msra.mxu0 %v5049_v43  ;;  %v4140_v48 = vld [vmem:[%s5587_s6 + $0x88] sm:$0xff]  }
 0x2af   :  { %v624_v52 = vsub.f32 %v502_v40, %v620_v47  ;;  %v621_v53 = vmul.f32 2.0, %v608_v50  ;;  %3823 = vmatprep.subr.bf16.mxu1 %v4136_v44  ;;  %v4139_v47 = vld [vmem:[%s5587_s6 + $0xc8] sm:$0xff]   ;;  %v4142_v50 = vld [vmem:[%s5587_s6 + $0xd0] sm:$0xff]  }
 0x2b0   :  { %v634_v54 = vadd.f32 %v631_v46, %v626_v49  ;;  %v627_v60 = vsub.f32 %v508_v59, %v623_v55  ;;  %3824 = vmatpush3.bf16.msra.mxu1 %v4137_v45  ;;  %v4141_v49 = vld [vmem:[%s5592_s11 + $0x10] sm:$0xff]   ;;  %v828_v55 = vld [vmem:[%s5613_s25 + $0x8] sm:$0xff]  ;;  %v4149_v59 = vld [vmem:[%s5587_s6 + $0xe0] sm:$0xff]  }
 0x2b1   :  { %v625_v56 = vsub.f32 %v504_v51, %v621_v53  ;;  %v632_v58 = vadd.f32 %v631_v46, %v624_v52  ;;  %3825 = vmatprep.subr.bf16.mxu1 %v4139_v47  ;;  %v827_v51 = vld [vmem:[%s5613_s25] sm:$0xff]  ;;  %v4143_v52 = vld [vmem:[%s5587_s6 + $0x90] sm:$0xff]   ;;  %v4144_v53 = vld [vmem:[%s5592_s11 + $0x18] sm:$0xff]   ;;  %v4701_v47 = vmov 1.0|1.0  }
 0x2b2   :  { %v642_v57 = vsel %vm380_vm0, %v634_v54, inf  ;;  %v635_v0 = vadd.f32 %v631_v46, %v627_v60  ;;  %v4150_v60 = vld [vmem:[%s5587_s6 + $0xa0] sm:$0xff]  }
 0x2b3   :  { %643 = vmin.xlane.f32.xlu1 %v642_v57  ;;  %v636_v61 = vsel %vm380_vm0, %v632_v58, inf  ;;  %v633_v62 = vadd.f32 %v631_v46, %v625_v56  ;;  %v4138_v46 = vld [vmem:[%s5592_s11 + $0x8] sm:$0xff]   ;;  %v4146_v56 = vld [vmem:[%s5587_s6 + $0x98] sm:$0xff]   ;;  %v4147_v57 = vld [vmem:[%s5587_s6 + $0x40] sm:$0xff]  }
 0x2b4   :  { %v645_v1 = vsel %vm380_vm0, %v635_v0, inf  ;;  %3979 = vmatprep.subr.bf16.mxu0 %v4138_v46  ;;  %3826 = vmatpush3.bf16.msra.mxu1 %v4140_v48  ;;  %v4152_v48 = vld [vmem:[%s5587_s6 + $0x8] sm:$0xff]  }
 0x2b5   :  { %v639_v63 = vsel %vm380_vm0, %v633_v62, inf  ;;  %3980 = vmatpush3.bf16.msra.mxu0 %v4138_v46  ;;  %3827 = vmatprep.subr.bf16.mxu1 %v4142_v50  ;;  %v4151_v46 = vld [vmem:[%s5587_s6 + $0x48] sm:$0xff]   ;;  %v4155_v50 = vld [vmem:[%s5587_s6 + $0x50] sm:$0xff]  }
 0x2b6   :  { %3981 = vmatprep.subr.bf16.mxu0 %v4141_v49 }
 0x2b7   :  { %637 = vmin.xlane.f32.xlu1 %v636_v61  ;;  %v4153_v61 = vld [vmem:[%s5587_s6 + $0xe8] sm:$0xff]  }
 0x2b8   :  { %3828 = vmatpush3.bf16.msra.mxu1 %v4143_v52  ;;  %v4159_v52 = vld [vmem:[%s5587_s6 + $0x58] sm:$0xff]  }
 0x2b9   :  { %3982 = vmatpush3.bf16.msra.mxu0 %v4141_v49 }
 0x2ba   :  { %3983 = vmatprep.subr.bf16.mxu0 %v4144_v53 }
 0x2bb   :  { %640 = vmin.xlane.f32.xlu1 %v639_v63  ;;  %v4157_v63 = vld [vmem:[%s5587_s6 + $0xf0] sm:$0xff]  }
 0x2bd   :  { %3984 = vmatpush3.bf16.msra.mxu0 %v4144_v53  ;;  %v4160_v53 = vld [vmem:[%s5587_s6 + $0x18] sm:$0xff]  }
 0x2be   :  { %3795 = vmatprep.subr.bf16.mxu0 %v4147_v57  ;;  %v4166_v57 = vld [vmem:[%s5587_s6 + $0x28] sm:$0xff]  }
 0x2bf   :  { %646 = vmin.xlane.f32.xlu1 %v645_v1  ;;  %v4161_v1 = vld [vmem:[%s5587_s6 + $0xf8] sm:$0xff]  }
 0x2ca   :  { %v845_v44 = vpop.permute.xlu0 %844 }
 0x340   :  { %v644_v3 = vpop.xlane.xlu1 %643 }
 0x341   :  { %vm652_vm1 = vcmp.le.f32.partialorder %v634_v54, %v644_v3  ;;  %v4145_v54 = vld [vmem:[%s5587_s6 + $0xd8] sm:$0xff]  }
 0x342   :  { %v656_v4 = vsel %vm652_vm1, %v5019_v2, 64  ;;  %3829 = vmatprep.subr.bf16.mxu1 %v4145_v54  ;;  %v4162_v3 = vld [vmem:[%s5587_s6 + $0xb8] sm:$0xff]   ;;  %v4163_v54 = vld [vmem:[%s5587_s6 + $0x60] sm:$0xff]  }
 0x343   :  { %v688_v5 = vsel %vm380_vm0, %v656_v4, 2147483647  ;;  %3830 = vmatpush3.bf16.msra.mxu1 %v4146_v56  ;;  %v4165_v56 = vld [vmem:[%s5587_s6 + $0x68] sm:$0xff]  }
 0x344   :  { %v638_v6 = vpop.xlane.xlu1 %637  ;;  %v690_v7 = vshra.s32 %v688_v5, 16  ;;  %v689_v25 = vand.u32 65535, %v688_v5  ;;  %3831 = vmatprep.subr.bf16.mxu1 %v4149_v59  ;;  %v4168_v59 = vld [vmem:[%s5587_s6 + $0x30] sm:$0xff]  }
 0x345   :  { %vm650_vm2 = vcmp.le.f32.partialorder %v632_v58, %v638_v6  ;;  %v829_v58 = vld [vmem:[%s5613_s25 + $0x10] sm:$0xff] }
 0x346   :  { %v654_v8 = vsel %vm650_vm2, %v5019_v2, 64  ;;  %v692_v9 = vcvt.s32.f32 %v690_v7  ;;  %v691_v27 = vcvt.s32.f32 %v689_v25 }
 0x347   :  { %v658_v10 = vsel %vm380_vm0, %v654_v8, 2147483647  ;;  %3832 = vmatpush3.bf16.msra.mxu1 %v4150_v60  ;;  %v4169_v60 = vld [vmem:[%s5587_s6 + $0x78] sm:$0xff]  }
 0x348   :  { %693 = vmin.xlane.f32.xlu1 %v692_v9  ;;  %v641_v11 = vpop.xlane.xlu1 %640  ;;  %v660_v12 = vshra.s32 %v658_v10, 16  ;;  %v659_v28 = vand.u32 65535, %v658_v10  ;;  %3833 = vmatprep.subr.bf16.mxu1 %v4153_v61  ;;  %v4170_v61 = vld [vmem:[%s5587_s6 + $0x38] sm:$0xff]  }
 0x349   :  { %vm651_vm3 = vcmp.le.f32.partialorder %v633_v62, %v641_v11  ;;  %v4154_v62 = vld [vmem:[%s5587_s6 + $0xa8] sm:$0xff]  }
 0x34a   :  { %v655_v13 = vsel %vm651_vm3, %v5019_v2, 64  ;;  %v662_v14 = vcvt.s32.f32 %v660_v12  ;;  %v661_v31 = vcvt.s32.f32 %v659_v28  ;;  %v833_v28 = vadd.s32 384, %v5019_v2 }
 0x34b   :  { %v673_v15 = vsel %vm380_vm0, %v655_v13, 2147483647  ;;  %3834 = vmatpush3.bf16.msra.mxu1 %v4154_v62  ;;  %v4171_v62 = vld [vmem:[%s5588_s7] ss:$8 sps:$4 sm:$0xff]  }
 0x34c   :  { %663 = vmin.xlane.f32.xlu1 %v662_v14  ;;  %v647_v16 = vpop.xlane.xlu1 %646  ;;  %v675_v17 = vshra.s32 %v673_v15, 16  ;;  %v674_v32 = vand.u32 65535, %v673_v15  ;;  %3835 = vmatprep.subr.bf16.mxu1 %v4157_v63  ;;  %v4173_v63 = vld [vmem:[%s5588_s7 + $0x4] ss:$8 sps:$4 sm:$0xff]  }
 0x34d   :  { %vm653_vm4 = vcmp.le.f32.partialorder %v635_v0, %v647_v16  ;;  %v4158_v0 = vld [vmem:[%s5587_s6 + $0xb0] sm:$0xff]  }
 0x34e   :  { %v657_v18 = vsel %vm653_vm4, %v5019_v2, 64  ;;  %v677_v19 = vcvt.s32.f32 %v675_v17  ;;  %v676_v35 = vcvt.s32.f32 %v674_v32  ;;  %v832_v32 = vadd.s32 256, %v5019_v2 }
 0x34f   :  { %v703_v20 = vsel %vm380_vm0, %v657_v18, 2147483647  ;;  %3836 = vmatpush3.bf16.msra.mxu1 %v4158_v0  ;;  %v4176_v0 = vld [vmem:[%s5588_s7 + $0x14] ss:$8 sps:$4 sm:$0xff]  }
 0x350   :  { %678 = vmin.xlane.f32.xlu1 %v677_v19  ;;  %v705_v21 = vshra.s32 %v703_v20, 16  ;;  %v704_v36 = vand.u32 65535, %v703_v20  ;;  %3837 = vmatprep.subr.bf16.mxu1 %v4161_v1  ;;  %v4174_v1 = vld [vmem:[%s5588_s7 + $0x10] ss:$8 sps:$4 sm:$0xff]  }
 0x352   :  { %v707_v22 = vcvt.s32.f32 %v705_v21  ;;  %v706_v40 = vcvt.s32.f32 %v704_v36 }
 0x353   :  { %3838 = vmatpush3.bf16.msra.mxu1 %v4162_v3  ;;  %v4179_v3 = vld [vmem:[%s5588_s7 + $0x24] ss:$8 sps:$4 sm:$0xff]  }
 0x354   :  { %708 = vmin.xlane.f32.xlu1 %v707_v22 }
 0x3d5   :  { %v5034_v26 = vpop.xlane.xlu1 %693 }
 0x3d6   :  { %vm695_vm5 = vcmp.eq.f32.partialorder %v692_v9, %v5034_v26  ;;  %v700_v5 = vcvt.f32.s32 %v5034_v26 }
 0x3d7   :  { %v696_v29 = vsel %vm695_vm5, %v691_v27, inf }
 0x3d8   :  { %697 = vmin.xlane.f32.xlu1 %v696_v29  ;;  %v701_v9 = vshll.u32 %v700_v5, 16  ;;  %v4700_v29 = vmov 0.0   ;;  %v4182_v5 = vld [vmem:[%s5588_s7 + $0x34] ss:$8 sps:$4 sm:$0xff]  }
 0x3d9   :  { %v5037_v30 = vpop.xlane.xlu1 %663 }
 0x3da   :  { %vm665_vm6 = vcmp.eq.f32.partialorder %v662_v14, %v5037_v30  ;;  %v670_v6 = vcvt.f32.s32 %v5037_v30 }
 0x3db   :  { %v666_v33 = vsel %vm665_vm6, %v661_v31, inf }
 0x3dc   :  { %667 = vmin.xlane.f32.xlu1 %v666_v33  ;;  %v671_v10 = vshll.u32 %v670_v6, 16  ;;  %v4180_v6 = vld [vmem:[%s5588_s7 + $0x30] ss:$8 sps:$4 sm:$0xff]  }
 0x3dd   :  { %v5040_v34 = vpop.xlane.xlu1 %678 }
 0x3de   :  { %vm680_vm7 = vcmp.eq.f32.partialorder %v677_v19, %v5040_v34  ;;  %v685_v11 = vcvt.f32.s32 %v5040_v34 }
 0x3df   :  { %v681_v37 = vsel %vm680_vm7, %v676_v35, inf  ;;  %v5136_v35 = vadd.s32 128, %v5019_v2 }
 0x3e0   :  { %682 = vmin.xlane.f32.xlu1 %v681_v37  ;;  %v686_v16 = vshll.u32 %v685_v11, 16  ;;  %v4191_v11 = vld [vmem:[%s5588_s7 + $0x64] ss:$8 sps:$4 sm:$0xff]  }
 0x3e1   :  { %v5043_v38 = vpop.xlane.xlu1 %708 }
 0x3e2   :  { %vm710_vm8 = vcmp.eq.f32.partialorder %v707_v22, %v5043_v38  ;;  %v715_v17 = vcvt.f32.s32 %v5043_v38 }
 0x3e3   :  { %v711_v42 = vsel %vm710_vm8, %v706_v40, inf  ;;  %v4148_v40 = vld [vmem:[%s5587_s6] sm:$0xff]  }
 0x3e4   :  { %712 = vmin.xlane.f32.xlu1 %v711_v42  ;;  %v716_v22 = vshll.u32 %v715_v17, 16 }
 0x3f5   :  { %835 = vperm.xlu1 %4113, %v827_v51   ;;  %v4156_v51 = vld [vmem:[%s5587_s6 + $0x10] sm:$0xff]  }
 0x3f9   :  { %838 = vperm.xlu1 %4113, %v828_v55   ;;  %v4164_v55 = vld [vmem:[%s5587_s6 + $0x20] sm:$0xff]  }
 0x3fd   :  { %841 = vperm.xlu1 %4113, %v829_v58   ;;  %v4167_v58 = vld [vmem:[%s5587_s6 + $0x70] sm:$0xff]  }
 0x465   :  { %v698_v4 = vpop.xlane.xlu1 %697 }
 0x466   :  { %v699_v7 = vcvt.f32.s32 %v698_v4  ;;  %v4177_v4 = vld [vmem:[%s5588_s7 + $0x20] ss:$8 sps:$4 sm:$0xff]  }
 0x468   :  { %v702_v13 = vadd.s32 %v701_v9, %v699_v7  ;;  %v4185_v7 = vld [vmem:[%s5588_s7 + $0x44] ss:$8 sps:$4 sm:$0xff]   ;;  %v4188_v9 = vld [vmem:[%s5588_s7 + $0x54] ss:$8 sps:$4 sm:$0xff]  }
 0x469   :  { %v668_v8 = vpop.xlane.xlu1 %667 }
 0x46a   :  { %v669_v12 = vcvt.f32.s32 %v668_v8  ;;  %vm722_vm10 = vcmp.lt.s32.totalorder %v702_v13, 63  ;;  %v4183_v8 = vld [vmem:[%s5588_s7 + $0x40] ss:$8 sps:$4 sm:$0xff]  }
 0x46b   :  { %v723_v25 = vsel %vm722_vm10, %v702_v13, 63  ;;  %vm861_vm10 = vcmp.eq.s32.totalorder %v833_v28, %v845_v44  ;;  %v4194_v13 = vld [vmem:[%s5588_s7 + $0x74] ss:$8 sps:$4 sm:$0xff]  }
 0x46c   :  { %v672_v14 = vadd.s32 %v671_v10, %v669_v12  ;;  %vm728_vm14 = vcmp.eq.s32.totalorder %v5019_v2, %v723_v25  ;;  %v4186_v10 = vld [vmem:[%s5588_s7 + $0x50] ss:$8 sps:$4 sm:$0xff]   ;;  %v4189_v12 = vld [vmem:[%s5588_s7 + $0x60] ss:$8 sps:$4 sm:$0xff]  }
 0x46d   :  { %v683_v15 = vpop.xlane.xlu1 %682  ;;  %v3509_v37 = vsel %vm728_vm14, 1.0, %v4700_v29 }
 0x46e   :  { %vm718_vm9 = vcmp.lt.s32.totalorder %v672_v14, 63  ;;  %v684_v18 = vcvt.f32.s32 %v683_v15 }
 0x46f   :  { %v719_v19 = vsel %vm718_vm9, %v672_v14, 63  ;;  %v4192_v14 = vld [vmem:[%s5588_s7 + $0x70] ss:$8 sps:$4 sm:$0xff]  }
 0x470   :  { %v687_v20 = vadd.s32 %v686_v16, %v684_v18  ;;  %vm726_vm11 = vcmp.eq.s32.totalorder %v5019_v2, %v719_v19 }
 0x471   :  { %v713_v21 = vpop.xlane.xlu1 %712  ;;  %v3507_v30 = vsel %vm726_vm11, 1.0, %v4700_v29 }
 0x472   :  { %vm720_vm12 = vcmp.lt.s32.totalorder %v687_v20, 63  ;;  %v714_v24 = vcvt.f32.s32 %v713_v21 }
 0x473   :  { %v721_v26 = vsel %vm720_vm12, %v687_v20, 63 }
 0x474   :  { %vm727_vm13 = vcmp.eq.s32.totalorder %v5019_v2, %v721_v26  ;;  %v717_v27 = vadd.s32 %v716_v22, %v714_v24 }
 0x475   :  { %v3508_v31 = vsel %vm727_vm13, 1.0, %v4700_v29  ;;  %v5132_v33 = vpop.permute.xlu1 %835 }
 0x476   :  { %vm724_vm15 = vcmp.lt.s32.totalorder %v717_v27, 63  ;;  %v738_v34 = vpack.c.bf16 %v3508_v31, %v3507_v30  ;;  %vm849_vm2 = vcmp.eq.s32.totalorder %v833_v28, %v5132_v33  ;;  %vm848_vm3 = vcmp.eq.s32.totalorder %v832_v32, %v5132_v33 }
 0x477   :  { %v725_v36 = vsel %vm724_vm15, %v717_v27, 63  ;;  %vm847_vm6 = vcmp.eq.s32.totalorder %v5136_v35, %v5132_v33  ;;  %vm860_vm15 = vcmp.eq.s32.totalorder %v832_v32, %v845_v44 }
 0x478   :  { %vm729_vm1 = vcmp.eq.s32.totalorder %v5019_v2, %v725_v36  ;;  %3985 = vmatprep.mubr.msk.bf16.mxu0 %vm380_vm0, %v738_v34 }
 0x479   :  { %v3510_v38 = vsel %vm729_vm1, 1.0, %v4700_v29  ;;  %v839_v42 = vpop.permute.xlu1 %838 }
 0x47a   :  { %v739_v45 = vpack.c.bf16 %v3510_v38, %v3509_v37  ;;  %vm852_vm4 = vcmp.eq.s32.totalorder %v832_v32, %v839_v42  ;;  %vm853_vm5 = vcmp.eq.s32.totalorder %v833_v28, %v839_v42  ;;  %vm851_vm8 = vcmp.eq.s32.totalorder %v5136_v35, %v839_v42 }
 0x47b   :  { %vm3573_vm7 = vmpackc.low %vm853_vm5, %vm849_vm2  ;;  %vm846_vm2 = vcmp.eq.s32.totalorder %v5019_v2, %v5132_v33  ;;  %vm859_vm5 = vcmp.eq.s32.totalorder %v5136_v35, %v845_v44 }
 0x47c   :  { %3986 = vmatmul.mubr.msk.bf16.vlgmr.msra.gmra.mrb[12].mxu0 %vm380_vm0, %v739_v45  ;;  %3574 = vmatprep.mubr.msk.bf16.mxu1 %vm3573_vm7, %v4701_v47  ;;  %vm3575_vm9 = vmpackc.low %vm852_vm4, %vm848_vm3  ;;  %vm850_vm3 = vcmp.eq.s32.totalorder %v5019_v2, %v839_v42 }
 0x47d   :  { %3796 = vmatpush3.bf16.msra.mxu0 %v4148_v40  ;;  %3576 = vmatmul.mubr.msk.bf16.vlgmr.msra.gmra.mrb[4].mxu1 %vm3575_vm9, %v4701_v47  ;;  %v842_v49 = vpop.permute.xlu1 %841  ;;  %vm3565_vm11 = vmpackc.low %vm851_vm8, %vm847_vm6  ;;  %vm858_vm9 = vcmp.eq.s32.totalorder %v5019_v2, %v845_v44 }
 0x47e   :  { %3797 = vmatprep.subr.bf16.mxu0 %v4151_v46  ;;  %vm857_vm12 = vcmp.eq.s32.totalorder %v833_v28, %v842_v49  ;;  %3566 = vmatprep.mubr.msk.bf16.mxu0 %vm3565_vm11, %v4701_v47  ;;  %vm856_vm14 = vcmp.eq.s32.totalorder %v832_v32, %v842_v49  ;;  %vm855_vm4 = vcmp.eq.s32.totalorder %v5136_v35, %v842_v49  ;;  %vm3567_vm6 = vmpackc.low %vm850_vm3, %vm846_vm2 }
 0x47f   :  { %vm3577_vm13 = vmpackc.low %vm861_vm10, %vm857_vm12  ;;  %vm854_vm8 = vcmp.eq.s32.totalorder %v5019_v2, %v842_v49 }
 0x480   :  { %3578 = vmatprep.mubr.msk.bf16.mxu1 %vm3577_vm13, %v4701_v47  ;;  %vm3579_vm1 = vmpackc.low %vm860_vm15, %vm856_vm14 }
 0x481   :  { %3798 = vmatpush3.bf16.msra.mxu0 %v4152_v48  ;;  %vm3569_vm7 = vmpackc.low %vm859_vm5, %vm855_vm4 }
 0x482   :  { %3799 = vmatprep.subr.bf16.mxu0 %v4155_v50  ;;  %vm3571_vm10 = vmpackc.low %vm858_vm9, %vm854_vm8  ;;  %vm2278_vm8 = vcmp.eq.s32.totalorder %v5019_v2, %v5009_v39 }
 0x485   :  { %3800 = vmatpush3.bf16.msra.mxu0 %v4156_v51  ;;  %3580 = vmatmul.mubr.msk.bf16.gmra.mrb[8].mxu1 %vm3579_vm1, %v4701_v47 }
 0x486   :  { %3801 = vmatprep.subr.bf16.mxu0 %v4159_v52 }
 0x489   :  { %3802 = vmatpush3.bf16.msra.mxu0 %v4160_v53 }
 0x48a   :  { %3803 = vmatprep.subr.bf16.mxu0 %v4163_v54 }
 0x48d   :  { %3804 = vmatpush3.bf16.msra.mxu0 %v4164_v55 }
 0x48e   :  { %3805 = vmatprep.subr.bf16.mxu0 %v4165_v56  ;;  %v4195_v56 = vld [vmem:[#allocation7 + $0x40] sm:$0xff]  }
 0x48f   :  { %3851 = vmatprep.subr.bf16.mxu1 %v4195_v56 }
 0x491   :  { %3806 = vmatpush3.bf16.msra.mxu0 %v4166_v57  ;;  %v4196_v57 = vld [vmem:[#allocation7] sm:$0xff]  }
 0x492   :  { %3807 = vmatprep.subr.bf16.mxu0 %v4167_v58  ;;  %3852 = vmatpush3.bf16.msra.mxu1 %v4196_v57  ;;  %v4197_v58 = vld [vmem:[#allocation7 + $0x48] sm:$0xff]  }
 0x493   :  { %3853 = vmatprep.subr.bf16.mxu1 %v4197_v58 }
 0x495   :  { %3808 = vmatpush3.bf16.msra.mxu0 %v4168_v59  ;;  %v4198_v59 = vld [vmem:[#allocation7 + $0x8] sm:$0xff]  }
 0x496   :  { %3809 = vmatprep.subr.bf16.mxu0 %v4169_v60  ;;  %3854 = vmatpush3.bf16.msra.mxu1 %v4198_v59  ;;  %v4199_v60 = vld [vmem:[#allocation7 + $0x50] sm:$0xff]  }
 0x497   :  { %3855 = vmatprep.subr.bf16.mxu1 %v4199_v60 }
 0x499   :  { %3810 = vmatpush3.bf16.msra.mxu0 %v4170_v61  ;;  %v4200_v61 = vld [vmem:[#allocation7 + $0x10] sm:$0xff]  }
 0x49a   :  { %1366 = vmatprep.subr.bf16.mxu0 %v4173_v63  ;;  %3856 = vmatpush3.bf16.msra.mxu1 %v4200_v61  ;;  %v4202_v63 = vld [vmem:[#allocation7 + $0x18] sm:$0xff]  }
 0x49c   :  { %3568 = vmatmul.mubr.msk.bf16.vlgmr.msra.gmra.mrb[16].mxu0 %vm3567_vm6, %v4701_v47 }
 0x49d   :  { %3570 = vmatprep.mubr.msk.bf16.mxu0 %vm3569_vm7, %v4701_v47  ;;  %1367 = vmatpush1.bf16.msra.mxu0 %v4171_v62  ;;  %v4201_v62 = vld [vmem:[#allocation7 + $0x58] sm:$0xff]  }
 0x49e   :  { %1368 = vmatprep.subr.bf16.mxu0 %v4176_v0  ;;  %3857 = vmatprep.subr.bf16.mxu1 %v4201_v62  ;;  %v4203_v0 = vld [vmem:[#allocation7 + $0x60] sm:$0xff]  }
 0x49f   :  { %3858 = vmatpush3.bf16.msra.mxu1 %v4202_v63 }
 0x4a0   :  { %3859 = vmatprep.subr.bf16.mxu1 %v4203_v0 }
 0x4a1   :  { %1369 = vmatpush1.bf16.msra.mxu0 %v4174_v1  ;;  %v4204_v1 = vld [vmem:[#allocation7 + $0x20] sm:$0xff]  }
 0x4a2   :  { %1370 = vmatprep.subr.bf16.mxu0 %v4179_v3  ;;  %v4205_v3 = vld [vmem:[#allocation7 + $0x68] sm:$0xff]  }
 0x4a3   :  { %3860 = vmatpush3.bf16.msra.mxu1 %v4204_v1 }
 0x4a4   :  { %3572 = vmatmul.mubr.msk.bf16.gmra.mrb[20].mxu0 %vm3571_vm10, %v4701_v47  ;;  %3861 = vmatprep.subr.bf16.mxu1 %v4205_v3  ;;  %vm2294_vm10 = vcmask 195584  }
 0x4a5   :  { %1398 = vmatprep.mubr.bf16.mxu0 %v4699_v23  ;;  %1371 = vmatpush1.bf16.msra.mxu0 %v4177_v4  ;;  %v4206_v4 = vld [vmem:[#allocation7 + $0x28] sm:$0xff]  }
 0x4a6   :  { %1372 = vmatprep.subr.bf16.mxu0 %v4182_v5  ;;  %v4207_v5 = vld [vmem:[#allocation7 + $0x70] sm:$0xff]  }
 0x4a7   :  { %3862 = vmatpush3.bf16.msra.mxu1 %v4206_v4 }
 0x4a8   :  { %3863 = vmatprep.subr.bf16.mxu1 %v4207_v5 }
 0x4a9   :  { %1373 = vmatpush1.bf16.msra.mxu0 %v4180_v6  ;;  %v4208_v6 = vld [vmem:[#allocation7 + $0x30] sm:$0xff]  }
 0x4aa   :  { %1374 = vmatprep.subr.bf16.mxu0 %v4185_v7  ;;  %v4209_v7 = vld [vmem:[#allocation7 + $0x78] sm:$0xff]  }
 0x4ab   :  { %3864 = vmatpush3.bf16.msra.mxu1 %v4208_v6 }
 0x4ac   :  { %3865 = vmatprep.subr.bf16.mxu1 %v4209_v7 }
 0x4ad   :  { %1375 = vmatpush1.bf16.msra.mxu0 %v4183_v8  ;;  %v4210_v8 = vld [vmem:[#allocation7 + $0x38] sm:$0xff]  }
 0x4ae   :  { %1376 = vmatprep.subr.bf16.mxu0 %v4188_v9  ;;  %v4211_v9 = vld [vmem:[#allocation10] ss:$8 sps:$4 sm:$0xff]  }
 0x4af   :  { %3866 = vmatpush3.bf16.msra.mxu1 %v4210_v8 }
 0x4b1   :  { %1377 = vmatpush1.bf16.msra.mxu0 %v4186_v10  ;;  %v4213_v10 = vld [vmem:[#allocation10 + $0x4] ss:$8 sps:$4 sm:$0xff]  }
 0x4b2   :  { %1378 = vmatprep.subr.bf16.mxu0 %v4191_v11  ;;  %v4216_v11 = vld [vmem:[#allocation10 + $0x14] ss:$8 sps:$4 sm:$0xff]  }
 0x4b5   :  { %1379 = vmatpush1.bf16.msra.mxu0 %v4189_v12  ;;  %v4214_v12 = vld [vmem:[#allocation10 + $0x10] ss:$8 sps:$4 sm:$0xff]  }
 0x4b6   :  { %1380 = vmatprep.subr.bf16.mxu0 %v4194_v13  ;;  %v4219_v13 = vld [vmem:[#allocation10 + $0x24] ss:$8 sps:$4 sm:$0xff]  }
 0x4b9   :  { %1381 = vmatpush1.bf16.msra.mxu0 %v4192_v14  ;;  %v4217_v14 = vld [vmem:[#allocation10 + $0x20] ss:$8 sps:$4 sm:$0xff]  }
 0x4ba   :  { %1786 = vmatprep.subr.bf16.mxu0 %v4213_v10 }
 0x54f   :  { %v5249_v15 = vpop.f32.mrb[12].mxu0 }
 0x550   :  { %v5251_v16 = vpop.f32.mrb[13].mxu0  ;;  %v3839_v17 = vpop.f32.mrb[4].mxu1 }
 0x551   :  { %v5253_v18 = vpop.f32.mrb[14].mxu0  ;;  %v3840_v19 = vpop.f32.mrb[5].mxu1 }
 0x552   :  { %v1705_v20 = vpack.c.bf16 %v5253_v18, %v5249_v15  ;;  %v5257_v21 = vpop.f32.mrb[15].mxu0  ;;  %v3841_v22 = vadd.f32 %v3840_v19, %v3839_v17  ;;  %v3842_v24 = vpop.f32.mrb[6].mxu1  ;;  %v4222_v17 = vld [vmem:[#allocation10 + $0x34] ss:$8 sps:$4 sm:$0xff]   ;;  %v4220_v19 = vld [vmem:[#allocation10 + $0x30] ss:$8 sps:$4 sm:$0xff]  }
 0x553   :  { %v1704_v25 = vpack.c.bf16 %v5257_v21, %v5251_v16  ;;  %v3843_v26 = vpop.f32.mrb[7].mxu1 }
 0x554   :  { %v3844_v27 = vadd.f32 %v3843_v26, %v3842_v24  ;;  %v4223_v24 = vld [vmem:[#allocation10 + $0x40] ss:$8 sps:$4 sm:$0xff]   ;;  %v1274_v26 = vld [vmem:[%s5589_s8] sm:$0x3]  ;;  %s5614_s8 = sld [smem:[#allocation25_spill]] }
 0x558   :  { %v3845_v28 = vpop.f32.mrb[8].mxu1 }
 0x559   :  { %v3846_v30 = vpop.f32.mrb[9].mxu1 }
 0x55a   :  { %v3847_v31 = vadd.f32 %v3846_v30, %v3845_v28  ;;  %v3848_v32 = vpop.f32.mrb[10].mxu1  ;;  %v1279_v28 = vrot.slane %v1274_v26, %v5012_v41 }
 0x55b   :  { %v3849_v33 = vpop.f32.mrb[11].mxu1 }
 0x55c   :  { %v3850_v34 = vadd.f32 %v3849_v33, %v3848_v32 }
 0x56f   :  { %v3811_v35 = vpop.f32.mrb[16].mxu0 }
 0x570   :  { %v3812_v36 = vpop.f32.mrb[17].mxu0 }
 0x571   :  { %v3813_v37 = vadd.f32 %v3812_v36, %v3811_v35  ;;  %v3814_v38 = vpop.f32.mrb[18].mxu0 }
 0x572   :  { %v3815_v40 = vpop.f32.mrb[19].mxu0 }
 0x573   :  { %v5261_v42 = vadd.f32 %v3841_v22, %v3813_v37  ;;  %v3816_v44 = vadd.f32 %v3815_v40, %v3814_v38  ;;  %v4225_v22 = vld [vmem:[#allocation10 + $0x44] ss:$8 sps:$4 sm:$0xff]  }
 0x575   :  { %v5263_v45 = vadd.f32 %v3844_v27, %v3816_v44  ;;  %v1282_v27 = vsub.s32 1, %v5009_v39 }
 0x577   :  { %v1272_v46 = vpack.c.bf16 %v5263_v45, %v5261_v42  ;;  %v3817_v47 = vpop.f32.mrb[20].mxu0  ;;  %v1283_v30 = vrot.slane %v1274_v26, %v1282_v27 }
 0x578   :  { %v3818_v48 = vpop.f32.mrb[21].mxu0 }
 0x579   :  { %v3819_v49 = vadd.f32 %v3818_v48, %v3817_v47  ;;  %v3820_v50 = vpop.f32.mrb[22].mxu0  ;;  %1399 = vmatmul.mubr.bf16.vlgmr.msra.gmra.mrb[24].mxu0 %v1272_v46 }
 0x57a   :  { %v3821_v51 = vpop.f32.mrb[23].mxu0  ;;  %1408 = vmatprep.mubr.bf16.mxu0 %v4699_v23  ;;  %1787 = vmatpush1.bf16.msra.mxu0 %v4211_v9 }
 0x57b   :  { %v5268_v52 = vadd.f32 %v3847_v31, %v3819_v49  ;;  %v3822_v53 = vadd.f32 %v3821_v51, %v3820_v50  ;;  %1788 = vmatprep.subr.bf16.mxu0 %v4216_v11 }
 0x57d   :  { %v5270_v54 = vadd.f32 %v3850_v34, %v3822_v53 }
 0x57e   :  { %1789 = vmatpush1.bf16.msra.mxu0 %v4214_v12 }
 0x57f   :  { %v1273_v55 = vpack.c.bf16 %v5270_v54, %v5268_v52  ;;  %1790 = vmatprep.subr.bf16.mxu0 %v4219_v13 }
 0x581   :  { %1409 = vmatmul.mubr.bf16.gmra.mrb[28].mxu0 %v1273_v55 }
 0x582   :  { %1818 = vmatprep.mubr.bf16.mxu0 %v4699_v23  ;;  %1791 = vmatpush1.bf16.msra.mxu0 %v4217_v14 }
 0x583   :  { %1792 = vmatprep.subr.bf16.mxu0 %v4222_v17 }
 0x586   :  { %1793 = vmatpush1.bf16.msra.mxu0 %v4220_v19 }
 0x587   :  { %1794 = vmatprep.subr.bf16.mxu0 %v4225_v22 }
 0x58a   :  { %1795 = vmatpush1.bf16.msra.mxu0 %v4223_v24 }
 0x64c   :  { %v1400_v31 = vpop.f32.mrb[24].mxu0 }
 0x64d   :  { %v5280_v32 = vadd.f32 %v1400_v31, %v1279_v28  ;;  %v1402_v33 = vpop.f32.mrb[25].mxu0 }
 0x64e   :  { %v5282_v34 = vadd.f32 %v1402_v33, %v1283_v30  ;;  %v1404_v35 = vpop.f32.mrb[26].mxu0 }
 0x64f   :  { %v1419_v36 = vmul.f32 %v5280_v32, %v5280_v32  ;;  %v5286_v37 = vadd.f32 %v1404_v35, %v1279_v28  ;;  %v1406_v38 = vpop.f32.mrb[27].mxu0 }
 0x650   :  { %v1420_v40 = vmul.f32 %v5282_v34, %v5282_v34  ;;  %v5290_v44 = vadd.f32 %v1406_v38, %v1283_v30 }
 0x651   :  { %v1427_v46 = vmul.f32 %v1419_v36, %v5280_v32  ;;  %v1421_v47 = vmul.f32 %v5286_v37, %v5286_v37 }
 0x652   :  { %v1428_v48 = vmul.f32 %v1420_v40, %v5282_v34  ;;  %v1422_v49 = vmul.f32 %v5290_v44, %v5290_v44 }
 0x653   :  { %v1435_v50 = vmul.f32 0.044715, %v1427_v46  ;;  %v1429_v51 = vmul.f32 %v1421_v47, %v5286_v37 }
 0x654   :  { %v1436_v53 = vmul.f32 0.044715, %v1428_v48  ;;  %v1430_v55 = vmul.f32 %v1422_v49, %v5290_v44  ;;  %v1410_v56 = vpop.f32.mrb[28].mxu0 }
 0x655   :  { %v1443_v57 = vadd.f32 %v1435_v50, %v5280_v32  ;;  %v1437_v58 = vmul.f32 0.044715, %v1429_v51  ;;  %v5301_v59 = vadd.f32 %v1410_v56, %v1279_v28  ;;  %v1412_v60 = vpop.f32.mrb[29].mxu0 }
 0x656   :  { %v1444_v61 = vadd.f32 %v1436_v53, %v5282_v34  ;;  %v1438_v62 = vmul.f32 0.044715, %v1430_v55  ;;  %v5304_v63 = vadd.f32 %v1412_v60, %v1283_v30  ;;  %v1414_v0 = vpop.f32.mrb[30].mxu0 }
 0x657   :  { %v1451_v1 = vmul.f32 0.7978846, %v1443_v57  ;;  %v1445_v3 = vadd.f32 %v1437_v58, %v5286_v37  ;;  %v1423_v4 = vmul.f32 %v5301_v59, %v5301_v59  ;;  %v5309_v5 = vadd.f32 %v1414_v0, %v1279_v28  ;;  %v1416_v6 = vpop.f32.mrb[31].mxu0 }
 0x658   :  { %v1452_v7 = vmul.f32 0.7978846, %v1444_v61  ;;  %v1446_v8 = vadd.f32 %v1438_v62, %v5290_v44  ;;  %v1424_v9 = vmul.f32 %v5304_v63, %v5304_v63  ;;  %v5314_v10 = vadd.f32 %v1416_v6, %v1283_v30 }
 0x659   :  { %4381 = vtanh.f32 %v1451_v1  ;;  %v1453_v11 = vmul.f32 0.7978846, %v1445_v3  ;;  %v1431_v12 = vmul.f32 %v1423_v4, %v5301_v59  ;;  %v1425_v13 = vmul.f32 %v5309_v5, %v5309_v5 }
 0x65a   :  { %4383 = vtanh.f32 %v1452_v7  ;;  %v1454_v14 = vmul.f32 0.7978846, %v1446_v8  ;;  %v1432_v17 = vmul.f32 %v1424_v9, %v5304_v63  ;;  %v1426_v19 = vmul.f32 %v5314_v10, %v5314_v10 }
 0x65b   :  { %4385 = vtanh.f32 %v1453_v11  ;;  %v1439_v22 = vmul.f32 0.044715, %v1431_v12  ;;  %v1433_v24 = vmul.f32 %v1425_v13, %v5309_v5 }
 0x65c   :  { %4387 = vtanh.f32 %v1454_v14  ;;  %v1440_v26 = vmul.f32 0.044715, %v1432_v17  ;;  %v1434_v27 = vmul.f32 %v1426_v19, %v5314_v10 }
 0x65d   :  { %v1447_v28 = vadd.f32 %v1439_v22, %v5301_v59  ;;  %v1441_v30 = vmul.f32 0.044715, %v1433_v24 }
 0x65e   :  { %v1448_v31 = vadd.f32 %v1440_v26, %v5304_v63  ;;  %v1442_v33 = vmul.f32 0.044715, %v1434_v27 }
 0x65f   :  { %v1455_v35 = vmul.f32 0.7978846, %v1447_v28  ;;  %v1449_v36 = vadd.f32 %v1441_v30, %v5309_v5 }
 0x660   :  { %v1456_v38 = vmul.f32 0.7978846, %v1448_v31  ;;  %v1450_v40 = vadd.f32 %v1442_v33, %v5314_v10  ;;  %v4228_v31 = vld [vmem:[#allocation10 + $0x54] ss:$8 sps:$4 sm:$0xff]   ;;  %v4226_v33 = vld [vmem:[#allocation10 + $0x50] ss:$8 sps:$4 sm:$0xff]  }
 0x661   :  { %4389 = vtanh.f32 %v1455_v35  ;;  %v1457_v46 = vmul.f32 0.7978846, %v1449_v36  ;;  %1796 = vmatprep.subr.bf16.mxu0 %v4228_v31  ;;  %v4231_v35 = vld [vmem:[#allocation10 + $0x64] ss:$8 sps:$4 sm:$0xff]   ;;  %v4229_v36 = vld [vmem:[#allocation10 + $0x60] ss:$8 sps:$4 sm:$0xff]  }
 0x662   :  { %4391 = vtanh.f32 %v1456_v38  ;;  %v1458_v47 = vmul.f32 0.7978846, %v1450_v40  ;;  %1797 = vmatpush1.bf16.msra.mxu0 %v4226_v33  ;;  %v4234_v38 = vld [vmem:[#allocation10 + $0x74] ss:$8 sps:$4 sm:$0xff]  }
 0x663   :  { %v4382_v48 = vpop.eup %4381  ;;  %4393 = vtanh.f32 %v1457_v46  ;;  %1798 = vmatprep.subr.bf16.mxu0 %v4231_v35 }
 0x664   :  { %v4384_v49 = vpop.eup %4383  ;;  %v1467_v50 = vadd.f32 1.0, %v4382_v48  ;;  %4395 = vtanh.f32 %v1458_v47 }
 0x665   :  { %v4386_v51 = vpop.eup %4385  ;;  %v1468_v53 = vadd.f32 1.0, %v4384_v49 }
 0x666   :  { %v4388_v55 = vpop.eup %4387  ;;  %v1475_v56 = vmul.f32 0.5, %v1467_v50  ;;  %v1469_v57 = vadd.f32 1.0, %v4386_v51  ;;  %1799 = vmatpush1.bf16.msra.mxu0 %v4229_v36 }
 0x667   :  { %v1470_v58 = vadd.f32 1.0, %v4388_v55  ;;  %v1476_v60 = vmul.f32 0.5, %v1468_v53  ;;  %1800 = vmatprep.subr.bf16.mxu0 %v4234_v38 }
 0x668   :  { %v1477_v61 = vmul.f32 0.5, %v1469_v57  ;;  %v1483_v0 = vmul.f32 %v1475_v56, %v5280_v32 }
 0x669   :  { %v1478_v62 = vmul.f32 0.5, %v1470_v58  ;;  %v1484_v4 = vmul.f32 %v1476_v60, %v5282_v34 }
 0x66a   :  { %v1485_v1 = vmul.f32 %v1477_v61, %v5286_v37 }
 0x66b   :  { %v4390_v3 = vpop.eup %4389  ;;  %v1486_v6 = vmul.f32 %v1478_v62, %v5290_v44 }
 0x66c   :  { %v4392_v7 = vpop.eup %4391  ;;  %v1523_v8 = vpack.c.bf16 %v1485_v1, %v1483_v0  ;;  %v1471_v9 = vadd.f32 1.0, %v4390_v3 }
 0x66d   :  { %v4394_v11 = vpop.eup %4393  ;;  %v1524_v12 = vpack.c.bf16 %v1486_v6, %v1484_v4  ;;  %v1472_v13 = vadd.f32 1.0, %v4392_v7 }
 0x66e   :  { %v4396_v14 = vpop.eup %4395  ;;  %v1473_v17 = vadd.f32 1.0, %v4394_v11  ;;  %v1479_v19 = vmul.f32 0.5, %v1471_v9 }
 0x66f   :  { %1662 = vmatprep.mubr.bf16.mxu1 %v1524_v12  ;;  %v1474_v22 = vadd.f32 1.0, %v4396_v14  ;;  %v1480_v24 = vmul.f32 0.5, %v1472_v13 }
 0x670   :  { %1663 = vmatmul.mubr.bf16.vlgmr.msra.gmra.mrb[12].mxu1 %v1523_v8  ;;  %v1481_v32 = vmul.f32 0.5, %v1473_v17  ;;  %v1487_v26 = vmul.f32 %v1479_v19, %v5301_v59  ;;  %v4232_v59 = vld [vmem:[#allocation10 + $0x70] ss:$8 sps:$4 sm:$0xff]  }
 0x671   :  { %v1482_v37 = vmul.f32 0.5, %v1474_v22  ;;  %v1488_v44 = vmul.f32 %v1480_v24, %v5304_v63  ;;  %1801 = vmatpush1.bf16.msra.mxu0 %v4232_v59  ;;  %v3597_v63 = vld [vmem:[#allocation9] ss:$0 sm:$0xff] }
 0x672   :  { %v1489_v34 = vmul.f32 %v1481_v32, %v5309_v5 }
 0x673   :  { %v1490_v27 = vmul.f32 %v1482_v37, %v5314_v10 }
 0x674   :  { %v1525_v28 = vpack.c.bf16 %v1489_v34, %v1487_v26 }
 0x675   :  { %v1526_v30 = vpack.c.bf16 %v1490_v27, %v1488_v44  ;;  %v4236_v27 = vld [vmem:[%s5593_s12 + $0x8] ss:$0 sps:$4 sm:$0xff]  }
 0x677   :  { %1670 = vmatprep.mubr.bf16.mxu1 %v1526_v30 }
 0x678   :  { %1671 = vmatmul.mubr.bf16.gmra.mrb[16].mxu1 %v1525_v28 }
 0x743   :  { %v3867_v5 = vpop.f32.mrb[12].mxu1 }
 0x744   :  { %v3868_v40 = vpop.f32.mrb[13].mxu1 }
 0x745   :  { %v3869_v10 = vadd.f32 %v3868_v40, %v3867_v5  ;;  %v3870_v46 = vpop.f32.mrb[14].mxu1 }
 0x746   :  { %v3871_v47 = vpop.f32.mrb[15].mxu1 }
 0x747   :  { %v1665_v48 = vadd.f32 %v3869_v10, %v3597_v63  ;;  %v3872_v49 = vadd.f32 %v3871_v47, %v3870_v46 }
 0x749   :  { %v1668_v50 = vadd.f32 %v3872_v49, %v3597_v63  ;;  %v1679_v51 = vadd.f32 %v1665_v48, %v5261_v42  ;;  %v4235_v42 = vld [vmem:[%s5593_s12] sm:$0xff]  }
 0x74a   :  { %3997 = vmatprep.mubr.bf16.mxu1 %v4235_v42 }
 0x74b   :  { %v1680_v53 = vadd.f32 %v1668_v50, %v5263_v45  ;;  %v3873_v55 = vpop.f32.mrb[16].mxu1 }
 0x74c   :  { %v3874_v56 = vpop.f32.mrb[17].mxu1 }
 0x74d   :  { %v1702_v57 = vpack.c.bf16 %v1680_v53, %v1679_v51  ;;  %v3875_v58 = vadd.f32 %v3874_v56, %v3873_v55  ;;  %v3876_v60 = vpop.f32.mrb[18].mxu1 }
 0x74e   :  { %v3877_v61 = vpop.f32.mrb[19].mxu1 }
 0x74f   :  { %v1673_v62 = vadd.f32 %v3875_v58, %v3597_v63  ;;  %v3878_v0 = vadd.f32 %v3877_v61, %v3876_v60  ;;  %1819 = vmatmul.mubr.bf16.vlgmr.msra.gmra.mrb[32].mxu0 %v1702_v57  ;;  %v4237_v61 = vld [vmem:[%s5595_s14] sm:$0xff]  }
 0x750   :  { %1828 = vmatprep.mubr.bf16.mxu0 %v4699_v23  ;;  %4013 = vmatprep.subr.bf16.mxu0 %v4237_v61 }
 0x751   :  { %v1676_v1 = vadd.f32 %v3878_v0, %v3597_v63  ;;  %v1681_v3 = vadd.f32 %v1673_v62, %v5268_v52  ;;  %v4238_v62 = vld [vmem:[%s5595_s14 + $0x8] sm:$0xff]   ;;  %4014 = vmatpush3.bf16.msra.mxu0 %v4237_v61  ;;  %v4239_v0 = vld [vmem:[%s5595_s14 + $0x10] sm:$0xff]  }
 0x752   :  { %4015 = vmatprep.subr.bf16.mxu0 %v4238_v62 }
 0x753   :  { %v1682_v4 = vadd.f32 %v1676_v1, %v5270_v54  ;;  %v4240_v1 = vld [vmem:[%s5595_s14 + $0x18] sm:$0xff]  }
 0x755   :  { %v1703_v6 = vpack.c.bf16 %v1682_v4, %v1681_v3  ;;  %4016 = vmatpush3.bf16.msra.mxu0 %v4238_v62  ;;  %v4241_v3 = vld [vmem:[%s5595_s14 + $0x20] sm:$0xff]   ;;  %v4242_v4 = vld [vmem:[%s5595_s14 + $0x28] sm:$0xff]  }
 0x756   :  { %4017 = vmatprep.subr.bf16.mxu0 %v4239_v0 }
 0x757   :  { %1829 = vmatmul.mubr.bf16.gmra.mrb[36].mxu0 %v1703_v6  ;;  %v4243_v6 = vld [vmem:[%s5595_s14 + $0x30] sm:$0xff]  }
 0x758   :  { %1838 = vmatprep.mubr.bf16.mxu0 %v4699_v23 }
 0x759   :  { %4018 = vmatpush3.bf16.msra.mxu0 %v4239_v0 }
 0x75a   :  { %4019 = vmatprep.subr.bf16.mxu0 %v4240_v1 }
 0x75d   :  { %4020 = vmatpush3.bf16.msra.mxu0 %v4240_v1 }
 0x75e   :  { %4021 = vmatprep.subr.bf16.mxu0 %v4241_v3 }
 0x75f   :  { %1839 = vmatmul.mubr.bf16.gmra.mrb[40].mxu0 %v1704_v25 }
 0x760   :  { %1848 = vmatprep.mubr.bf16.mxu0 %v4699_v23 }
 0x761   :  { %4022 = vmatpush3.bf16.msra.mxu0 %v4241_v3 }
 0x762   :  { %4023 = vmatprep.subr.bf16.mxu0 %v4242_v4 }
 0x765   :  { %4024 = vmatpush3.bf16.msra.mxu0 %v4242_v4 }
 0x766   :  { %4025 = vmatprep.subr.bf16.mxu0 %v4243_v6 }
 0x767   :  { %1849 = vmatmul.mubr.bf16.gmra.mrb[44].mxu0 %v1705_v20 }
 0x769   :  { %4026 = vmatpush3.bf16.msra.mxu0 %v4243_v6 }
 0x822   :  { %v1820_v45 = vpop.f32.mrb[32].mxu0 }
 0x823   :  { %v1822_v7 = vpop.f32.mrb[33].mxu0 }
 0x824   :  { %v1824_v8 = vpop.f32.mrb[34].mxu0 }
 0x825   :  { %v1859_v9 = vpack.c.bf16 %v1824_v8, %v1820_v45  ;;  %v1826_v11 = vpop.f32.mrb[35].mxu0 }
 0x826   :  { %v1959_v12 = vpack.c.bf16 %v1826_v11, %v1822_v7 }
 0x827   :  { %3989 = vmatprep.subr.bf16.mxu1 %v1859_v9 }
 0x828   :  { %3990 = vmatpush3.bf16.xpose.msra.mxu1 %v1859_v9 }
 0x82a   :  { %v1830_v16 = vpop.f32.mrb[36].mxu0 }
 0x82b   :  { %v1832_v21 = vpop.f32.mrb[37].mxu0 }
 0x82c   :  { %v1834_v23 = vpop.f32.mrb[38].mxu0 }
 0x82d   :  { %v1860_v25 = vpack.c.bf16 %v1834_v23, %v1830_v16  ;;  %v1836_v13 = vpop.f32.mrb[39].mxu0 }
 0x82e   :  { %v1960_v15 = vpack.c.bf16 %v1836_v13, %v1832_v21  ;;  %v4447_v13 = vld [vmem:[%s5592_s11] sm:$0xff]  }
 0x82f   :  { %3991 = vmatprep.subr.bf16.mxu1 %v1860_v25 }
 0x830   :  { %3992 = vmatpush3.bf16.xpose.msra.mxu1 %v1860_v25 }
 0x832   :  { %v1840_v18 = vpop.f32.mrb[40].mxu0 }
 0x833   :  { %v1842_v20 = vpop.f32.mrb[41].mxu0 }
 0x834   :  { %v1844_v14 = vpop.f32.mrb[42].mxu0 }
 0x835   :  { %v1861_v17 = vpack.c.bf16 %v1844_v14, %v1840_v18  ;;  %v1846_v19 = vpop.f32.mrb[43].mxu0  ;;  %v4449_v18 = vld [vmem:[%s5592_s11 + $0x10] sm:$0xff]   ;;  %v4244_v14 = vld [vmem:[%s5595_s14 + $0x38] sm:$0xff]  }
 0x836   :  { %v1961_v22 = vpack.c.bf16 %v1846_v19, %v1842_v20  ;;  %v4450_v20 = vld [vmem:[%s5592_s11 + $0x18] sm:$0xff]   ;;  %4027 = vmatprep.subr.bf16.mxu0 %v4244_v14 }
 0x837   :  { %3993 = vmatprep.subr.bf16.mxu1 %v1861_v17  ;;  %4028 = vmatpush3.bf16.msra.mxu0 %v4244_v14 }
 0x838   :  { %3994 = vmatpush3.bf16.xpose.msra.mxu1 %v1861_v17 }
 0x83a   :  { %v1850_v24 = vpop.f32.mrb[44].mxu0 }
 0x83b   :  { %v1852_v32 = vpop.f32.mrb[45].mxu0 }
 0x83c   :  { %v1854_v37 = vpop.f32.mrb[46].mxu0 }
 0x83d   :  { %v1862_v26 = vpack.c.bf16 %v1854_v37, %v1850_v24  ;;  %v1856_v34 = vpop.f32.mrb[47].mxu0 }
 0x83e   :  { %v1962_v44 = vpack.c.bf16 %v1856_v34, %v1852_v32 }
 0x83f   :  { %3995 = vmatprep.subr.bf16.mxu1 %v1862_v26 }
 0x840   :  { %3996 = vmatpush3.bf16.xpose.msra.mxu1 %v1862_v26 }
 0x841   :  { %4001 = vmatprep.subr.bf16.mxu1 %v1959_v12 }
 0x847   :  { %3998 = vmatmul.mubr.bf16.vlgmr.msra.gmra.mrb[20].mxu1 %v4236_v27 }
 0x848   :  { %4002 = vmatpush3.bf16.msra.mxu1 %v1959_v12 }
 0x849   :  { %4003 = vmatprep.subr.bf16.mxu1 %v1960_v15 }
 0x84c   :  { %4004 = vmatpush3.bf16.msra.mxu1 %v1960_v15  ;;  %v4448_v15 = vld [vmem:[%s5592_s11 + $0x8] sm:$0xff]  }
 0x84d   :  { %4005 = vmatprep.subr.bf16.mxu1 %v1961_v22 }
 0x850   :  { %4006 = vmatpush3.bf16.msra.mxu1 %v1961_v22 }
 0x851   :  { %4007 = vmatprep.subr.bf16.mxu1 %v1962_v44 }
 0x854   :  { %4008 = vmatpush3.bf16.msra.mxu1 %v1962_v44 }
 0x855   :  { %4033 = vmatprep.subr.bf16.mxu1 %v5049_v43 }
 0x91a   :  { %v3999_v28 = vpop.f32.mrb[20].mxu1 }
 0x91b   :  { %v1907_v30 = vpop.f32.mrb[21].mxu1  ;;  %v1923_v59 = vmul.f32 0.088388346, %v3999_v28 }
 0x91c   :  { %v1921_v31 = vmul.f32 0.088388346, %v1907_v30  ;;  %v4000_v33 = vpop.f32.mrb[22].mxu1 }
 0x91d   :  { %v1910_v35 = vpop.f32.mrb[23].mxu1  ;;  %v1930_v63 = vsel %vm380_vm0, %v1923_v59, -inf }
 0x91e   :  { %v1922_v36 = vmul.f32 0.088388346, %v1910_v35  ;;  %v1924_v38 = vsel %vm380_vm0, %v1921_v31, -inf }
 0x91f   :  { %1925 = vmax.xlane.f32.xlu1 %v1924_v38 }
 0x920   :  { %v1927_v5 = vsel %vm380_vm0, %v1922_v36, -inf }
 0x923   :  { %1928 = vmax.xlane.f32.xlu1 %v1927_v5 }
 0x927   :  { %1931 = vmax.xlane.f32.xlu1 %v1930_v63 }
 0x9ac   :  { %v1926_v40 = vpop.xlane.xlu1 %1925 }
 0x9ad   :  { %v1933_v10 = vsub.f32 %v1921_v31, %v1926_v40 }
 0x9af   :  { %v1936_v46 = vmul.f32 1.442695, %v1933_v10 }
 0x9b0   :  { %v1929_v43 = vpop.xlane.xlu1 %1928 }
 0x9b1   :  { %4397 = vpow2.f32 %v1936_v46  ;;  %v1934_v47 = vsub.f32 %v1922_v36, %v1929_v43 }
 0x9b3   :  { %v1938_v48 = vmul.f32 1.442695, %v1934_v47 }
 0x9b4   :  { %v1932_v49 = vpop.xlane.xlu1 %1931 }
 0x9b5   :  { %4399 = vpow2.f32 %v1938_v48  ;;  %v1935_v50 = vsub.f32 %v1923_v59, %v1932_v49 }
 0x9b7   :  { %v1940_v51 = vmul.f32 1.442695, %v1935_v50 }
 0x9b9   :  { %4401 = vpow2.f32 %v1940_v51 }
 0x9bb   :  { %v4398_v53 = vpop.eup %4397 }
 0x9bc   :  { %v1942_v55 = vsel %vm380_vm0, %v4398_v53, 0.0 }
 0x9bd   :  { %1943 = vadd.xlane.f32.xlu0 %v1942_v55 }
 0x9bf   :  { %v4400_v56 = vpop.eup %4399 }
 0x9c0   :  { %v1945_v57 = vsel %vm380_vm0, %v4400_v56, 0.0 }
 0x9c1   :  { %1946 = vadd.xlane.f32.xlu1 %v1945_v57 }
 0x9c3   :  { %v4402_v58 = vpop.eup %4401 }
 0x9c4   :  { %v1948_v60 = vsel %vm380_vm0, %v4402_v58, 0.0 }
 0x9c5   :  { %1949 = vadd.xlane.f32.xlu1 %v1948_v60 }
 0xa4a   :  { %v1944_v42 = vpop.xlane.xlu0 %1943 }
 0xa4b   :  { %4403 = vrcp.f32 %v1944_v42 }
 0xa4e   :  { %v1947_v45 = vpop.xlane.xlu1 %1946 }
 0xa4f   :  { %4405 = vrcp.f32 %v1947_v45 }
 0xa52   :  { %v1950_v7 = vpop.xlane.xlu1 %1949 }
 0xa53   :  { %4407 = vrcp.f32 %v1950_v7 }
 0xa55   :  { %v4404_v8 = vpop.eup %4403 }
 0xa56   :  { %v1954_v11 = vmul.f32 %v4404_v8, %v4398_v53 }
 0xa59   :  { %v4406_v9 = vpop.eup %4405 }
 0xa5a   :  { %v1955_v12 = vmul.f32 %v4406_v9, %v4400_v56 }
 0xa5c   :  { %v1957_v16 = vpack.c.bf16 %v1955_v12, %v1954_v11 }
 0xa5d   :  { %v4408_v21 = vpop.eup %4407 }
 0xa5e   :  { %v1956_v23 = vmul.f32 %v4408_v21, %v4402_v58  ;;  %4009 = vmatprep.mubr.msk.bf16.mxu1 %vm380_vm0, %v1957_v16 }
 0xa60   :  { %v1958_v25 = vpack.c.bf16 %v1956_v23, %v1956_v23 }
 0xa62   :  { %4010 = vmatmul.mubr.msk.bf16.vlgmr.msra.gmra.mrb[24].mxu1 %vm380_vm0, %v1958_v25 }
 0xa63   :  { %4034 = vmatpush3.bf16.msra.mxu1 %v4447_v13 }
 0xa64   :  { %4035 = vmatprep.subr.bf16.mxu1 %v4448_v15 }
 0xa67   :  { %4036 = vmatpush3.bf16.msra.mxu1 %v4448_v15 }
 0xa68   :  { %4037 = vmatprep.subr.bf16.mxu1 %v4449_v18 }
 0xa6b   :  { %4038 = vmatpush3.bf16.msra.mxu1 %v4449_v18 }
 0xa6c   :  { %4039 = vmatprep.subr.bf16.mxu1 %v4450_v20 }
 0xa6f   :  { %4040 = vmatpush3.bf16.msra.mxu1 %v4450_v20 }
 0xb35   :  { %v4011_v17 = vpop.f32.mrb[24].mxu1 }
 0xb36   :  { %v2003_v19 = vpop.f32.mrb[25].mxu1  ;;  %v2034_v37 = vpack.c.bf16 %v4011_v17, %v4011_v17 }
 0xb37   :  { %v4012_v22 = vpop.f32.mrb[26].mxu1 }
 0xb38   :  { %v2006_v24 = vpop.f32.mrb[27].mxu1 }
 0xb39   :  { %v2033_v32 = vpack.c.bf16 %v2006_v24, %v2003_v19 }
 0xb3b   :  { %4029 = vmatprep.mubr.bf16.mxu0 %v2033_v32 }
 0xb3c   :  { %4030 = vmatmul.mubr.bf16.vlgmr.msra.gmra.mrb[48].mxu0 %v2034_v37 }
 0xc0f   :  { %v4031_v26 = vpop.f32.mrb[48].mxu0 }
 0xc10   :  { %v2117_v34 = vpop.f32.mrb[49].mxu0  ;;  %v2133_v33 = vsub.f32 0.0, %v4031_v26 }
 0xc11   :  { %v2131_v44 = vsub.f32 0.0, %v2117_v34  ;;  %v4032_v27 = vpop.f32.mrb[50].mxu0 }
 0xc12   :  { %v2120_v28 = vpop.f32.mrb[51].mxu0  ;;  %v2140_v36 = vsel %vm380_vm0, %v2133_v33, inf  ;;  %v4247_v27 = vld [vmem:[#allocation12 + $0x4] ss:$16 sps:$4 sm:$0xff]  }
 0xc13   :  { %v2132_v30 = vsub.f32 0.0, %v2120_v28  ;;  %v2134_v31 = vsel %vm380_vm0, %v2131_v44, inf  ;;  %v4245_v28 = vld [vmem:[#allocation12] ss:$16 sps:$4 sm:$0xff]   ;;  %2754 = vmatprep.subr.bf16.mxu1 %v4247_v27 }
 0xc14   :  { %2135 = vmin.xlane.f32.xlu1 %v2134_v31 }
 0xc15   :  { %v2137_v35 = vsel %vm380_vm0, %v2132_v30, inf }
 0xc18   :  { %2138 = vmin.xlane.f32.xlu1 %v2137_v35  ;;  %v4253_v35 = vld [vmem:[#allocation12 + $0x24] ss:$16 sps:$4 sm:$0xff]  }
 0xc1c   :  { %2141 = vmin.xlane.f32.xlu1 %v2140_v36  ;;  %v4251_v36 = vld [vmem:[#allocation12 + $0x20] ss:$16 sps:$4 sm:$0xff]  }
 0xca1   :  { %v2136_v38 = vpop.xlane.xlu1 %2135 }
 0xca2   :  { %vm2143_vm11 = vcmp.le.f32.partialorder %v2131_v44, %v2136_v38  ;;  %v2267_v44 = vadd.s32 8, %v5009_v39  ;;  %v4259_v38 = vld [vmem:[#allocation12 + $0x44] ss:$16 sps:$4 sm:$0xff]  }
 0xca3   :  { %v2146_v59 = vsel %vm2143_vm11, %v5019_v2, 64 }
 0xca4   :  { %v2149_v5 = vsel %vm380_vm0, %v2146_v59, 2147483647  ;;  %vm2279_vm9 = vcmp.eq.s32.totalorder %v5019_v2, %v2267_v44  ;;  %v4257_v59 = vld [vmem:[#allocation12 + $0x40] ss:$16 sps:$4 sm:$0xff]  }
 0xca5   :  { %v2139_v63 = vpop.xlane.xlu1 %2138  ;;  %v2151_v40 = vshra.s32 %v2149_v5, 16  ;;  %v2150_v56 = vand.u32 65535, %v2149_v5  ;;  %v3648_v31 = vsel %vm2279_vm9, 1.0, %v4700_v29  ;;  %v4265_v5 = vld [vmem:[#allocation12 + $0x64] ss:$16 sps:$4 sm:$0xff]  }
 0xca6   :  { %vm2144_vm12 = vcmp.le.f32.partialorder %v2132_v30, %v2139_v63  ;;  %v3647_v30 = vsel %vm2278_vm8, 1.0, %v4700_v29  ;;  %v4263_v63 = vld [vmem:[#allocation12 + $0x60] ss:$16 sps:$4 sm:$0xff]  }
 0xca7   :  { %v2147_v10 = vsel %vm2144_vm12, %v5019_v2, 64  ;;  %v2153_v46 = vcvt.s32.f32 %v2151_v40  ;;  %v2152_v58 = vcvt.s32.f32 %v2150_v56  ;;  %v4271_v40 = vld [vmem:[#allocation12 + $0x84] ss:$16 sps:$4 sm:$0xff]   ;;  %v4299_v56 = vld [vmem:[#allocation12 + $0x120] ss:$16 sps:$4 sm:$0xff]   ;;  %vm2281_vm12 = vcmp.eq.s32.totalorder %v5019_v2, 23 }
 0xca8   :  { %v2164_v43 = vsel %vm380_vm0, %v2147_v10, 2147483647  ;;  %v4269_v10 = vld [vmem:[#allocation12 + $0x80] ss:$16 sps:$4 sm:$0xff]  }
 0xca9   :  { %2154 = vmin.xlane.f32.xlu1 %v2153_v46  ;;  %v2142_v47 = vpop.xlane.xlu1 %2141  ;;  %v2166_v48 = vshra.s32 %v2164_v43, 16  ;;  %v2165_v60 = vand.u32 65535, %v2164_v43  ;;  %v4275_v43 = vld [vmem:[#allocation12 + $0xa0] ss:$16 sps:$4 sm:$0xff]  }
 0xcaa   :  { %vm2145_vm13 = vcmp.le.f32.partialorder %v2133_v33, %v2142_v47  ;;  %v2290_v33 = vpack.c.bf16 %v3648_v31, %v3647_v30  ;;  %v4283_v47 = vld [vmem:[#allocation12 + $0xc4] ss:$16 sps:$4 sm:$0xff]   ;;  %v3650_v30 = vsel %vm2281_vm12, 1.0, %v4700_v29 }
 0xcab   :  { %v2148_v49 = vsel %vm2145_vm13, %v5019_v2, 64  ;;  %v2168_v50 = vcvt.s32.f32 %v2166_v48  ;;  %v2167_v0 = vcvt.s32.f32 %v2165_v60  ;;  %v4281_v48 = vld [vmem:[#allocation12 + $0xc0] ss:$16 sps:$4 sm:$0xff]   ;;  %v4313_v60 = vld [vmem:[#allocation12 + $0x164] ss:$16 sps:$4 sm:$0xff]   ;;  %vm2301_vm13 = vcmask 1043456  }
 0xcac   :  { %v2179_v51 = vsel %vm380_vm0, %v2148_v49, 2147483647  ;;  %4049 = vmatprep.mubr.msk.bf16.mxu0 %vm2294_vm10, %v2290_v33  ;;  %v4289_v49 = vld [vmem:[#allocation12 + $0xe4] ss:$16 sps:$4 sm:$0xff]  }
 0xcad   :  { %2169 = vmin.xlane.f32.xlu1 %v2168_v50  ;;  %v2181_v53 = vshra.s32 %v2179_v51, 16  ;;  %v2180_v1 = vand.u32 65535, %v2179_v51  ;;  %v4295_v51 = vld [vmem:[#allocation12 + $0x104] ss:$16 sps:$4 sm:$0xff]  }
 0xcaf   :  { %v2183_v55 = vcvt.s32.f32 %v2181_v53  ;;  %v2182_v6 = vcvt.s32.f32 %v2180_v1  ;;  %v4293_v53 = vld [vmem:[#allocation12 + $0x100] ss:$16 sps:$4 sm:$0xff]   ;;  %v4325_v1 = vld [vmem:[#allocation12 + $0x1a4] ss:$16 sps:$4 sm:$0xff]  }
 0xcb1   :  { %2184 = vmin.xlane.f32.xlu0 %v2183_v55 }
 0xd36   :  { %v2155_v57 = vpop.xlane.xlu1 %2154 }
 0xd37   :  { %vm2156_vm14 = vcmp.eq.f32.partialorder %v2153_v46, %v2155_v57  ;;  %v2161_v45 = vcvt.f32.s32 %v2155_v57  ;;  %v4277_v46 = vld [vmem:[#allocation12 + $0xa4] ss:$16 sps:$4 sm:$0xff]  }
 0xd38   :  { %v2157_v61 = vsel %vm2156_vm14, %v2152_v58, inf  ;;  %v4307_v57 = vld [vmem:[#allocation12 + $0x144] ss:$16 sps:$4 sm:$0xff]   ;;  %v4305_v58 = vld [vmem:[#allocation12 + $0x140] ss:$16 sps:$4 sm:$0xff]  }
 0xd39   :  { %2158 = vmin.xlane.f32.xlu1 %v2157_v61  ;;  %v2162_v8 = vshll.u32 %v2161_v45, 16  ;;  %v4311_v61 = vld [vmem:[#allocation12 + $0x160] ss:$16 sps:$4 sm:$0xff]  }
 0xd3a   :  { %v2170_v62 = vpop.xlane.xlu1 %2169  ;;  %v4335_v45 = vld [vmem:[#allocation12 + $0x1e0] ss:$16 sps:$4 sm:$0xff]  }
 0xd3b   :  { %vm2171_vm15 = vcmp.eq.f32.partialorder %v2168_v50, %v2170_v62  ;;  %v2176_v9 = vcvt.f32.s32 %v2170_v62  ;;  %v4287_v50 = vld [vmem:[#allocation12 + $0xe0] ss:$16 sps:$4 sm:$0xff]   ;;  %v4319_v62 = vld [vmem:[#allocation12 + $0x184] ss:$16 sps:$4 sm:$0xff]  }
 0xd3c   :  { %v2172_v3 = vsel %vm2171_vm15, %v2167_v0, inf  ;;  %v4317_v0 = vld [vmem:[#allocation12 + $0x180] ss:$16 sps:$4 sm:$0xff]  }
 0xd3d   :  { %2173 = vmin.xlane.f32.xlu0 %v2172_v3  ;;  %v2177_v21 = vshll.u32 %v2176_v9, 16  ;;  %v4323_v3 = vld [vmem:[#allocation12 + $0x1a0] ss:$16 sps:$4 sm:$0xff]  }
 0xd3e   :  { %v2185_v4 = vpop.xlane.xlu0 %2184  ;;  %v2354_v9 = vld [vmem:[%s5614_s8] sm:$0xff] }
 0xd3f   :  { %vm2186_vm1 = vcmp.eq.f32.partialorder %v2183_v55, %v2185_v4  ;;  %v2191_v23 = vcvt.f32.s32 %v2185_v4  ;;  %v4301_v55 = vld [vmem:[#allocation12 + $0x124] ss:$16 sps:$4 sm:$0xff]  }
 0xd40   :  { %v2187_v42 = vsel %vm2186_vm1, %v2182_v6, inf  ;;  %v4331_v4 = vld [vmem:[#allocation12 + $0x1c4] ss:$16 sps:$4 sm:$0xff]   ;;  %v4329_v6 = vld [vmem:[#allocation12 + $0x1c0] ss:$16 sps:$4 sm:$0xff]  }
 0xd41   :  { %2188 = vmin.xlane.f32.xlu1 %v2187_v42  ;;  %v2192_v20 = vshll.u32 %v2191_v23, 16  ;;  %v4337_v42 = vld [vmem:[#allocation12 + $0x1e4] ss:$16 sps:$4 sm:$0xff]  }
 0xd42   :  { %v2361_v23 = vld [vmem:[%s5614_s8 + $0x38] sm:$0xff] }
 0xdc6   :  { %v2159_v7 = vpop.xlane.xlu1 %2158 }
 0xdc7   :  { %v2160_v11 = vcvt.f32.s32 %v2159_v7  ;;  %v2355_v7 = vld [vmem:[%s5614_s8 + $0x8] sm:$0xff] }
 0xdc9   :  { %v2163_v12 = vadd.s32 %v2162_v8, %v2160_v11  ;;  %v2357_v8 = vld [vmem:[%s5614_s8 + $0x18] sm:$0xff]  ;;  %v2356_v11 = vld [vmem:[%s5614_s8 + $0x10] sm:$0xff] }
 0xdca   :  { %v2174_v16 = vpop.xlane.xlu0 %2173 }
 0xdcb   :  { %vm2194_vm2 = vcmp.lt.s32.totalorder %v2163_v12, 63  ;;  %v2175_v25 = vcvt.f32.s32 %v2174_v16  ;;  %v5436_v16 = vpack.c.bf16 %v2356_v11, %v2354_v9  ;;  %v4344_v9 = vld [vmem:[#allocation15 + $0x18] sm:$0xff]   ;;  %v4345_v11 = vld [vmem:[#allocation15 + $0x20] sm:$0xff]  }
 0xdcc   :  { %v2195_v13 = vsel %vm2194_vm2, %v2163_v12, 63  ;;  %v2429_v12 = vpack.c.bf16 %v2357_v8, %v2355_v7  ;;  %v4342_v7 = vld [vmem:[#allocation15 + $0x8] sm:$0xff]   ;;  %v4343_v8 = vld [vmem:[#allocation15 + $0x10] sm:$0xff]  }
 0xdcd   :  { %v2178_v15 = vadd.s32 %v2177_v21, %v2175_v25  ;;  %vm2200_vm3 = vcmp.eq.s32.totalorder %v5019_v2, %v2195_v13  ;;  %v2359_v21 = vld [vmem:[%s5614_s8 + $0x28] sm:$0xff]  ;;  %v2358_v25 = vld [vmem:[%s5614_s8 + $0x20] sm:$0xff] }
 0xdce   :  { %v2189_v18 = vpop.xlane.xlu1 %2188  ;;  %v3642_v22 = vsel %vm2200_vm3, 1.0, %v4700_v29  ;;  %v5448_v13 = vpack.c.bf16 %v2361_v23, %v2359_v21  ;;  %v4348_v21 = vld [vmem:[#allocation15 + $0x38] sm:$0xff]  }
 0xdcf   :  { %vm2196_vm4 = vcmp.lt.s32.totalorder %v2178_v15, 63  ;;  %v2190_v14 = vcvt.f32.s32 %v2189_v18 }
 0xdd0   :  { %v2197_v17 = vsel %vm2196_vm4, %v2178_v15, 63  ;;  %v2360_v15 = vld [vmem:[%s5614_s8 + $0x30] sm:$0xff] }
 0xdd1   :  { %vm2201_vm5 = vcmp.eq.s32.totalorder %v5019_v2, %v2197_v17  ;;  %v2193_v19 = vadd.s32 %v2192_v20, %v2190_v14  ;;  %v5453_v18 = vpack.c.bf16 %v2360_v15, %v2358_v25  ;;  %v2363_v20 = vld [vmem:[%s5614_s8 + $0x48] sm:$0xff]  ;;  %v2362_v14 = vld [vmem:[%s5614_s8 + $0x40] sm:$0xff] }
 0xdd2   :  { %v3643_v24 = vsel %vm2201_vm5, 1.0, %v4700_v29  ;;  %v5463_v17 = vpack.c.bf16 %v2363_v20, %v2363_v20 }
 0xdd3   :  { %vm2198_vm6 = vcmp.lt.s32.totalorder %v2193_v19, 63  ;;  %v2209_v32 = vpack.c.bf16 %v3643_v24, %v3642_v22  ;;  %v2268_v22 = vadd.s32 16, %v5009_v39  ;;  %v4250_v39 = vld [vmem:[#allocation12 + $0xc] ss:$16 sps:$4 sm:$0xff]  }
 0xdd4   :  { %v2199_v37 = vsel %vm2198_vm6, %v2193_v19, 63  ;;  %v5465_v19 = vpack.c.bf16 %v2362_v14, %v2362_v14 }
 0xdd5   :  { %vm2202_vm7 = vcmp.eq.s32.totalorder %v5019_v2, %v2199_v37  ;;  %4041 = vmatprep.mubr.msk.bf16.mxu1 %vm380_vm0, %v2209_v32 }
 0xdd6   :  { %v3644_v26 = vsel %vm2202_vm7, 1.0, %v4700_v29 }
 0xdd7   :  { %v2210_v34 = vpack.c.bf16 %v3644_v26, %v3644_v26 }
 0xdd9   :  { %4042 = vmatmul.mubr.msk.bf16.vlgmr.msra.gmra.mrb[28].mxu1 %vm380_vm0, %v2210_v34  ;;  %vm2274_vm0 = vcmp.lt.s32.totalorder %v2268_v22, 23 }
 0xdda   :  { %2755 = vmatpush1.bf16.msra.mxu1 %v4245_v28  ;;  %2786 = vmatprep.mubr.bf16.mxu1 %v2429_v12  ;;  %v2275_v37 = vsel %vm2274_vm0, %v2268_v22, 23 }
 0xddb   :  { %2756 = vmatprep.subr.bf16.mxu1 %v4253_v35  ;;  %vm2280_vm11 = vcmp.eq.s32.totalorder %v5019_v2, %v2275_v37  ;;  %v4248_v35 = vld [vmem:[#allocation12 + $0x8] ss:$16 sps:$4 sm:$0xff]   ;;  %v4349_v37 = vld [vmem:[#allocation13 + $0x40] sm:$0xff]  }
 0xddc   :  { %v3649_v28 = vsel %vm2280_vm11, 1.0, %v4700_v29  ;;  %v4254_v2 = vld [vmem:[#allocation12 + $0x28] ss:$16 sps:$4 sm:$0xff]  }
 0xddd   :  { %v2291_v33 = vpack.c.bf16 %v3650_v30, %v3649_v28  ;;  %v4266_v29 = vld [vmem:[#allocation12 + $0x68] ss:$16 sps:$4 sm:$0xff]   ;;  %v4354_v28 = vld [vmem:[#allocation13 + $0x10] sm:$0xff]  }
 0xdde   :  { %2757 = vmatpush1.bf16.msra.mxu1 %v4251_v36  ;;  %v4256_v36 = vld [vmem:[#allocation12 + $0x2c] ss:$16 sps:$4 sm:$0xff]  }
 0xddf   :  { %2758 = vmatprep.subr.bf16.mxu1 %v4259_v38  ;;  %v4262_v38 = vld [vmem:[#allocation12 + $0x4c] ss:$16 sps:$4 sm:$0xff]  }
 0xde0   :  { %v4355_v30 = vld [vmem:[#allocation13 + $0x58] sm:$0xff]  }
 0xde2   :  { %2759 = vmatpush1.bf16.msra.mxu1 %v4257_v59  ;;  %v4260_v59 = vld [vmem:[#allocation12 + $0x48] ss:$16 sps:$4 sm:$0xff]  }
 0xde3   :  { %2760 = vmatprep.subr.bf16.mxu1 %v4265_v5  ;;  %v4268_v5 = vld [vmem:[#allocation12 + $0x6c] ss:$16 sps:$4 sm:$0xff]  }
 0xde6   :  { %2761 = vmatpush1.bf16.msra.mxu1 %v4263_v63  ;;  %v4274_v63 = vld [vmem:[#allocation12 + $0x8c] ss:$16 sps:$4 sm:$0xff]  }
 0xde7   :  { %2762 = vmatprep.subr.bf16.mxu1 %v4271_v40  ;;  %v4272_v40 = vld [vmem:[#allocation12 + $0x88] ss:$16 sps:$4 sm:$0xff]  }
 0xdea   :  { %2763 = vmatpush1.bf16.msra.mxu1 %v4269_v10  ;;  %v4280_v10 = vld [vmem:[#allocation12 + $0xac] ss:$16 sps:$4 sm:$0xff]  }
 0xdeb   :  { %2764 = vmatprep.subr.bf16.mxu1 %v4277_v46  ;;  %v4278_v46 = vld [vmem:[#allocation12 + $0xa8] ss:$16 sps:$4 sm:$0xff]  }
 0xdee   :  { %2765 = vmatpush1.bf16.msra.mxu1 %v4275_v43  ;;  %v4286_v43 = vld [vmem:[#allocation12 + $0xcc] ss:$16 sps:$4 sm:$0xff]  }
 0xdef   :  { %2766 = vmatprep.subr.bf16.mxu1 %v4283_v47  ;;  %v4284_v47 = vld [vmem:[#allocation12 + $0xc8] ss:$16 sps:$4 sm:$0xff]  }
 0xdf2   :  { %2767 = vmatpush1.bf16.msra.mxu1 %v4281_v48  ;;  %v4292_v48 = vld [vmem:[#allocation12 + $0xec] ss:$16 sps:$4 sm:$0xff]  }
 0xdf3   :  { %2768 = vmatprep.subr.bf16.mxu1 %v4289_v49  ;;  %v4290_v49 = vld [vmem:[#allocation12 + $0xe8] ss:$16 sps:$4 sm:$0xff]  }
 0xdf6   :  { %2769 = vmatpush1.bf16.msra.mxu1 %v4287_v50  ;;  %v4298_v50 = vld [vmem:[#allocation12 + $0x10c] ss:$16 sps:$4 sm:$0xff]  }
 0xdf7   :  { %2770 = vmatprep.subr.bf16.mxu1 %v4295_v51  ;;  %v4296_v51 = vld [vmem:[#allocation12 + $0x108] ss:$16 sps:$4 sm:$0xff]  }
 0xdfa   :  { %2771 = vmatpush1.bf16.msra.mxu1 %v4293_v53  ;;  %v4304_v53 = vld [vmem:[#allocation12 + $0x12c] ss:$16 sps:$4 sm:$0xff]  }
 0xdfb   :  { %2772 = vmatprep.subr.bf16.mxu1 %v4301_v55  ;;  %v4302_v55 = vld [vmem:[#allocation12 + $0x128] ss:$16 sps:$4 sm:$0xff]  }
 0xdfe   :  { %2773 = vmatpush1.bf16.msra.mxu1 %v4299_v56  ;;  %v4310_v56 = vld [vmem:[#allocation12 + $0x14c] ss:$16 sps:$4 sm:$0xff]  }
 0xdff   :  { %2774 = vmatprep.subr.bf16.mxu1 %v4307_v57  ;;  %v4308_v57 = vld [vmem:[#allocation12 + $0x148] ss:$16 sps:$4 sm:$0xff]  }
 0xe02   :  { %2775 = vmatpush1.bf16.msra.mxu1 %v4305_v58  ;;  %v4316_v58 = vld [vmem:[#allocation12 + $0x16c] ss:$16 sps:$4 sm:$0xff]  }
 0xe03   :  { %2776 = vmatprep.subr.bf16.mxu1 %v4313_v60  ;;  %v4314_v60 = vld [vmem:[#allocation12 + $0x168] ss:$16 sps:$4 sm:$0xff]  }
 0xe06   :  { %2777 = vmatpush1.bf16.msra.mxu1 %v4311_v61  ;;  %v4322_v61 = vld [vmem:[#allocation12 + $0x18c] ss:$16 sps:$4 sm:$0xff]  }
 0xe07   :  { %2778 = vmatprep.subr.bf16.mxu1 %v4319_v62  ;;  %v4320_v62 = vld [vmem:[#allocation12 + $0x188] ss:$16 sps:$4 sm:$0xff]  }
 0xe0a   :  { %2779 = vmatpush1.bf16.msra.mxu1 %v4317_v0  ;;  %v4328_v0 = vld [vmem:[#allocation12 + $0x1ac] ss:$16 sps:$4 sm:$0xff]  }
 0xe0b   :  { %2780 = vmatprep.subr.bf16.mxu1 %v4325_v1  ;;  %v4326_v1 = vld [vmem:[#allocation12 + $0x1a8] ss:$16 sps:$4 sm:$0xff]  }
 0xe0e   :  { %2781 = vmatpush1.bf16.msra.mxu1 %v4323_v3  ;;  %v4334_v3 = vld [vmem:[#allocation12 + $0x1cc] ss:$16 sps:$4 sm:$0xff]  }
 0xe0f   :  { %2782 = vmatprep.subr.bf16.mxu1 %v4331_v4  ;;  %v4332_v4 = vld [vmem:[#allocation12 + $0x1c8] ss:$16 sps:$4 sm:$0xff]  }
 0xe12   :  { %2783 = vmatpush1.bf16.msra.mxu1 %v4329_v6  ;;  %v4340_v6 = vld [vmem:[#allocation12 + $0x1ec] ss:$16 sps:$4 sm:$0xff]  }
 0xe13   :  { %2784 = vmatprep.subr.bf16.mxu1 %v4337_v42  ;;  %v4338_v42 = vld [vmem:[#allocation12 + $0x1e8] ss:$16 sps:$4 sm:$0xff]  }
 0xe16   :  { %2785 = vmatpush1.bf16.msra.mxu1 %v4335_v45  ;;  %v4341_v45 = vld [vmem:[#allocation15] sm:$0xff]  }
 0xe17   :  { %3911 = vmatprep.subr.bf16.mxu1 %v4349_v37 }
 0xe19   :  { %2787 = vmatmul.mubr.bf16.vlgmr.msra.gmra.mrb[32].mxu1 %v5436_v16 }
 0xe1a   :  { %2796 = vmatprep.mubr.bf16.mxu1 %v5448_v13 }
 0xe21   :  { %2797 = vmatmul.mubr.bf16.gmra.mrb[36].mxu1 %v5453_v18 }
 0xe22   :  { %2806 = vmatprep.mubr.bf16.mxu1 %v5463_v17 }
 0xe29   :  { %2807 = vmatmul.mubr.bf16.gmra.mrb[40].mxu1 %v5465_v19 }
 0xeac   :  { %v4043_v24 = vpop.f32.mrb[28].mxu1 }
 0xead   :  { %v2251_v32 = vpop.f32.mrb[29].mxu1  ;;  %v2293_v27 = vpack.c.bf16 %v4043_v24, %v4043_v24 }
 0xeae   :  { %v4044_v26 = vpop.f32.mrb[30].mxu1 }
 0xeaf   :  { %v2254_v34 = vpop.f32.mrb[31].mxu1  ;;  %v2303_v31 = vsel %vm2301_vm13, %v2293_v27, 0  ;;  %v4350_v26 = vld [vmem:[#allocation13] sm:$0xff]  }
 0xeb0   :  { %v2292_v44 = vpack.c.bf16 %v2254_v34, %v2251_v32  ;;  %3912 = vmatpush3.bf16.msra.mxu1 %v4350_v26  ;;  %v4351_v34 = vld [vmem:[#allocation13 + $0x48] sm:$0xff]  }
 0xeb1   :  { %3913 = vmatprep.subr.bf16.mxu1 %v4351_v34 }
 0xeb2   :  { %4045 = vmatprep.subr.bf16.mxu0 %v2292_v44 }
 0xeb3   :  { %4046 = vmatpush3.bf16.msra.mxu0 %v2292_v44  ;;  %v4352_v44 = vld [vmem:[#allocation13 + $0x8] sm:$0xff]  }
 0xeb4   :  { %4093 = vmatprep.subr.msk.bf16.mxu0 %vm2301_vm13, %v2293_v27  ;;  %3914 = vmatpush3.bf16.msra.mxu1 %v4352_v44  ;;  %v4353_v27 = vld [vmem:[#allocation13 + $0x50] sm:$0xff]  }
 0xeb5   :  { %3915 = vmatprep.subr.bf16.mxu1 %v4353_v27 }
 0xeb7   :  { %4048 = vmatpush3.bf16.msra.mxu0 %v2303_v31  ;;  %v4357_v31 = vld [vmem:[#allocation13 + $0x60] sm:$0xff]  }
 0xeb8   :  { %2815 = vmatprep.subr.bf16.mxu0 %v4250_v39  ;;  %3916 = vmatpush3.bf16.msra.mxu1 %v4354_v28  ;;  %v4356_v39 = vld [vmem:[#allocation13 + $0x18] sm:$0xff]  }
 0xeb9   :  { %3917 = vmatprep.subr.bf16.mxu1 %v4355_v30 }
 0xeba   :  { %4050 = vmatmul.mubr.msk.bf16.vlgmr.msra.gmra.mrb[52].mxu0 %vm2294_vm10, %v2291_v33  ;;  %v4358_v33 = vld [vmem:[#allocation13 + $0x20] sm:$0xff]  }
 0xebb   :  { %2816 = vmatpush1.bf16.msra.mxu0 %v4248_v35  ;;  %2847 = vmatprep.mubr.bf16.mxu0 %v2429_v12  ;;  %v4346_v12 = vld [vmem:[#allocation15 + $0x28] sm:$0xff]  }
 0xebc   :  { %2817 = vmatprep.subr.bf16.mxu0 %v4256_v36  ;;  %3918 = vmatpush3.bf16.msra.mxu1 %v4356_v39  ;;  %v4359_v35 = vld [vmem:[#allocation13 + $0x68] sm:$0xff]  }
 0xebd   :  { %3919 = vmatprep.subr.bf16.mxu1 %v4357_v31  ;;  %v4360_v36 = vld [vmem:[#allocation13 + $0x28] sm:$0xff]  }
 0xebf   :  { %2818 = vmatpush1.bf16.msra.mxu0 %v4254_v2  ;;  %v4361_v2 = vld [vmem:[#allocation13 + $0x70] sm:$0xff]  }
 0xec0   :  { %2819 = vmatprep.subr.bf16.mxu0 %v4262_v38  ;;  %3920 = vmatpush3.bf16.msra.mxu1 %v4358_v33  ;;  %v4362_v38 = vld [vmem:[#allocation13 + $0x30] sm:$0xff]  }
 0xec1   :  { %3921 = vmatprep.subr.bf16.mxu1 %v4359_v35 }
 0xec3   :  { %2820 = vmatpush1.bf16.msra.mxu0 %v4260_v59  ;;  %v4363_v59 = vld [vmem:[#allocation13 + $0x78] sm:$0xff]  }
 0xec4   :  { %2821 = vmatprep.subr.bf16.mxu0 %v4268_v5  ;;  %3922 = vmatpush3.bf16.msra.mxu1 %v4360_v36  ;;  %v4364_v5 = vld [vmem:[#allocation13 + $0x38] sm:$0xff]  }
 0xec5   :  { %3923 = vmatprep.subr.bf16.mxu1 %v4361_v2 }
 0xec7   :  { %2822 = vmatpush1.bf16.msra.mxu0 %v4266_v29 }
 0xec8   :  { %2823 = vmatprep.subr.bf16.mxu0 %v4274_v63  ;;  %3924 = vmatpush3.bf16.msra.mxu1 %v4362_v38 }
 0xec9   :  { %3925 = vmatprep.subr.bf16.mxu1 %v4363_v59 }
 0xecb   :  { %2824 = vmatpush1.bf16.msra.mxu0 %v4272_v40 }
 0xecc   :  { %2825 = vmatprep.subr.bf16.mxu0 %v4280_v10  ;;  %3926 = vmatpush3.bf16.msra.mxu1 %v4364_v5 }
 0xecf   :  { %2826 = vmatpush1.bf16.msra.mxu0 %v4278_v46 }
 0xed0   :  { %2827 = vmatprep.subr.bf16.mxu0 %v4286_v43 }
 0xed3   :  { %2828 = vmatpush1.bf16.msra.mxu0 %v4284_v47 }
 0xed4   :  { %2829 = vmatprep.subr.bf16.mxu0 %v4292_v48 }
 0xed7   :  { %2830 = vmatpush1.bf16.msra.mxu0 %v4290_v49 }
 0xed8   :  { %2831 = vmatprep.subr.bf16.mxu0 %v4298_v50 }
 0xedb   :  { %2832 = vmatpush1.bf16.msra.mxu0 %v4296_v51 }
 0xedc   :  { %2833 = vmatprep.subr.bf16.mxu0 %v4304_v53 }
 0xedf   :  { %2834 = vmatpush1.bf16.msra.mxu0 %v4302_v55 }
 0xee0   :  { %2835 = vmatprep.subr.bf16.mxu0 %v4310_v56 }
 0xee3   :  { %2836 = vmatpush1.bf16.msra.mxu0 %v4308_v57 }
 0xee4   :  { %2837 = vmatprep.subr.bf16.mxu0 %v4316_v58 }
 0xee7   :  { %2838 = vmatpush1.bf16.msra.mxu0 %v4314_v60 }
 0xee8   :  { %2839 = vmatprep.subr.bf16.mxu0 %v4322_v61 }
 0xeeb   :  { %2840 = vmatpush1.bf16.msra.mxu0 %v4320_v62 }
 0xeec   :  { %2841 = vmatprep.subr.bf16.mxu0 %v4328_v0  ;;  %v2788_v23 = vpop.f32.mrb[32].mxu1 }
 0xeed   :  { %v2790_v25 = vpop.f32.mrb[33].mxu1  ;;  %v2876_v47 = vmul.f32 %v2788_v23, %v2788_v23 }
 0xeee   :  { %v2877_v48 = vmul.f32 %v2790_v25, %v2790_v25 }
 0xeef   :  { %2842 = vmatpush1.bf16.msra.mxu0 %v4326_v1 }
 0xef0   :  { %2843 = vmatprep.subr.bf16.mxu0 %v4334_v3 }
 0xef3   :  { %2844 = vmatpush1.bf16.msra.mxu0 %v4332_v4 }
 0xef4   :  { %2845 = vmatprep.subr.bf16.mxu0 %v4340_v6 }
 0xef7   :  { %2846 = vmatpush1.bf16.msra.mxu0 %v4338_v42 }
 0xef8   :  { %4053 = vmatprep.subr.bf16.mxu0 %v4341_v45 }
 0xefa   :  { %2848 = vmatmul.mubr.bf16.vlgmr.msra.gmra.mrb[56].mxu0 %v5436_v16  ;;  %v4347_v16 = vld [vmem:[#allocation15 + $0x30] sm:$0xff]  }
 0xefb   :  { %2857 = vmatprep.mubr.bf16.mxu0 %v5448_v13  ;;  %4054 = vmatpush3.bf16.msra.mxu0 %v4341_v45  ;;  %v2792_v13 = vpop.f32.mrb[34].mxu1 }
 0xefc   :  { %4055 = vmatprep.subr.bf16.mxu0 %v4342_v7  ;;  %v2794_v15 = vpop.f32.mrb[35].mxu1  ;;  %v2878_v56 = vmul.f32 %v2792_v13, %v2792_v13 }
 0xefd   :  { %v2879_v61 = vmul.f32 %v2794_v15, %v2794_v15 }
 0xeff   :  { %4056 = vmatpush3.bf16.msra.mxu0 %v4342_v7 }
 0xf00   :  { %4057 = vmatprep.subr.bf16.mxu0 %v4343_v8 }
 0xf02   :  { %2858 = vmatmul.mubr.bf16.gmra.mrb[60].mxu0 %v5453_v18  ;;  %v5480_v18 = vpop.f32.mrb[36].mxu1 }
 0xf03   :  { %2867 = vmatprep.mubr.bf16.mxu0 %v5463_v17  ;;  %4058 = vmatpush3.bf16.msra.mxu0 %v4343_v8  ;;  %v5482_v20 = vpop.f32.mrb[37].mxu1  ;;  %v2880_v42 = vmul.f32 %v5480_v18, %v5480_v18 }
 0xf04   :  { %4059 = vmatprep.subr.bf16.mxu0 %v4344_v9  ;;  %v5484_v14 = vpop.f32.mrb[38].mxu1 }
 0xf05   :  { %v5486_v17 = vpop.f32.mrb[39].mxu1 }
 0xf06   :  { %v2883_v13 = vmul.f32 %v5486_v17, %v5486_v17 }
 0xf07   :  { %4060 = vmatpush3.bf16.msra.mxu0 %v4344_v9 }
 0xf08   :  { %4061 = vmatprep.subr.bf16.mxu0 %v4345_v11 }
 0xf0a   :  { %2868 = vmatmul.mubr.bf16.gmra.mrb[64].mxu0 %v5465_v19  ;;  %v5488_v19 = vpop.f32.mrb[40].mxu1 }
 0xf0b   :  { %4062 = vmatpush3.bf16.msra.mxu0 %v4345_v11  ;;  %v5490_v22 = vpop.f32.mrb[41].mxu1  ;;  %v2884_v17 = vmul.f32 %v5488_v19, %v5488_v19 }
 0xf0c   :  { %4063 = vmatprep.subr.bf16.mxu0 %v4346_v12  ;;  %v2812_v24 = vpop.f32.mrb[42].mxu1  ;;  %v2885_v28 = vmul.f32 %v5490_v22, %v5490_v22 }
 0xf0d   :  { %v2813_v32 = vpop.f32.mrb[43].mxu1 }
 0xf0f   :  { %4064 = vmatpush3.bf16.msra.mxu0 %v4346_v12  ;;  %v2881_v12 = vmul.f32 %v5482_v20, %v5482_v20 }
 0xf10   :  { %4065 = vmatprep.subr.bf16.mxu0 %v4347_v16 }
 0xf13   :  { %4066 = vmatpush3.bf16.msra.mxu0 %v4347_v16 }
 0xf14   :  { %4067 = vmatprep.subr.bf16.mxu0 %v4348_v21 }
 0xf17   :  { %4068 = vmatpush3.bf16.msra.mxu0 %v4348_v21  ;;  %v2882_v21 = vmul.f32 %v5484_v14, %v5484_v14 }
 0xf8d   :  { %v4051_v29 = vpop.f32.mrb[52].mxu0 }
 0xf8e   :  { %v2339_v63 = vpop.f32.mrb[53].mxu0 }
 0xf8f   :  { %v4052_v40 = vpop.f32.mrb[54].mxu0 }
 0xf90   :  { %v3205_v10 = vpack.c.bf16 %v4052_v40, %v4051_v29  ;;  %v2342_v46 = vpop.f32.mrb[55].mxu0 }
 0xf91   :  { %v3204_v43 = vpack.c.bf16 %v2342_v46, %v2339_v63 }
 0xf93   :  { %4069 = vmatprep.mubr.bf16.mxu0 %v3204_v43 }
 0xf94   :  { %4070 = vmatmul.mubr.bf16.vlgmr.msra.gmra.mrb[68].mxu0 %v3205_v10 }
 0xfcd   :  { %v2849_v49 = vpop.f32.mrb[56].mxu0 }
 0xfce   :  { %v2886_v50 = vmul.f32 %v2849_v49, %v2849_v49  ;;  %v2851_v51 = vpop.f32.mrb[57].mxu0 }
 0xfcf   :  { %v2887_v53 = vmul.f32 %v2851_v51, %v2851_v51  ;;  %v2853_v55 = vpop.f32.mrb[58].mxu0 }
 0xfd0   :  { %v2896_v57 = vadd.f32 %v2886_v50, %v2876_v47  ;;  %v2888_v58 = vmul.f32 %v2853_v55, %v2853_v55  ;;  %v2855_v60 = vpop.f32.mrb[59].mxu0 }
 0xfd1   :  { %v2897_v62 = vadd.f32 %v2887_v53, %v2877_v48  ;;  %v2889_v0 = vmul.f32 %v2855_v60, %v2855_v60 }
 0xfd2   :  { %v5492_v1 = vadd.f32 1e-06, %v2896_v57  ;;  %v2898_v3 = vadd.f32 %v2888_v58, %v2878_v56 }
 0xfd3   :  { %v5494_v4 = vadd.f32 1e-06, %v2897_v62  ;;  %v2899_v6 = vadd.f32 %v2889_v0, %v2879_v61 }
 0xfd4   :  { %4409 = vrsqrt.f32 %v5492_v1  ;;  %v2908_v45 = vadd.f32 1e-06, %v2898_v3  ;;  %vm2918_vm14 = vcmp.eq.f32.partialorder %v5492_v1, inf  ;;  %vm2920_vm15 = vcmp.eq.f32.partialorder %v5492_v1, 0.0 }
 0xfd5   :  { %4411 = vrsqrt.f32 %v5494_v4  ;;  %v2859_v7 = vpop.f32.mrb[60].mxu0  ;;  %v5500_v8 = vadd.f32 1e-06, %v2899_v6  ;;  %v2921_v35 = vand.u32 2147483648, %v5492_v1  ;;  %vm2925_vm1 = vcmp.eq.f32.partialorder %v5494_v4, inf }
 0xfd6   :  { %v2890_v9 = vmul.f32 %v2859_v7, %v2859_v7  ;;  %v2861_v11 = vpop.f32.mrb[61].mxu0  ;;  %4413 = vrsqrt.f32 %v2908_v45  ;;  %vm2932_vm2 = vcmp.eq.f32.partialorder %v2908_v45, inf  ;;  %vm2934_vm3 = vcmp.eq.f32.partialorder %v2908_v45, 0.0 }
 0xfd7   :  { %v2863_v16 = vpop.f32.mrb[62].mxu0  ;;  %4415 = vrsqrt.f32 %v5500_v8  ;;  %v2891_v15 = vmul.f32 %v2861_v11, %v2861_v11  ;;  %v2935_v10 = vand.u32 2147483648, %v2908_v45  ;;  %vm2939_vm4 = vcmp.eq.f32.partialorder %v5500_v8, inf }
 0xfd8   :  { %v2900_v23 = vadd.f32 %v2890_v9, %v2880_v42  ;;  %v2865_v25 = vpop.f32.mrb[63].mxu0  ;;  %v2892_v18 = vmul.f32 %v2863_v16, %v2863_v16  ;;  %v2942_v49 = vand.u32 2147483648, %v5500_v8  ;;  %v2928_v58 = vand.u32 2147483648, %v5494_v4 }
 0xfd9   :  { %v2893_v24 = vmul.f32 %v2865_v25, %v2865_v25  ;;  %v2901_v37 = vadd.f32 %v2891_v15, %v2881_v12  ;;  %vm2941_vm5 = vcmp.eq.f32.partialorder %v5500_v8, 0.0  ;;  %vm2927_vm6 = vcmp.eq.f32.partialorder %v5494_v4, 0.0 }
 0xfda   :  { %v5509_v32 = vadd.f32 1e-06, %v2900_v23  ;;  %v2902_v26 = vadd.f32 %v2892_v18, %v2882_v21 }
 0xfdb   :  { %v2903_v34 = vadd.f32 %v2893_v24, %v2883_v13  ;;  %v5512_v20 = vadd.f32 1e-06, %v2901_v37 }
 0xfdc   :  { %4417 = vrsqrt.f32 %v5509_v32  ;;  %v5514_v44 = vadd.f32 1e-06, %v2902_v26  ;;  %vm2946_vm7 = vcmp.eq.f32.partialorder %v5509_v32, inf  ;;  %v2949_v0 = vand.u32 2147483648, %v5509_v32 }
 0xfdd   :  { %v5516_v14 = vadd.f32 1e-06, %v2903_v34  ;;  %v2869_v30 = vpop.f32.mrb[64].mxu0  ;;  %4419 = vrsqrt.f32 %v5512_v20  ;;  %vm2948_vm8 = vcmp.eq.f32.partialorder %v5509_v32, 0.0  ;;  %vm2953_vm0 = vcmp.eq.f32.partialorder %v5512_v20, inf }
 0xfde   :  { %v4410_v27 = vpop.eup %4409  ;;  %v2871_v33 = vpop.f32.mrb[65].mxu0  ;;  %4421 = vrsqrt.f32 %v5514_v44  ;;  %v2894_v19 = vmul.f32 %v2869_v30, %v2869_v30  ;;  %vm2960_vm9 = vcmp.eq.f32.partialorder %v5514_v44, inf  ;;  %vm2962_vm10 = vcmp.eq.f32.partialorder %v5514_v44, 0.0 }
 0xfdf   :  { %v4412_v39 = vpop.eup %4411  ;;  %v2917_v31 = vmul.f32 %v4410_v27, %v5492_v1  ;;  %v2873_v36 = vpop.f32.mrb[66].mxu0  ;;  %4423 = vrsqrt.f32 %v5516_v14  ;;  %v2895_v59 = vmul.f32 %v2871_v33, %v2871_v33  ;;  %v2956_v12 = vand.u32 2147483648, %v5512_v20 }
 0xfe0   :  { %v4414_v22 = vpop.eup %4413  ;;  %v2924_v38 = vmul.f32 %v4412_v39, %v5494_v4  ;;  %v2874_v5 = vpop.f32.mrb[67].mxu0  ;;  %v2904_v40 = vadd.f32 %v2894_v19, %v2884_v17  ;;  %v2963_v21 = vand.u32 2147483648, %v5514_v44  ;;  %vm2955_vm11 = vcmp.eq.f32.partialorder %v5512_v20, 0.0 }
 0xfe1   :  { %v2919_v2 = vsel %vm2918_vm14, %v5492_v1, %v2917_v31  ;;  %v4416_v29 = vpop.eup %4415  ;;  %v2931_v63 = vmul.f32 %v4414_v22, %v2908_v45  ;;  %v2905_v43 = vadd.f32 %v2895_v59, %v2885_v28  ;;  %vm2967_vm12 = vcmp.eq.f32.partialorder %v5516_v14, inf }
 0xfe2   :  { %v2938_v46 = vmul.f32 %v4416_v29, %v5500_v8  ;;  %v2922_v47 = vsel %vm2920_vm15, %v2921_v35, %v2919_v2  ;;  %v2914_v50 = vadd.f32 1e-06, %v2904_v40  ;;  %v2926_v55 = vsel %vm2925_vm1, %v5494_v4, %v2924_v38  ;;  %v4365_v4 = vld [vmem:[#allocation16] sm:$0xff]  }
 0xfe3   :  { %v2933_v48 = vsel %vm2932_vm2, %v2908_v45, %v2931_v63  ;;  %v2915_v53 = vadd.f32 1e-06, %v2905_v43  ;;  %v2929_v1 = vsel %vm2927_vm6, %v2928_v58, %v2926_v55  ;;  %4073 = vmatprep.subr.bf16.mxu1 %v4365_v4  ;;  %v2970_v18 = vand.u32 2147483648, %v5516_v14  ;;  %v4367_v55 = vld [vmem:[#allocation16 + $0x10] sm:$0xff]  }
 0xfe4   :  { %v2936_v51 = vsel %vm2934_vm3, %v2935_v10, %v2933_v48  ;;  %v2940_v56 = vsel %vm2939_vm4, %v5500_v8, %v2938_v46  ;;  %4425 = vrsqrt.f32 %v2914_v50  ;;  %vm2969_vm13 = vcmp.eq.f32.partialorder %v5516_v14, 0.0 }
 0xfe5   :  { %v2986_v60 = vadd.f32 %v2936_v51, %v2922_v47  ;;  %4427 = vrsqrt.f32 %v2915_v53  ;;  %v2943_v62 = vsel %vm2941_vm5, %v2942_v49, %v2940_v56  ;;  %vm2974_vm14 = vcmp.eq.f32.partialorder %v2914_v50, inf  ;;  %v4368_v56 = vld [vmem:[#allocation16 + $0x18] sm:$0xff]  }
 0xfe6   :  { %v4418_v57 = vpop.eup %4417  ;;  %v2996_v42 = vadd.f32 %v2943_v62, %v2929_v1  ;;  %v2977_v30 = vand.u32 2147483648, %v2914_v50  ;;  %vm2976_vm15 = vcmp.eq.f32.partialorder %v2914_v50, 0.0  ;;  %vm2981_vm1 = vcmp.eq.f32.partialorder %v2915_v53, inf  ;;  %v4370_v62 = vld [vmem:[#allocation16 + $0x28] sm:$0xff]   ;;  %v4371_v1 = vld [vmem:[#allocation16 + $0x30] sm:$0xff]  }
 0xfe7   :  { %v2945_v61 = vmul.f32 %v4418_v57, %v5509_v32  ;;  %v4420_v3 = vpop.eup %4419  ;;  %v2984_v33 = vand.u32 2147483648, %v2915_v53  ;;  %vm2983_vm2 = vcmp.eq.f32.partialorder %v2915_v53, 0.0 }
 0xfe8   :  { %v4422_v45 = vpop.eup %4421  ;;  %v2952_v8 = vmul.f32 %v4420_v3, %v5512_v20  ;;  %v4372_v3 = vld [vmem:[#allocation16 + $0x38] sm:$0xff]  }
 0xfe9   :  { %v2947_v6 = vsel %vm2946_vm7, %v5509_v32, %v2945_v61  ;;  %v4424_v9 = vpop.eup %4423  ;;  %v2959_v11 = vmul.f32 %v4422_v45, %v5514_v44  ;;  %v4369_v61 = vld [vmem:[#allocation16 + $0x20] sm:$0xff]  }
 0xfea   :  { %v2950_v7 = vsel %vm2948_vm8, %v2949_v0, %v2947_v6  ;;  %v2954_v23 = vsel %vm2953_vm0, %v5512_v20, %v2952_v8  ;;  %v2966_v25 = vmul.f32 %v4424_v9, %v5516_v14  ;;  %v3179_v6 = vadd.f32 %v5270_v54, %v5268_v52 }
 0xfeb   :  { %v2987_v16 = vadd.f32 %v2986_v60, %v2950_v7  ;;  %v2961_v13 = vsel %vm2960_vm9, %v5514_v44, %v2959_v11  ;;  %v2957_v15 = vsel %vm2955_vm11, %v2956_v12, %v2954_v23 }
 0xfec   :  { %v2968_v24 = vsel %vm2967_vm12, %v5516_v14, %v2966_v25  ;;  %v2997_v32 = vadd.f32 %v2996_v42, %v2957_v15  ;;  %v2964_v37 = vsel %vm2962_vm10, %v2963_v21, %v2961_v13  ;;  %v3180_v42 = vrot.slane %v3179_v6, 4 }
 0xfed   :  { %v2971_v26 = vsel %vm2969_vm13, %v2970_v18, %v2968_v24  ;;  %v2988_v34 = vadd.f32 %v2987_v16, %v2964_v37 }
 0xfee   :  { %v4426_v20 = vpop.eup %4425  ;;  %v2998_v27 = vadd.f32 %v2997_v32, %v2971_v26  ;;  %v3181_v45 = vadd.f32 %v3180_v42, %v3179_v6 }
 0xfef   :  { %v4428_v17 = vpop.eup %4427  ;;  %v2973_v28 = vmul.f32 %v4426_v20, %v2914_v50 }
 0xff0   :  { %v2980_v39 = vmul.f32 %v4428_v17, %v2915_v53  ;;  %v3182_v7 = vrot.slane %v3181_v45, 2 }
 0xff1   :  { %v2975_v31 = vsel %vm2974_vm14, %v2914_v50, %v2973_v28 }
 0xff2   :  { %v2982_v35 = vsel %vm2981_vm1, %v2915_v53, %v2980_v39  ;;  %v2978_v14 = vsel %vm2976_vm15, %v2977_v30, %v2975_v31  ;;  %v4366_v53 = vld [vmem:[#allocation16 + $0x8] sm:$0xff]   ;;  %v3183_v8 = vadd.f32 %v3182_v7, %v3181_v45 }
 0xff3   :  { %v2985_v19 = vsel %vm2983_vm2, %v2984_v33, %v2982_v35  ;;  %v2989_v36 = vadd.f32 %v2988_v34, %v2978_v14 }
 0xff4   :  { %v2999_v44 = vadd.f32 %v2998_v27, %v2985_v19 }
 0xff5   :  { %v2990_v22 = vrot.slane %v2989_v36, 4 }
 0xff6   :  { %v3000_v2 = vrot.slane %v2999_v44, 4 }
 0xff7   :  { %v2991_v38 = vadd.f32 %v2990_v22, %v2989_v36 }
 0xff8   :  { %v3001_v59 = vadd.f32 %v3000_v2, %v2999_v44 }
 0xff9   :  { %v2992_v5 = vrot.slane %v2991_v38, 2 }
 0xffa   :  { %v3002_v29 = vrot.slane %v3001_v59, 2 }
 0xffb   :  { %v2993_v63 = vadd.f32 %v2992_v5, %v2991_v38 }
 0xffc   :  { %v3003_v40 = vadd.f32 %v3002_v29, %v3001_v59 }
 0xffd   :  { %v2994_v10 = vrot.slane %v2993_v63, 1 }
 0xffe   :  { %v3004_v46 = vrot.slane %v3003_v40, 1 }
 0xfff   :  { %v2995_v43 = vadd.f32 %v2994_v10, %v2993_v63 }
0x1000   :  { %v3005_v47 = vadd.f32 %v3004_v46, %v3003_v40 }
0x1001   :  { %v3007_v48 = vmul.f32 0.025, %v2995_v43 }
0x1002   :  { %v3008_v49 = vmul.f32 0.025, %v3005_v47 }
0x1003   :  { %v3041_v51 = vpack.c.bf16 %v3007_v48, %v3007_v48 }
0x1004   :  { %v3042_v50 = vpack.c.bf16 %v3008_v49, %v3008_v49 }
0x1006   :  { %3171 = vmatprep.mubr.bf16.mxu1 %v3042_v50 }
0x1007   :  { %3172 = vmatmul.mubr.bf16.vlgmr.msra.gmra.mrb[44].mxu1 %v3041_v51 }
0x1008   :  { %4074 = vmatpush3.bf16.msra.mxu1 %v4365_v4  ;;  %v3184_v4 = vrot.slane %v3183_v8, 1 }
0x1009   :  { %4075 = vmatprep.subr.bf16.mxu1 %v4366_v53 }
0x100a   :  { %v3185_v11 = vadd.f32 %v3184_v4, %v3183_v8 }
0x100c   :  { %4076 = vmatpush3.bf16.msra.mxu1 %v4366_v53  ;;  %v3187_v13 = vmul.f32 0.0625, %v3185_v11 }
0x100d   :  { %4077 = vmatprep.subr.bf16.mxu1 %v4367_v55 }
0x1010   :  { %4078 = vmatpush3.bf16.msra.mxu1 %v4367_v55 }
0x1011   :  { %4079 = vmatprep.subr.bf16.mxu1 %v4368_v56 }
0x1014   :  { %4080 = vmatpush3.bf16.msra.mxu1 %v4368_v56 }
0x1015   :  { %4081 = vmatprep.subr.bf16.mxu1 %v4369_v61 }
0x1018   :  { %4082 = vmatpush3.bf16.msra.mxu1 %v4369_v61 }
0x1019   :  { %4083 = vmatprep.subr.bf16.mxu1 %v4370_v62 }
0x101c   :  { %4084 = vmatpush3.bf16.msra.mxu1 %v4370_v62 }
0x101d   :  { %4085 = vmatprep.subr.bf16.mxu1 %v4371_v1 }
0x1020   :  { %4086 = vmatpush3.bf16.msra.mxu1 %v4371_v1 }
0x1021   :  { %4087 = vmatprep.subr.bf16.mxu1 %v4372_v3 }
0x1024   :  { %4088 = vmatpush3.bf16.msra.mxu1 %v4372_v3 }
0x1067   :  { %v4071_v57 = vpop.f32.mrb[68].mxu0 }
0x1068   :  { %v3292_v58 = vpop.f32.mrb[69].mxu0 }
0x1069   :  { %v4072_v60 = vpop.f32.mrb[70].mxu0 }
0x106a   :  { %v3295_v0 = vpop.f32.mrb[71].mxu0 }
0x10da   :  { %v3927_v9 = vpop.f32.mrb[44].mxu1 }
0x10db   :  { %v3928_v12 = vpop.f32.mrb[45].mxu1 }
0x10dc   :  { %v3929_v16 = vadd.f32 %v3928_v12, %v3927_v9  ;;  %v3930_v21 = vpop.f32.mrb[46].mxu1 }
0x10dd   :  { %v3931_v23 = vpop.f32.mrb[47].mxu1 }
0x10de   :  { %v3209_v25 = vrot.slane %v3929_v16, %v5012_v41 }
0x10e0   :  { %v3293_v15 = vadd.f32 %v3292_v58, %v3209_v25  ;;  %v3301_v18 = vadd.f32 %v4071_v57, %v3209_v25  ;;  %v3296_v24 = vadd.f32 %v3295_v0, %v3209_v25  ;;  %v3304_v32 = vadd.f32 %v4072_v60, %v3209_v25 }
0x10e2   :  { %v3307_v37 = vadd.f32 %v3293_v15, %v3187_v13  ;;  %v3308_v52 = vadd.f32 %v3296_v24, %v3187_v13  ;;  %v3309_v54 = vadd.f32 %v3301_v18, %v3187_v13  ;;  %v3310_v26 = vadd.f32 %v3304_v32, %v3187_v13 }
0x10e4   :  { %4429 = vtanh.f32 %v3307_v37 }
0x10e5   :  { %4431 = vtanh.f32 %v3308_v52 }
0x10e6   :  { %4433 = vtanh.f32 %v3309_v54 }
0x10e7   :  { %4435 = vtanh.f32 %v3310_v26 }
0x10ee   :  { %v4430_v34 = vpop.eup %4429 }
0x10ef   :  { %v4432_v20 = vpop.eup %4431 }
0x10f0   :  { %v4434_v27 = vpop.eup %4433  ;;  %v3331_v17 = vpack.c.bf16 %v4432_v20, %v4430_v34 }
0x10f1   :  { %v4436_v28 = vpop.eup %4435 }
0x10f2   :  { %4089 = vmatprep.mubr.bf16.mxu1 %v3331_v17  ;;  %v3332_v41 = vpack.c.bf16 %v4436_v28, %v4434_v27 }
0x10f4   :  { %4090 = vmatmul.mubr.bf16.vlgmr.msra.gmra.mrb[48].mxu1 %v3332_v41 }
0x11c7   :  { %v4091_v30 = vpop.f32.mrb[48].mxu1 }
0x11c8   :  { %v3415_v39 = vpop.f32.mrb[49].mxu1 }
0x11c9   :  { %4437 = vtanh.f32 %v3415_v39  ;;  %v4092_v31 = vpop.f32.mrb[50].mxu1 }
0x11ca   :  { %4439 = vtanh.f32 %v4091_v30  ;;  %v3418_v33 = vpop.f32.mrb[51].mxu1 }
0x11cb   :  { %4441 = vtanh.f32 %v3418_v33 }
0x11cc   :  { %4443 = vtanh.f32 %v4092_v31 }
0x11d3   :  { %v4438_v35 = vpop.eup %4437 }
0x11d4   :  { %v4440_v14 = vpop.eup %4439  ;;  %v3434_v19 = vand.u32 2147483647, %v4438_v35 }
0x11d5   :  { %v4442_v36 = vpop.eup %4441  ;;  %v3436_v2 = vand.u32 2147483647, %v4440_v14 }
0x11d6   :  { %3438 = vmax.xlane.f32.xlu0 %v3434_v19  ;;  %v3435_v44 = vand.u32 2147483647, %v4442_v36  ;;  %v4444_v22 = vpop.eup %4443 }
0x11d7   :  { %v3437_v38 = vand.u32 2147483647, %v4444_v22 }
0x11d8   :  { %3440 = vmax.xlane.f32.xlu1 %v3435_v44 }
0x11da   :  { %3442 = vmax.xlane.f32.xlu0 %v3436_v2 }
0x11dc   :  { %3444 = vmax.xlane.f32.xlu1 %v3437_v38 }
0x1263   :  { %v3439_v59 = vpop.xlane.xlu0 %3438 }
0x1265   :  { %v3441_v5 = vpop.xlane.xlu1 %3440 }
0x1266   :  { %v3446_v40 = vmax.f32 %v3439_v59, %v3441_v5 }
0x1267   :  { %v3443_v29 = vpop.xlane.xlu0 %3442 }
0x1269   :  { %v3445_v63 = vpop.xlane.xlu1 %3444 }
0x126a   :  { %v3447_v10 = vmax.f32 %v3443_v29, %v3445_v63 }
0x126c   :  { %v3448_v46 = vmax.f32 %v3446_v40, %v3447_v10 }
0x126e   :  { %v3449_v43 = vrot.slane %v3448_v46, 4 }
0x1270   :  { %v3450_v47 = vmax.f32 %v3448_v46, %v3449_v43 }
0x1272   :  { %v3451_v48 = vrot.slane %v3450_v47, 2 }
0x1274   :  { %v3452_v49 = vmax.f32 %v3450_v47, %v3451_v48 }
0x1276   :  { %v3453_v50 = vrot.slane %v3452_v49, 1 }
0x1278   :  { %v3454_v51 = vmax.f32 %v3452_v49, %v3453_v50 }
0x127a   :  { %v3455_v53 = vmax.f32 %v3454_v51, 1.0 }
0x127c   :  { %4445 = vrcp.f32 %v3455_v53 }
0x1286   :  { %v4446_v55 = vpop.eup %4445 }
0x1287   :  { %v3457_v56 = vmul.f32 32768.0, %v4446_v55 }
0x1289   :  { %v3458_v57 = vmul.f32 %v4438_v35, %v3457_v56  ;;  %v3459_v58 = vmul.f32 %v4442_v36, %v3457_v56  ;;  %v3460_v60 = vmul.f32 %v4440_v14, %v3457_v56  ;;  %v3461_v61 = vmul.f32 %v4444_v22, %v3457_v56 }
0x128b   :  { %v3462_v62 = vmax.f32 %v3458_v57, -32768.0  ;;  %v3463_v0 = vmax.f32 %v3459_v58, -32768.0  ;;  %v3464_v1 = vmax.f32 %v3460_v60, -32768.0  ;;  %v3465_v3 = vmax.f32 %v3461_v61, -32768.0 }
0x128d   :  { %v3466_v6 = vmin.f32 %v3462_v62, 32767.0  ;;  %v3467_v42 = vmin.f32 %v3463_v0, 32767.0  ;;  %v3468_v45 = vmin.f32 %v3464_v1, 32767.0 }
0x128e   :  { %v3469_v7 = vmin.f32 %v3465_v3, 32767.0 }
0x128f   :  { %3470 = vst [vmem:[%s5600_s19] sm:$0xff] %v3466_v6  ;;  %3471 = vst [vmem:[%s5600_s19 + $0x8] sm:$0xff] %v3467_v42 }
0x1290   :  { %3472 = vst [vmem:[%s5600_s19 + $0x10] sm:$0xff] %v3468_v45  ;;  %3473 = vst [vmem:[%s5600_s19 + $0x18] sm:$0xff] %v3469_v7 }
0x1291   :  { %3478 = vsyncpa [#allocation3], 1 }
0x1292   :  { %3479 = vsyncpa [#allocation5], 1 }
0x1293   :  { %3480 = vsyncpa [#allocation8], 1 }
0x1294   :  { %3481 = vsyncpa [#allocation11], 1 }
0x1295   :  { %3482 = vsyncpa [#allocation14], 1 }
0x1296   :  { %3483 = vsyncpa [#allocation17], 1 }

</bundles_post_ra>
